<compile_context>
chip_gen: v6e
topology: v6e:2x2x1
jax: 0.10.0
libtpu: 0.0.40
codegen_flags: <defaults>
</compile_context>

<pallas_src>
import functools
import math

import jax
import jax.numpy as jnp
import numpy as np
from jax.experimental import pallas as pl
from jax.experimental.pallas import tpu as pltpu


_TAPS = [(od, oh, ow) for od in (-1, 0, 1) for oh in (-1, 0, 1) for ow in (-1, 0, 1)]


def _grouping(nch, compute_dtype):
    """Taps per im2col store so each store covers whole packed-sublane groups."""
    sub = 8 * (4 // jnp.dtype(compute_dtype).itemsize)   # rows per full 32b-sublane group
    grp = math.lcm(nch, sub) // nch
    ntap = ((27 + grp - 1) // grp) * grp                  # 27 real taps, zero-padded
    return grp, ntap


def _tile_lanes(v, reps):
    """Repeat a (1, HW) vector `reps` times along the lane axis."""
    if reps == 1:
        return v
    return jnp.concatenate([v] * reps, axis=1)


# ---------------------------------------------------------------------------
# Fused kernel: conv1 -> conv2 for one (batch, depth-tile) grid step.
# ---------------------------------------------------------------------------
def _fused_def_kernel(wids_ref, xc_ref, xlo_ref, xhi_ref,
                      w1_ref, b1_ref, w2_ref, b2_ref,
                      o_ref,
                      xslab_ref, xcol_ref, hslab_ref, hcol_ref,
                      *, D, H, W, TD, cin, cmid,
                      grp1, ntap1, grp2, ntap2, mpad):
    HW = H * W
    L0 = (TD + 4) * HW          # input slab interior (output tile + 2-voxel D halo)
    L1 = (TD + 2) * HW          # conv1 output frame (tile + 1-voxel D halo)
    L2 = TD * HW                # conv2 output frame (= output tile)
    cdt = xslab_ref.dtype

    d0 = pl.program_id(1) * TD  # global depth of the first output slice of this tile

    # --- 1) assemble the haloed input slab in VMEM; zero only the margins ----
    xslab_ref[:, :mpad] = jnp.zeros((cin, mpad), cdt)
    xslab_ref[:, mpad + L0:] = jnp.zeros((cin, mpad), cdt)
    xslab_ref[:, mpad:mpad + 2 * HW] = xlo_ref[...].astype(cdt)
    xslab_ref[:, mpad + 2 * HW:mpad + (TD + 2) * HW] = xc_ref[...].astype(cdt)
    xslab_ref[:, mpad + (TD + 2) * HW:mpad + L0] = xhi_ref[...].astype(cdt)

    # --- 2) boundary masks built in-kernel (iota compares + tiny w-id table) --
    wplane = wids_ref[...]                                        # (1, HW) int32
    pplane = jax.lax.broadcasted_iota(jnp.int32, (1, HW), 1)      # plane position

    def frame_masks(n_slices, d_first):
        pos = jax.lax.broadcasted_iota(jnp.int32, (1, n_slices * HW), 1)
        pv = _tile_lanes(pplane, n_slices)
        wv = _tile_lanes(wplane, n_slices)
        return {
            "d-": pos >= (1 - d_first) * HW,       # source depth-1 >= 0
            "d+": pos < (D - 1 - d_first) * HW,    # source depth+1 <= D-1
            "h-": pv >= W,                         # h >= 1
            "h+": pv < HW - W,                     # h <= H-2
            "w-": wv >= 1,                         # w >= 1
            "w+": wv < W - 1,                      # w <= W-2
        }

    m1 = frame_masks(TD + 2, d0 - 1)               # conv1 frame starts at depth d0-1
    m2 = frame_masks(TD, d0)                       # conv2 frame starts at depth d0

    def tap_mask(masks, od, oh, ow):
        keys = []
        if od == -1: keys.append("d-")
        if od == +1: keys.append("d+")
        if oh == -1: keys.append("h-")
        if oh == +1: keys.append("h+")
        if ow == -1: keys.append("w-")
        if ow == +1: keys.append("w+")
        if not keys:
            return None
        m = masks[keys[0]]
        for k in keys[1:]:
            m = jnp.logical_and(m, masks[k])
        return m

    def build_im2col(src_ref, col_ref, base, L, masks, nch, grp, ntap):
        zero_piece = jnp.zeros((nch, L), cdt)
        for g in range(ntap // grp):
            pieces = []
            for j in range(grp):
                k = g * grp + j
                if k < 27:
                    od, oh, ow = _TAPS[k]
                    off = base + od * HW + oh * W + ow          # static slice start
                    tap = src_ref[:, off:off + L]
                    m = tap_mask(masks, od, oh, ow)
                    if m is not None:
                        tap = jnp.where(m, tap, jnp.zeros((), cdt))
                    pieces.append(tap)
                else:
                    pieces.append(zero_piece)
            blk = pieces[0] if len(pieces) == 1 else jnp.concatenate(pieces, axis=0)
            col_ref[g * grp * nch:(g + 1) * grp * nch, :] = blk  # full-sublane store

    # --- 3) conv1: grouped im2col + one big-K MXU matmul (f32 accumulate) -----
    build_im2col(xslab_ref, xcol_ref, mpad + HW, L1, m1, cin, grp1, ntap1)
    h = jnp.dot(w1_ref[...], xcol_ref[...],
                preferred_element_type=jnp.float32) + b1_ref[...]     # (Cmid, L1)

    # stage the intermediate in VMEM (never touches HBM); zero only the margins
    hslab_ref[:, :mpad] = jnp.zeros((cmid, mpad), cdt)
    hslab_ref[:, mpad + L1:] = jnp.zeros((cmid, mpad), cdt)
    hslab_ref[:, mpad:mpad + L1] = h.astype(cdt)

    # --- 4) conv2: same im2col trick on the VMEM-resident intermediate --------
    build_im2col(hslab_ref, hcol_ref, mpad + HW, L2, m2, cmid, grp2, ntap2)
    out = jnp.dot(w2_ref[...], hcol_ref[...],
                  preferred_element_type=jnp.float32) + b2_ref[...]   # (Cout, L2)
    o_ref[...] = out.astype(o_ref.dtype)


# ---------------------------------------------------------------------------
# Tile-size selection against a conservative per-step VMEM budget.
# ---------------------------------------------------------------------------
def _pick_tile_d(D, HW, cin, cmid, cout, cbytes, xbytes, ntap1, ntap2, mpad,
                 budget=20 * 1024 * 1024):
    cands = [td for td in range(2, D + 1, 2) if D % td == 0]
    best = cands[0]
    for td in cands:
        l0, l1, l2 = (td + 4) * HW, (td + 2) * HW, td * HW
        scratch = cbytes * (cin * (l0 + 2 * mpad) + ntap1 * cin * l1
                            + cmid * (l1 + 2 * mpad) + ntap2 * cmid * l2)
        io = 2 * xbytes * (cin * (td + 4) * HW + cout * td * HW)
        if scratch + io <= budget:
            best = td
    return best


# ---------------------------------------------------------------------------
# Wrapper: full `Def` forward pass (NCDHW in, NCDHW out).
# ---------------------------------------------------------------------------
@functools.partial(jax.jit, static_argnames=("tile_d", "compute_dtype"))
def def_forward(x_in, w1, b1, w2, b2, *, tile_d=None, compute_dtype=jnp.bfloat16):
    B, Cin, D, H, W = x_in.shape
    Cmid = w1.shape[0]
    Cout = w2.shape[0]
    HW = H * W

    # TODO(synk): lane-aligned 2-slice D-halo blocks require even D and H*W % 64 == 0;
    # add a whole-volume fallback path for other shapes.
    assert D % 2 == 0 and (2 * HW) % 128 == 0, "need even D and H*W % 64 == 0"

    cdt = jnp.dtype(compute_dtype)
    grp1, ntap1 = _grouping(Cin, cdt)
    grp2, ntap2 = _grouping(Cmid, cdt)
    mpad = ((W + 1 + 127) // 128) * 128        # flat-shift overrun margin, lane-aligned

    if tile_d is None:
        tile_d = _pick_tile_d(D, HW, Cin, Cmid, Cout, cdt.itemsize,
                              x_in.dtype.itemsize, ntap1, ntap2, mpad)
    assert D % tile_d == 0 and tile_d % 2 == 0
    TD = tile_d
    T = D // TD
    half = TD // 2

    # VMEM budget estimate -> explicit scoped-VMEM limit (review item: set it).
    l0, l1, l2 = (TD + 4) * HW, (TD + 2) * HW, TD * HW
    scratch_b = cdt.itemsize * (Cin * (l0 + 2 * mpad) + ntap1 * Cin * l1
                                + Cmid * (l1 + 2 * mpad) + ntap2 * Cmid * l2)
    io_b = 2 * x_in.dtype.itemsize * (Cin * (TD + 4) * HW + Cout * TD * HW)
    w_b = 2 * cdt.itemsize * (Cmid * ntap1 * Cin + Cout * ntap2 * Cmid) + 4 * HW
    vmem_limit = int(min(max(2 * (scratch_b + io_b + w_b), 32 << 20), 64 << 20))

    # Tiny per-plane w-index table; depth / row masks come from iota compares in-kernel.
    w_ids = jnp.asarray(np.tile(np.arange(W, dtype=np.int32), H)[None, :])   # (1, HW)

    # im2col weight matrices: K rows ordered (tap, channel) = kernel stacking order;
    # zero-padded to the grouped tap count (grouping does NOT reorder rows).
    w1m = jnp.transpose(w1, (0, 2, 3, 4, 1)).reshape(Cmid, 27 * Cin)
    w1m = jnp.pad(w1m, ((0, 0), (0, (ntap1 - 27) * Cin))).astype(compute_dtype)
    w2m = jnp.transpose(w2, (0, 2, 3, 4, 1)).reshape(Cout, 27 * Cmid)
    w2m = jnp.pad(w2m, ((0, 0), (0, (ntap2 - 27) * Cmid))).astype(compute_dtype)
    b1m = b1.reshape(Cmid, 1).astype(jnp.float32)
    b2m = b2.reshape(Cout, 1).astype(jnp.float32)

    xf = x_in.reshape(B, Cin, D * HW)   # channels-first, flat spatial on the lane axis

    kernel = functools.partial(
        _fused_def_kernel, D=D, H=H, W=W, TD=TD, cin=Cin, cmid=Cmid,
        grp1=grp1, ntap1=ntap1, grp2=grp2, ntap2=ntap2, mpad=mpad)

    out = pl.pallas_call(
        kernel,
        out_shape=jax.ShapeDtypeStruct((B, Cout, D * HW), x_in.dtype),
        grid_spec=pltpu.PrefetchScalarGridSpec(
            num_scalar_prefetch=0,
            grid=(B, T),
            in_specs=[
                pl.BlockSpec((1, HW), lambda b, t: (0, 0)),                     # w-id table
                pl.BlockSpec((None, Cin, TD * HW), lambda b, t: (b, 0, t)),     # x tile
                pl.BlockSpec((None, Cin, 2 * HW),                               # low D halo
                             lambda b, t: (b, 0, jnp.maximum(t * half - 1, 0))),
                pl.BlockSpec((None, Cin, 2 * HW),                               # high D halo
                             lambda b, t: (b, 0, jnp.minimum((t + 1) * half, D // 2 - 1))),
                pl.BlockSpec((Cmid, ntap1 * Cin), lambda b, t: (0, 0)),         # W1 (im2col)
                pl.BlockSpec((Cmid, 1), lambda b, t: (0, 0)),                   # b1
                pl.BlockSpec((Cout, ntap2 * Cmid), lambda b, t: (0, 0)),        # W2 (im2col)
                pl.BlockSpec((Cout, 1), lambda b, t: (0, 0)),                   # b2
            ],
            out_specs=pl.BlockSpec((None, Cout, TD * HW), lambda b, t: (b, 0, t)),
            scratch_shapes=[
                pltpu.VMEM((Cin, l0 + 2 * mpad), compute_dtype),     # haloed input slab
                pltpu.VMEM((ntap1 * Cin, l1), compute_dtype),        # conv1 im2col
                pltpu.VMEM((Cmid, l1 + 2 * mpad), compute_dtype),    # intermediate slab
                pltpu.VMEM((ntap2 * Cmid, l2), compute_dtype),       # conv2 im2col
            ],
        ),
        compiler_params=pltpu.CompilerParams(
            dimension_semantics=("parallel", "parallel"),
            vmem_limit_bytes=vmem_limit),
    )(w_ids, xf, xf, xf, w1m, b1m, w2m, b2m)

    return out.reshape(B, Cout, D, H, W)


# ---------------------------------------------------------------------------
# Pure-JAX reference (lax conv, NCDHW) for correctness checks.
# ---------------------------------------------------------------------------
def _conv3d_ref(x, w, b):
    y = jax.lax.conv_general_dilated(
        x, w, window_strides=(1, 1, 1), padding="SAME",
        dimension_numbers=("NCDHW", "OIDHW", "NCDHW"))
    return y + b.reshape(1, -1, 1, 1, 1)


def _def_ref(x_in, w1, b1, w2, b2):
    return _conv3d_ref(_conv3d_ref(x_in, w1, b1), w2, b2)


def _init_conv3d(key, cin, cout):
    # Deterministic init mimicking PyTorch's default uniform(-1/sqrt(fan_in), ...)
    kw, kb = jax.random.split(key)
    fan_in = cin * 3 * 3 * 3
    bound = 1.0 / jnp.sqrt(jnp.float32(fan_in))
    w = jax.random.uniform(kw, (cout, cin, 3, 3, 3), jnp.float32, -bound, bound)
    b = jax.random.uniform(kb, (cout,), jnp.float32, -bound, bound)
    return w, b


if __name__ == "__main__":
    in_channels, out_channels = 4, 4
    B, D, H, W = 2, 8, 8, 8

    key = jax.random.PRNGKey(0)
    kx, k1, k2 = jax.random.split(key, 3)

    x_in = jax.random.normal(kx, (B, in_channels, D, H, W), jnp.float32)
    w1, b1 = _init_conv3d(k1, in_channels, in_channels // 2)
    w2, b2 = _init_conv3d(k2, in_channels // 2, out_channels)

    ref = _def_ref(x_in, w1, b1, w2, b2)

    # f32 path, forced 2 D-tiles: validates halo / mask / grouped-store math tightly.
    out_f32 = jax.block_until_ready(
        def_forward(x_in, w1, b1, w2, b2, tile_d=4, compute_dtype=jnp.float32))
    assert out_f32.shape == (B, out_channels, D, H, W)
    err32 = float(jnp.max(jnp.abs(out_f32 - ref)))
    assert jnp.allclose(out_f32, ref, atol=2e-4, rtol=2e-4), f"f32 max err {err32}"

    # bf16 im2col / MXU-feed path (v6e/v7x default), auto-picked D-tile.
    out_bf16 = jax.block_until_ready(
        def_forward(x_in, w1, b1, w2, b2, compute_dtype=jnp.bfloat16))
    errbf = float(jnp.max(jnp.abs(out_bf16 - ref)))
    assert jnp.allclose(out_bf16, ref, atol=8e-2, rtol=8e-2), f"bf16 max err {errbf}"

    print("KERNEL_OK")
</pallas_src>

<mosaic_0001>
module attributes {stable_mosaic.version = 11 : i64} {
  func.func @_fused_def_kernel(%arg0: i32, %arg1: i32, %arg2: memref<1x64xi32, #tpu.memory_space<vmem>>, %arg3: memref<1x4x256xf32, #tpu.memory_space<vmem>>, %arg4: memref<1x4x128xf32, #tpu.memory_space<vmem>>, %arg5: memref<1x4x128xf32, #tpu.memory_space<vmem>>, %arg6: memref<2x112xf32, #tpu.memory_space<vmem>>, %arg7: memref<2x1xf32, #tpu.memory_space<vmem>>, %arg8: memref<4x56xf32, #tpu.memory_space<vmem>>, %arg9: memref<4x1xf32, #tpu.memory_space<vmem>>, %arg10: memref<1x4x256xf32, #tpu.memory_space<vmem>>, %arg11: memref<4x768xf32, #tpu.memory_space<vmem>>, %arg12: memref<112x384xf32, #tpu.memory_space<vmem>>, %arg13: memref<2x640xf32, #tpu.memory_space<vmem>>, %arg14: memref<56x256xf32, #tpu.memory_space<vmem>>) attributes {dimension_semantics = [#tpu.dimension_semantics<parallel>, #tpu.dimension_semantics<parallel>], iteration_bounds = array<i64: 2, 2>, scalar_prefetch = 0 : i64, scratch_operands = 4 : i64, tpu.core_type = #tpu.core_type<tc>, window_params = [{pipeline_mode = #tpu.pipeline_mode<synchronous>, transform_indices = @transform_0, window_bounds = array<i64: 1, 64>}, {transform_indices = @transform_1, window_bounds = array<i64: 1, 4, 256>}, {transform_indices = @transform_2, window_bounds = array<i64: 1, 4, 128>}, {transform_indices = @transform_3, window_bounds = array<i64: 1, 4, 128>}, {pipeline_mode = #tpu.pipeline_mode<synchronous>, transform_indices = @transform_4, window_bounds = array<i64: 2, 112>}, {pipeline_mode = #tpu.pipeline_mode<synchronous>, transform_indices = @transform_5, window_bounds = array<i64: 2, 1>}, {pipeline_mode = #tpu.pipeline_mode<synchronous>, transform_indices = @transform_6, window_bounds = array<i64: 4, 56>}, {pipeline_mode = #tpu.pipeline_mode<synchronous>, transform_indices = @transform_7, window_bounds = array<i64: 4, 1>}, {transform_indices = @transform_8, window_bounds = array<i64: 1, 4, 256>}]} {
    %c4_i32 = arith.constant 4 : i32
    %0 = arith.muli %arg1, %c4_i32 : i32
    %cst = arith.constant 0.000000e+00 : f32
    %1 = vector.broadcast %cst : f32 to vector<4x128xf32>
    %c0 = arith.constant 0 : index
    %c0_0 = arith.constant 0 : index
    %2 = vector.load %arg11[%c0, %c0_0] : memref<4x768xf32, #tpu.memory_space<vmem>>, vector<4x128xf32>
    tpu.vector_store %arg11[%c0, %c0_0], %1 {strides = array<i32>} : memref<4x768xf32, #tpu.memory_space<vmem>>, vector<4x128xf32>,
    %cst_1 = arith.constant 0.000000e+00 : f32
    %3 = vector.broadcast %cst_1 : f32 to vector<4x128xf32>
    %c0_2 = arith.constant 0 : index
    %c640 = arith.constant 640 : index
    %4 = vector.load %arg11[%c0_2, %c640] : memref<4x768xf32, #tpu.memory_space<vmem>>, vector<4x128xf32>
    tpu.vector_store %arg11[%c0_2, %c640], %3 {strides = array<i32>} : memref<4x768xf32, #tpu.memory_space<vmem>>, vector<4x128xf32>,
    %c0_3 = arith.constant 0 : index
    %c0_4 = arith.constant 0 : index
    %c0_5 = arith.constant 0 : index
    %5 = vector.load %arg4[%c0_3, %c0_4, %c0_5] : memref<1x4x128xf32, #tpu.memory_space<vmem>>, vector<1x4x128xf32>
    %6 = vector.shape_cast %5 : vector<1x4x128xf32> to vector<4x128xf32>
    %c0_6 = arith.constant 0 : index
    %c128 = arith.constant 128 : index
    %7 = vector.load %arg11[%c0_6, %c128] : memref<4x768xf32, #tpu.memory_space<vmem>>, vector<4x128xf32>
    tpu.vector_store %arg11[%c0_6, %c128], %6 {strides = array<i32>} : memref<4x768xf32, #tpu.memory_space<vmem>>, vector<4x128xf32>,
    %c0_7 = arith.constant 0 : index
    %c0_8 = arith.constant 0 : index
    %c0_9 = arith.constant 0 : index
    %8 = vector.load %arg3[%c0_7, %c0_8, %c0_9] : memref<1x4x256xf32, #tpu.memory_space<vmem>>, vector<1x4x256xf32>
    %9 = vector.shape_cast %8 : vector<1x4x256xf32> to vector<4x256xf32>
    %c0_10 = arith.constant 0 : index
    %c256 = arith.constant 256 : index
    %10 = vector.load %arg11[%c0_10, %c256] : memref<4x768xf32, #tpu.memory_space<vmem>>, vector<4x256xf32>
    tpu.vector_store %arg11[%c0_10, %c256], %9 {strides = array<i32>} : memref<4x768xf32, #tpu.memory_space<vmem>>, vector<4x256xf32>,
    %c0_11 = arith.constant 0 : index
    %c0_12 = arith.constant 0 : index
    %c0_13 = arith.constant 0 : index
    %11 = vector.load %arg5[%c0_11, %c0_12, %c0_13] : memref<1x4x128xf32, #tpu.memory_space<vmem>>, vector<1x4x128xf32>
    %12 = vector.shape_cast %11 : vector<1x4x128xf32> to vector<4x128xf32>
    %c0_14 = arith.constant 0 : index
    %c512 = arith.constant 512 : index
    %13 = vector.load %arg11[%c0_14, %c512] : memref<4x768xf32, #tpu.memory_space<vmem>>, vector<4x128xf32>
    tpu.vector_store %arg11[%c0_14, %c512], %12 {strides = array<i32>} : memref<4x768xf32, #tpu.memory_space<vmem>>, vector<4x128xf32>,
    %c0_15 = arith.constant 0 : index
    %c0_16 = arith.constant 0 : index
    %14 = vector.load %arg2[%c0_15, %c0_16] : memref<1x64xi32, #tpu.memory_space<vmem>>, vector<1x64xi32>
    %15 = tpu.iota {dimensions = array<i32: 1>} : vector<1x64xi32>
    %c1_i32 = arith.constant 1 : i32
    %16 = arith.subi %0, %c1_i32 : i32
    %17 = tpu.iota {dimensions = array<i32: 1>} : vector<1x384xi32>
    %18 = tpu.concatenate %15, %15, %15, %15, %15, %15 in 1 : vector<1x64xi32>, vector<1x64xi32>, vector<1x64xi32>, vector<1x64xi32>, vector<1x64xi32>, vector<1x64xi32> -> vector<1x384xi32>
    %19 = tpu.concatenate %14, %14, %14, %14, %14, %14 in 1 : vector<1x64xi32>, vector<1x64xi32>, vector<1x64xi32>, vector<1x64xi32>, vector<1x64xi32>, vector<1x64xi32> -> vector<1x384xi32>
    %c1_i32_17 = arith.constant 1 : i32
    %20 = arith.subi %c1_i32_17, %16 : i32
    %c64_i32 = arith.constant 64 : i32
    %21 = arith.muli %20, %c64_i32 : i32
    %22 = vector.broadcast %21 : i32 to vector<1x384xi32>
    %23 = arith.cmpi sge, %17, %22 : vector<1x384xi32>
    %c7_i32 = arith.constant 7 : i32
    %24 = arith.subi %c7_i32, %16 : i32
    %c64_i32_18 = arith.constant 64 : i32
    %25 = arith.muli %24, %c64_i32_18 : i32
    %26 = vector.broadcast %25 : i32 to vector<1x384xi32>
    %27 = arith.cmpi slt, %17, %26 : vector<1x384xi32>
    %c8_i32 = arith.constant 8 : i32
    %28 = vector.broadcast %c8_i32 : i32 to vector<1x384xi32>
    %29 = arith.cmpi sge, %18, %28 : vector<1x384xi32>
    %c56_i32 = arith.constant 56 : i32
    %30 = vector.broadcast %c56_i32 : i32 to vector<1x384xi32>
    %31 = arith.cmpi slt, %18, %30 : vector<1x384xi32>
    %c1_i32_19 = arith.constant 1 : i32
    %32 = vector.broadcast %c1_i32_19 : i32 to vector<1x384xi32>
    %33 = arith.cmpi sge, %19, %32 : vector<1x384xi32>
    %c7_i32_20 = arith.constant 7 : i32
    %34 = vector.broadcast %c7_i32_20 : i32 to vector<1x384xi32>
    %35 = arith.cmpi slt, %19, %34 : vector<1x384xi32>
    %36 = tpu.iota {dimensions = array<i32: 1>} : vector<1x256xi32>
    %37 = tpu.concatenate %15, %15, %15, %15 in 1 : vector<1x64xi32>, vector<1x64xi32>, vector<1x64xi32>, vector<1x64xi32> -> vector<1x256xi32>
    %38 = tpu.concatenate %14, %14, %14, %14 in 1 : vector<1x64xi32>, vector<1x64xi32>, vector<1x64xi32>, vector<1x64xi32> -> vector<1x256xi32>
    %c1_i32_21 = arith.constant 1 : i32
    %39 = arith.subi %c1_i32_21, %0 : i32
    %c64_i32_22 = arith.constant 64 : i32
    %40 = arith.muli %39, %c64_i32_22 : i32
    %41 = vector.broadcast %40 : i32 to vector<1x256xi32>
    %42 = arith.cmpi sge, %36, %41 : vector<1x256xi32>
    %c7_i32_23 = arith.constant 7 : i32
    %43 = arith.subi %c7_i32_23, %0 : i32
    %c64_i32_24 = arith.constant 64 : i32
    %44 = arith.muli %43, %c64_i32_24 : i32
    %45 = vector.broadcast %44 : i32 to vector<1x256xi32>
    %46 = arith.cmpi slt, %36, %45 : vector<1x256xi32>
    %c8_i32_25 = arith.constant 8 : i32
    %47 = vector.broadcast %c8_i32_25 : i32 to vector<1x256xi32>
    %48 = arith.cmpi sge, %37, %47 : vector<1x256xi32>
    %c56_i32_26 = arith.constant 56 : i32
    %49 = vector.broadcast %c56_i32_26 : i32 to vector<1x256xi32>
    %50 = arith.cmpi slt, %37, %49 : vector<1x256xi32>
    %c1_i32_27 = arith.constant 1 : i32
    %51 = vector.broadcast %c1_i32_27 : i32 to vector<1x256xi32>
    %52 = arith.cmpi sge, %38, %51 : vector<1x256xi32>
    %c7_i32_28 = arith.constant 7 : i32
    %53 = vector.broadcast %c7_i32_28 : i32 to vector<1x256xi32>
    %54 = arith.cmpi slt, %38, %53 : vector<1x256xi32>
    %cst_29 = arith.constant 0.000000e+00 : f32
    %55 = vector.broadcast %cst_29 : f32 to vector<4x384xf32>
    %c0_30 = arith.constant 0 : index
    %c119 = arith.constant 119 : index
    %56 = vector.load %arg11[%c0_30, %c119] : memref<4x768xf32, #tpu.memory_space<vmem>>, vector<4x384xf32>
    %57 = arith.andi %23, %29 : vector<1x384xi1>
    %58 = arith.andi %57, %33 : vector<1x384xi1>
    %cst_31 = arith.constant 0.000000e+00 : f32
    %59 = vector.shape_cast %58 : vector<1x384xi1> to vector<1x384xi1>
    %60 = vector.broadcast %59 : vector<1x384xi1> to vector<4x384xi1>
    %61 = vector.broadcast %cst_31 : f32 to vector<4x384xf32>
    %62 = arith.select %60, %56, %61 : vector<4x384xi1>, vector<4x384xf32>
    %c0_32 = arith.constant 0 : index
    %c120 = arith.constant 120 : index
    %63 = vector.load %arg11[%c0_32, %c120] : memref<4x768xf32, #tpu.memory_space<vmem>>, vector<4x384xf32>
    %64 = arith.andi %23, %29 : vector<1x384xi1>
    %cst_33 = arith.constant 0.000000e+00 : f32
    %65 = vector.shape_cast %64 : vector<1x384xi1> to vector<1x384xi1>
    %66 = vector.broadcast %65 : vector<1x384xi1> to vector<4x384xi1>
    %67 = vector.broadcast %cst_33 : f32 to vector<4x384xf32>
    %68 = arith.select %66, %63, %67 : vector<4x384xi1>, vector<4x384xf32>
    %69 = tpu.concatenate %62, %68 in 0 : vector<4x384xf32>, vector<4x384xf32> -> vector<8x384xf32>
    %c0_34 = arith.constant 0 : index
    %c0_35 = arith.constant 0 : index
    %70 = vector.load %arg12[%c0_34, %c0_35] : memref<112x384xf32, #tpu.memory_space<vmem>>, vector<8x384xf32>
    tpu.vector_store %arg12[%c0_34, %c0_35], %69 {strides = array<i32>} : memref<112x384xf32, #tpu.memory_space<vmem>>, vector<8x384xf32>,
    %c0_36 = arith.constant 0 : index
    %c121 = arith.constant 121 : index
    %71 = vector.load %arg11[%c0_36, %c121] : memref<4x768xf32, #tpu.memory_space<vmem>>, vector<4x384xf32>
    %72 = arith.andi %23, %29 : vector<1x384xi1>
    %73 = arith.andi %72, %35 : vector<1x384xi1>
    %cst_37 = arith.constant 0.000000e+00 : f32
    %74 = vector.shape_cast %73 : vector<1x384xi1> to vector<1x384xi1>
    %75 = vector.broadcast %74 : vector<1x384xi1> to vector<4x384xi1>
    %76 = vector.broadcast %cst_37 : f32 to vector<4x384xf32>
    %77 = arith.select %75, %71, %76 : vector<4x384xi1>, vector<4x384xf32>
    %c0_38 = arith.constant 0 : index
    %c127 = arith.constant 127 : index
    %78 = vector.load %arg11[%c0_38, %c127] : memref<4x768xf32, #tpu.memory_space<vmem>>, vector<4x384xf32>
    %79 = arith.andi %23, %33 : vector<1x384xi1>
    %cst_39 = arith.constant 0.000000e+00 : f32
    %80 = vector.shape_cast %79 : vector<1x384xi1> to vector<1x384xi1>
    %81 = vector.broadcast %80 : vector<1x384xi1> to vector<4x384xi1>
    %82 = vector.broadcast %cst_39 : f32 to vector<4x384xf32>
    %83 = arith.select %81, %78, %82 : vector<4x384xi1>, vector<4x384xf32>
    %84 = tpu.concatenate %77, %83 in 0 : vector<4x384xf32>, vector<4x384xf32> -> vector<8x384xf32>
    %c8 = arith.constant 8 : index
    %c0_40 = arith.constant 0 : index
    %85 = vector.load %arg12[%c8, %c0_40] : memref<112x384xf32, #tpu.memory_space<vmem>>, vector<8x384xf32>
    tpu.vector_store %arg12[%c8, %c0_40], %84 {strides = array<i32>} : memref<112x384xf32, #tpu.memory_space<vmem>>, vector<8x384xf32>,
    %c0_41 = arith.constant 0 : index
    %c128_42 = arith.constant 128 : index
    %86 = vector.load %arg11[%c0_41, %c128_42] : memref<4x768xf32, #tpu.memory_space<vmem>>, vector<4x384xf32>
    %cst_43 = arith.constant 0.000000e+00 : f32
    %87 = vector.shape_cast %23 : vector<1x384xi1> to vector<1x384xi1>
    %88 = vector.broadcast %87 : vector<1x384xi1> to vector<4x384xi1>
    %89 = vector.broadcast %cst_43 : f32 to vector<4x384xf32>
    %90 = arith.select %88, %86, %89 : vector<4x384xi1>, vector<4x384xf32>
    %c0_44 = arith.constant 0 : index
    %c129 = arith.constant 129 : index
    %91 = vector.load %arg11[%c0_44, %c129] : memref<4x768xf32, #tpu.memory_space<vmem>>, vector<4x384xf32>
    %92 = arith.andi %23, %35 : vector<1x384xi1>
    %cst_45 = arith.constant 0.000000e+00 : f32
    %93 = vector.shape_cast %92 : vector<1x384xi1> to vector<1x384xi1>
    %94 = vector.broadcast %93 : vector<1x384xi1> to vector<4x384xi1>
    %95 = vector.broadcast %cst_45 : f32 to vector<4x384xf32>
    %96 = arith.select %94, %91, %95 : vector<4x384xi1>, vector<4x384xf32>
    %97 = tpu.concatenate %90, %96 in 0 : vector<4x384xf32>, vector<4x384xf32> -> vector<8x384xf32>
    %c16 = arith.constant 16 : index
    %c0_46 = arith.constant 0 : index
    %98 = vector.load %arg12[%c16, %c0_46] : memref<112x384xf32, #tpu.memory_space<vmem>>, vector<8x384xf32>
    tpu.vector_store %arg12[%c16, %c0_46], %97 {strides = array<i32>} : memref<112x384xf32, #tpu.memory_space<vmem>>, vector<8x384xf32>,
    %c0_47 = arith.constant 0 : index
    %c135 = arith.constant 135 : index
    %99 = vector.load %arg11[%c0_47, %c135] : memref<4x768xf32, #tpu.memory_space<vmem>>, vector<4x384xf32>
    %100 = arith.andi %23, %31 : vector<1x384xi1>
    %101 = arith.andi %100, %33 : vector<1x384xi1>
    %cst_48 = arith.constant 0.000000e+00 : f32
    %102 = vector.shape_cast %101 : vector<1x384xi1> to vector<1x384xi1>
    %103 = vector.broadcast %102 : vector<1x384xi1> to vector<4x384xi1>
    %104 = vector.broadcast %cst_48 : f32 to vector<4x384xf32>
    %105 = arith.select %103, %99, %104 : vector<4x384xi1>, vector<4x384xf32>
    %c0_49 = arith.constant 0 : index
    %c136 = arith.constant 136 : index
    %106 = vector.load %arg11[%c0_49, %c136] : memref<4x768xf32, #tpu.memory_space<vmem>>, vector<4x384xf32>
    %107 = arith.andi %23, %31 : vector<1x384xi1>
    %cst_50 = arith.constant 0.000000e+00 : f32
    %108 = vector.shape_cast %107 : vector<1x384xi1> to vector<1x384xi1>
    %109 = vector.broadcast %108 : vector<1x384xi1> to vector<4x384xi1>
    %110 = vector.broadcast %cst_50 : f32 to vector<4x384xf32>
    %111 = arith.select %109, %106, %110 : vector<4x384xi1>, vector<4x384xf32>
    %112 = tpu.concatenate %105, %111 in 0 : vector<4x384xf32>, vector<4x384xf32> -> vector<8x384xf32>
    %c24 = arith.constant 24 : index
    %c0_51 = arith.constant 0 : index
    %113 = vector.load %arg12[%c24, %c0_51] : memref<112x384xf32, #tpu.memory_space<vmem>>, vector<8x384xf32>
    tpu.vector_store %arg12[%c24, %c0_51], %112 {strides = array<i32>} : memref<112x384xf32, #tpu.memory_space<vmem>>, vector<8x384xf32>,
    %c0_52 = arith.constant 0 : index
    %c137 = arith.constant 137 : index
    %114 = vector.load %arg11[%c0_52, %c137] : memref<4x768xf32, #tpu.memory_space<vmem>>, vector<4x384xf32>
    %115 = arith.andi %23, %31 : vector<1x384xi1>
    %116 = arith.andi %115, %35 : vector<1x384xi1>
    %cst_53 = arith.constant 0.000000e+00 : f32
    %117 = vector.shape_cast %116 : vector<1x384xi1> to vector<1x384xi1>
    %118 = vector.broadcast %117 : vector<1x384xi1> to vector<4x384xi1>
    %119 = vector.broadcast %cst_53 : f32 to vector<4x384xf32>
    %120 = arith.select %118, %114, %119 : vector<4x384xi1>, vector<4x384xf32>
    %c0_54 = arith.constant 0 : index
    %c183 = arith.constant 183 : index
    %121 = vector.load %arg11[%c0_54, %c183] : memref<4x768xf32, #tpu.memory_space<vmem>>, vector<4x384xf32>
    %122 = arith.andi %29, %33 : vector<1x384xi1>
    %cst_55 = arith.constant 0.000000e+00 : f32
    %123 = vector.shape_cast %122 : vector<1x384xi1> to vector<1x384xi1>
    %124 = vector.broadcast %123 : vector<1x384xi1> to vector<4x384xi1>
    %125 = vector.broadcast %cst_55 : f32 to vector<4x384xf32>
    %126 = arith.select %124, %121, %125 : vector<4x384xi1>, vector<4x384xf32>
    %127 = tpu.concatenate %120, %126 in 0 : vector<4x384xf32>, vector<4x384xf32> -> vector<8x384xf32>
    %c32 = arith.constant 32 : index
    %c0_56 = arith.constant 0 : index
    %128 = vector.load %arg12[%c32, %c0_56] : memref<112x384xf32, #tpu.memory_space<vmem>>, vector<8x384xf32>
    tpu.vector_store %arg12[%c32, %c0_56], %127 {strides = array<i32>} : memref<112x384xf32, #tpu.memory_space<vmem>>, vector<8x384xf32>,
    %c0_57 = arith.constant 0 : index
    %c184 = arith.constant 184 : index
    %129 = vector.load %arg11[%c0_57, %c184] : memref<4x768xf32, #tpu.memory_space<vmem>>, vector<4x384xf32>
    %cst_58 = arith.constant 0.000000e+00 : f32
    %130 = vector.shape_cast %29 : vector<1x384xi1> to vector<1x384xi1>
    %131 = vector.broadcast %130 : vector<1x384xi1> to vector<4x384xi1>
    %132 = vector.broadcast %cst_58 : f32 to vector<4x384xf32>
    %133 = arith.select %131, %129, %132 : vector<4x384xi1>, vector<4x384xf32>
    %c0_59 = arith.constant 0 : index
    %c185 = arith.constant 185 : index
    %134 = vector.load %arg11[%c0_59, %c185] : memref<4x768xf32, #tpu.memory_space<vmem>>, vector<4x384xf32>
    %135 = arith.andi %29, %35 : vector<1x384xi1>
    %cst_60 = arith.constant 0.000000e+00 : f32
    %136 = vector.shape_cast %135 : vector<1x384xi1> to vector<1x384xi1>
    %137 = vector.broadcast %136 : vector<1x384xi1> to vector<4x384xi1>
    %138 = vector.broadcast %cst_60 : f32 to vector<4x384xf32>
    %139 = arith.select %137, %134, %138 : vector<4x384xi1>, vector<4x384xf32>
    %140 = tpu.concatenate %133, %139 in 0 : vector<4x384xf32>, vector<4x384xf32> -> vector<8x384xf32>
    %c40 = arith.constant 40 : index
    %c0_61 = arith.constant 0 : index
    %141 = vector.load %arg12[%c40, %c0_61] : memref<112x384xf32, #tpu.memory_space<vmem>>, vector<8x384xf32>
    tpu.vector_store %arg12[%c40, %c0_61], %140 {strides = array<i32>} : memref<112x384xf32, #tpu.memory_space<vmem>>, vector<8x384xf32>,
    %c0_62 = arith.constant 0 : index
    %c191 = arith.constant 191 : index
    %142 = vector.load %arg11[%c0_62, %c191] : memref<4x768xf32, #tpu.memory_space<vmem>>, vector<4x384xf32>
    %cst_63 = arith.constant 0.000000e+00 : f32
    %143 = vector.shape_cast %33 : vector<1x384xi1> to vector<1x384xi1>
    %144 = vector.broadcast %143 : vector<1x384xi1> to vector<4x384xi1>
    %145 = vector.broadcast %cst_63 : f32 to vector<4x384xf32>
    %146 = arith.select %144, %142, %145 : vector<4x384xi1>, vector<4x384xf32>
    %c0_64 = arith.constant 0 : index
    %c192 = arith.constant 192 : index
    %147 = vector.load %arg11[%c0_64, %c192] : memref<4x768xf32, #tpu.memory_space<vmem>>, vector<4x384xf32>
    %148 = tpu.concatenate %146, %147 in 0 : vector<4x384xf32>, vector<4x384xf32> -> vector<8x384xf32>
    %c48 = arith.constant 48 : index
    %c0_65 = arith.constant 0 : index
    %149 = vector.load %arg12[%c48, %c0_65] : memref<112x384xf32, #tpu.memory_space<vmem>>, vector<8x384xf32>
    tpu.vector_store %arg12[%c48, %c0_65], %148 {strides = array<i32>} : memref<112x384xf32, #tpu.memory_space<vmem>>, vector<8x384xf32>,
    %c0_66 = arith.constant 0 : index
    %c193 = arith.constant 193 : index
    %150 = vector.load %arg11[%c0_66, %c193] : memref<4x768xf32, #tpu.memory_space<vmem>>, vector<4x384xf32>
    %cst_67 = arith.constant 0.000000e+00 : f32
    %151 = vector.shape_cast %35 : vector<1x384xi1> to vector<1x384xi1>
    %152 = vector.broadcast %151 : vector<1x384xi1> to vector<4x384xi1>
    %153 = vector.broadcast %cst_67 : f32 to vector<4x384xf32>
    %154 = arith.select %152, %150, %153 : vector<4x384xi1>, vector<4x384xf32>
    %c0_68 = arith.constant 0 : index
    %c199 = arith.constant 199 : index
    %155 = vector.load %arg11[%c0_68, %c199] : memref<4x768xf32, #tpu.memory_space<vmem>>, vector<4x384xf32>
    %156 = arith.andi %31, %33 : vector<1x384xi1>
    %cst_69 = arith.constant 0.000000e+00 : f32
    %157 = vector.shape_cast %156 : vector<1x384xi1> to vector<1x384xi1>
    %158 = vector.broadcast %157 : vector<1x384xi1> to vector<4x384xi1>
    %159 = vector.broadcast %cst_69 : f32 to vector<4x384xf32>
    %160 = arith.select %158, %155, %159 : vector<4x384xi1>, vector<4x384xf32>
    %161 = tpu.concatenate %154, %160 in 0 : vector<4x384xf32>, vector<4x384xf32> -> vector<8x384xf32>
    %c56 = arith.constant 56 : index
    %c0_70 = arith.constant 0 : index
    %162 = vector.load %arg12[%c56, %c0_70] : memref<112x384xf32, #tpu.memory_space<vmem>>, vector<8x384xf32>
    tpu.vector_store %arg12[%c56, %c0_70], %161 {strides = array<i32>} : memref<112x384xf32, #tpu.memory_space<vmem>>, vector<8x384xf32>,
    %c0_71 = arith.constant 0 : index
    %c200 = arith.constant 200 : index
    %163 = vector.load %arg11[%c0_71, %c200] : memref<4x768xf32, #tpu.memory_space<vmem>>, vector<4x384xf32>
    %cst_72 = arith.constant 0.000000e+00 : f32
    %164 = vector.shape_cast %31 : vector<1x384xi1> to vector<1x384xi1>
    %165 = vector.broadcast %164 : vector<1x384xi1> to vector<4x384xi1>
    %166 = vector.broadcast %cst_72 : f32 to vector<4x384xf32>
    %167 = arith.select %165, %163, %166 : vector<4x384xi1>, vector<4x384xf32>
    %c0_73 = arith.constant 0 : index
    %c201 = arith.constant 201 : index
    %168 = vector.load %arg11[%c0_73, %c201] : memref<4x768xf32, #tpu.memory_space<vmem>>, vector<4x384xf32>
    %169 = arith.andi %31, %35 : vector<1x384xi1>
    %cst_74 = arith.constant 0.000000e+00 : f32
    %170 = vector.shape_cast %169 : vector<1x384xi1> to vector<1x384xi1>
    %171 = vector.broadcast %170 : vector<1x384xi1> to vector<4x384xi1>
    %172 = vector.broadcast %cst_74 : f32 to vector<4x384xf32>
    %173 = arith.select %171, %168, %172 : vector<4x384xi1>, vector<4x384xf32>
    %174 = tpu.concatenate %167, %173 in 0 : vector<4x384xf32>, vector<4x384xf32> -> vector<8x384xf32>
    %c64 = arith.constant 64 : index
    %c0_75 = arith.constant 0 : index
    %175 = vector.load %arg12[%c64, %c0_75] : memref<112x384xf32, #tpu.memory_space<vmem>>, vector<8x384xf32>
    tpu.vector_store %arg12[%c64, %c0_75], %174 {strides = array<i32>} : memref<112x384xf32, #tpu.memory_space<vmem>>, vector<8x384xf32>,
    %c0_76 = arith.constant 0 : index
    %c247 = arith.constant 247 : index
    %176 = vector.load %arg11[%c0_76, %c247] : memref<4x768xf32, #tpu.memory_space<vmem>>, vector<4x384xf32>
    %177 = arith.andi %27, %29 : vector<1x384xi1>
    %178 = arith.andi %177, %33 : vector<1x384xi1>
    %cst_77 = arith.constant 0.000000e+00 : f32
    %179 = vector.shape_cast %178 : vector<1x384xi1> to vector<1x384xi1>
    %180 = vector.broadcast %179 : vector<1x384xi1> to vector<4x384xi1>
    %181 = vector.broadcast %cst_77 : f32 to vector<4x384xf32>
    %182 = arith.select %180, %176, %181 : vector<4x384xi1>, vector<4x384xf32>
    %c0_78 = arith.constant 0 : index
    %c248 = arith.constant 248 : index
    %183 = vector.load %arg11[%c0_78, %c248] : memref<4x768xf32, #tpu.memory_space<vmem>>, vector<4x384xf32>
    %184 = arith.andi %27, %29 : vector<1x384xi1>
    %cst_79 = arith.constant 0.000000e+00 : f32
    %185 = vector.shape_cast %184 : vector<1x384xi1> to vector<1x384xi1>
    %186 = vector.broadcast %185 : vector<1x384xi1> to vector<4x384xi1>
    %187 = vector.broadcast %cst_79 : f32 to vector<4x384xf32>
    %188 = arith.select %186, %183, %187 : vector<4x384xi1>, vector<4x384xf32>
    %189 = tpu.concatenate %182, %188 in 0 : vector<4x384xf32>, vector<4x384xf32> -> vector<8x384xf32>
    %c72 = arith.constant 72 : index
    %c0_80 = arith.constant 0 : index
    %190 = vector.load %arg12[%c72, %c0_80] : memref<112x384xf32, #tpu.memory_space<vmem>>, vector<8x384xf32>
    tpu.vector_store %arg12[%c72, %c0_80], %189 {strides = array<i32>} : memref<112x384xf32, #tpu.memory_space<vmem>>, vector<8x384xf32>,
    %c0_81 = arith.constant 0 : index
    %c249 = arith.constant 249 : index
    %191 = vector.load %arg11[%c0_81, %c249] : memref<4x768xf32, #tpu.memory_space<vmem>>, vector<4x384xf32>
    %192 = arith.andi %27, %29 : vector<1x384xi1>
    %193 = arith.andi %192, %35 : vector<1x384xi1>
    %cst_82 = arith.constant 0.000000e+00 : f32
    %194 = vector.shape_cast %193 : vector<1x384xi1> to vector<1x384xi1>
    %195 = vector.broadcast %194 : vector<1x384xi1> to vector<4x384xi1>
    %196 = vector.broadcast %cst_82 : f32 to vector<4x384xf32>
    %197 = arith.select %195, %191, %196 : vector<4x384xi1>, vector<4x384xf32>
    %c0_83 = arith.constant 0 : index
    %c255 = arith.constant 255 : index
    %198 = vector.load %arg11[%c0_83, %c255] : memref<4x768xf32, #tpu.memory_space<vmem>>, vector<4x384xf32>
    %199 = arith.andi %27, %33 : vector<1x384xi1>
    %cst_84 = arith.constant 0.000000e+00 : f32
    %200 = vector.shape_cast %199 : vector<1x384xi1> to vector<1x384xi1>
    %201 = vector.broadcast %200 : vector<1x384xi1> to vector<4x384xi1>
    %202 = vector.broadcast %cst_84 : f32 to vector<4x384xf32>
    %203 = arith.select %201, %198, %202 : vector<4x384xi1>, vector<4x384xf32>
    %204 = tpu.concatenate %197, %203 in 0 : vector<4x384xf32>, vector<4x384xf32> -> vector<8x384xf32>
    %c80 = arith.constant 80 : index
    %c0_85 = arith.constant 0 : index
    %205 = vector.load %arg12[%c80, %c0_85] : memref<112x384xf32, #tpu.memory_space<vmem>>, vector<8x384xf32>
    tpu.vector_store %arg12[%c80, %c0_85], %204 {strides = array<i32>} : memref<112x384xf32, #tpu.memory_space<vmem>>, vector<8x384xf32>,
    %c0_86 = arith.constant 0 : index
    %c256_87 = arith.constant 256 : index
    %206 = vector.load %arg11[%c0_86, %c256_87] : memref<4x768xf32, #tpu.memory_space<vmem>>, vector<4x384xf32>
    %cst_88 = arith.constant 0.000000e+00 : f32
    %207 = vector.shape_cast %27 : vector<1x384xi1> to vector<1x384xi1>
    %208 = vector.broadcast %207 : vector<1x384xi1> to vector<4x384xi1>
    %209 = vector.broadcast %cst_88 : f32 to vector<4x384xf32>
    %210 = arith.select %208, %206, %209 : vector<4x384xi1>, vector<4x384xf32>
    %c0_89 = arith.constant 0 : index
    %c257 = arith.constant 257 : index
    %211 = vector.load %arg11[%c0_89, %c257] : memref<4x768xf32, #tpu.memory_space<vmem>>, vector<4x384xf32>
    %212 = arith.andi %27, %35 : vector<1x384xi1>
    %cst_90 = arith.constant 0.000000e+00 : f32
    %213 = vector.shape_cast %212 : vector<1x384xi1> to vector<1x384xi1>
    %214 = vector.broadcast %213 : vector<1x384xi1> to vector<4x384xi1>
    %215 = vector.broadcast %cst_90 : f32 to vector<4x384xf32>
    %216 = arith.select %214, %211, %215 : vector<4x384xi1>, vector<4x384xf32>
    %217 = tpu.concatenate %210, %216 in 0 : vector<4x384xf32>, vector<4x384xf32> -> vector<8x384xf32>
    %c88 = arith.constant 88 : index
    %c0_91 = arith.constant 0 : index
    %218 = vector.load %arg12[%c88, %c0_91] : memref<112x384xf32, #tpu.memory_space<vmem>>, vector<8x384xf32>
    tpu.vector_store %arg12[%c88, %c0_91], %217 {strides = array<i32>} : memref<112x384xf32, #tpu.memory_space<vmem>>, vector<8x384xf32>,
    %c0_92 = arith.constant 0 : index
    %c263 = arith.constant 263 : index
    %219 = vector.load %arg11[%c0_92, %c263] : memref<4x768xf32, #tpu.memory_space<vmem>>, vector<4x384xf32>
    %220 = arith.andi %27, %31 : vector<1x384xi1>
    %221 = arith.andi %220, %33 : vector<1x384xi1>
    %cst_93 = arith.constant 0.000000e+00 : f32
    %222 = vector.shape_cast %221 : vector<1x384xi1> to vector<1x384xi1>
    %223 = vector.broadcast %222 : vector<1x384xi1> to vector<4x384xi1>
    %224 = vector.broadcast %cst_93 : f32 to vector<4x384xf32>
    %225 = arith.select %223, %219, %224 : vector<4x384xi1>, vector<4x384xf32>
    %c0_94 = arith.constant 0 : index
    %c264 = arith.constant 264 : index
    %226 = vector.load %arg11[%c0_94, %c264] : memref<4x768xf32, #tpu.memory_space<vmem>>, vector<4x384xf32>
    %227 = arith.andi %27, %31 : vector<1x384xi1>
    %cst_95 = arith.constant 0.000000e+00 : f32
    %228 = vector.shape_cast %227 : vector<1x384xi1> to vector<1x384xi1>
    %229 = vector.broadcast %228 : vector<1x384xi1> to vector<4x384xi1>
    %230 = vector.broadcast %cst_95 : f32 to vector<4x384xf32>
    %231 = arith.select %229, %226, %230 : vector<4x384xi1>, vector<4x384xf32>
    %232 = tpu.concatenate %225, %231 in 0 : vector<4x384xf32>, vector<4x384xf32> -> vector<8x384xf32>
    %c96 = arith.constant 96 : index
    %c0_96 = arith.constant 0 : index
    %233 = vector.load %arg12[%c96, %c0_96] : memref<112x384xf32, #tpu.memory_space<vmem>>, vector<8x384xf32>
    tpu.vector_store %arg12[%c96, %c0_96], %232 {strides = array<i32>} : memref<112x384xf32, #tpu.memory_space<vmem>>, vector<8x384xf32>,
    %c0_97 = arith.constant 0 : index
    %c265 = arith.constant 265 : index
    %234 = vector.load %arg11[%c0_97, %c265] : memref<4x768xf32, #tpu.memory_space<vmem>>, vector<4x384xf32>
    %235 = arith.andi %27, %31 : vector<1x384xi1>
    %236 = arith.andi %235, %35 : vector<1x384xi1>
    %cst_98 = arith.constant 0.000000e+00 : f32
    %237 = vector.shape_cast %236 : vector<1x384xi1> to vector<1x384xi1>
    %238 = vector.broadcast %237 : vector<1x384xi1> to vector<4x384xi1>
    %239 = vector.broadcast %cst_98 : f32 to vector<4x384xf32>
    %240 = arith.select %238, %234, %239 : vector<4x384xi1>, vector<4x384xf32>
    %241 = tpu.concatenate %240, %55 in 0 : vector<4x384xf32>, vector<4x384xf32> -> vector<8x384xf32>
    %c104 = arith.constant 104 : index
    %c0_99 = arith.constant 0 : index
    %242 = vector.load %arg12[%c104, %c0_99] : memref<112x384xf32, #tpu.memory_space<vmem>>, vector<8x384xf32>
    tpu.vector_store %arg12[%c104, %c0_99], %241 {strides = array<i32>} : memref<112x384xf32, #tpu.memory_space<vmem>>, vector<8x384xf32>,
    %c0_100 = arith.constant 0 : index
    %c0_101 = arith.constant 0 : index
    %243 = vector.load %arg6[%c0_100, %c0_101] : memref<2x112xf32, #tpu.memory_space<vmem>>, vector<2x112xf32>
    %c0_102 = arith.constant 0 : index
    %c0_103 = arith.constant 0 : index
    %244 = vector.load %arg12[%c0_102, %c0_103] : memref<112x384xf32, #tpu.memory_space<vmem>>, vector<112x384xf32>
    %cst_104 = arith.constant dense<0.000000e+00> : vector<2x384xf32>
    %245 = tpu.matmul %243, %244, %cst_104 {dimension_numbers = #tpu.dot_dimension_numbers<[1], [0], [0], [1], [0, 0, 1, 1], [], []>} : vector<2x112xf32>, vector<112x384xf32>, vector<2x384xf32> -> vector<2x384xf32>
    %c0_105 = arith.constant 0 : index
    %c0_106 = arith.constant 0 : index
    %246 = vector.load %arg7[%c0_105, %c0_106] : memref<2x1xf32, #tpu.memory_space<vmem>>, vector<2x1xf32>
    %247 = vector.broadcast %246 : vector<2x1xf32> to vector<2x384xf32>
    %248 = arith.addf %245, %247 : vector<2x384xf32>
    %cst_107 = arith.constant 0.000000e+00 : f32
    %249 = vector.broadcast %cst_107 : f32 to vector<2x128xf32>
    %c0_108 = arith.constant 0 : index
    %c0_109 = arith.constant 0 : index
    %250 = vector.load %arg13[%c0_108, %c0_109] : memref<2x640xf32, #tpu.memory_space<vmem>>, vector<2x128xf32>
    tpu.vector_store %arg13[%c0_108, %c0_109], %249 {strides = array<i32>} : memref<2x640xf32, #tpu.memory_space<vmem>>, vector<2x128xf32>,
    %cst_110 = arith.constant 0.000000e+00 : f32
    %251 = vector.broadcast %cst_110 : f32 to vector<2x128xf32>
    %c0_111 = arith.constant 0 : index
    %c512_112 = arith.constant 512 : index
    %252 = vector.load %arg13[%c0_111, %c512_112] : memref<2x640xf32, #tpu.memory_space<vmem>>, vector<2x128xf32>
    tpu.vector_store %arg13[%c0_111, %c512_112], %251 {strides = array<i32>} : memref<2x640xf32, #tpu.memory_space<vmem>>, vector<2x128xf32>,
    %c0_113 = arith.constant 0 : index
    %c128_114 = arith.constant 128 : index
    %253 = vector.load %arg13[%c0_113, %c128_114] : memref<2x640xf32, #tpu.memory_space<vmem>>, vector<2x384xf32>
    tpu.vector_store %arg13[%c0_113, %c128_114], %248 {strides = array<i32>} : memref<2x640xf32, #tpu.memory_space<vmem>>, vector<2x384xf32>,
    %cst_115 = arith.constant 0.000000e+00 : f32
    %254 = vector.broadcast %cst_115 : f32 to vector<2x256xf32>
    %c0_116 = arith.constant 0 : index
    %c119_117 = arith.constant 119 : index
    %255 = vector.load %arg13[%c0_116, %c119_117] : memref<2x640xf32, #tpu.memory_space<vmem>>, vector<2x256xf32>
    %256 = arith.andi %42, %48 : vector<1x256xi1>
    %257 = arith.andi %256, %52 : vector<1x256xi1>
    %cst_118 = arith.constant 0.000000e+00 : f32
    %258 = vector.shape_cast %257 : vector<1x256xi1> to vector<1x256xi1>
    %259 = vector.broadcast %258 : vector<1x256xi1> to vector<2x256xi1>
    %260 = vector.broadcast %cst_118 : f32 to vector<2x256xf32>
    %261 = arith.select %259, %255, %260 : vector<2x256xi1>, vector<2x256xf32>
    %c0_119 = arith.constant 0 : index
    %c120_120 = arith.constant 120 : index
    %262 = vector.load %arg13[%c0_119, %c120_120] : memref<2x640xf32, #tpu.memory_space<vmem>>, vector<2x256xf32>
    %263 = arith.andi %42, %48 : vector<1x256xi1>
    %cst_121 = arith.constant 0.000000e+00 : f32
    %264 = vector.shape_cast %263 : vector<1x256xi1> to vector<1x256xi1>
    %265 = vector.broadcast %264 : vector<1x256xi1> to vector<2x256xi1>
    %266 = vector.broadcast %cst_121 : f32 to vector<2x256xf32>
    %267 = arith.select %265, %262, %266 : vector<2x256xi1>, vector<2x256xf32>
    %c0_122 = arith.constant 0 : index
    %c121_123 = arith.constant 121 : index
    %268 = vector.load %arg13[%c0_122, %c121_123] : memref<2x640xf32, #tpu.memory_space<vmem>>, vector<2x256xf32>
    %269 = arith.andi %42, %48 : vector<1x256xi1>
    %270 = arith.andi %269, %54 : vector<1x256xi1>
    %cst_124 = arith.constant 0.000000e+00 : f32
    %271 = vector.shape_cast %270 : vector<1x256xi1> to vector<1x256xi1>
    %272 = vector.broadcast %271 : vector<1x256xi1> to vector<2x256xi1>
    %273 = vector.broadcast %cst_124 : f32 to vector<2x256xf32>
    %274 = arith.select %272, %268, %273 : vector<2x256xi1>, vector<2x256xf32>
    %c0_125 = arith.constant 0 : index
    %c127_126 = arith.constant 127 : index
    %275 = vector.load %arg13[%c0_125, %c127_126] : memref<2x640xf32, #tpu.memory_space<vmem>>, vector<2x256xf32>
    %276 = arith.andi %42, %52 : vector<1x256xi1>
    %cst_127 = arith.constant 0.000000e+00 : f32
    %277 = vector.shape_cast %276 : vector<1x256xi1> to vector<1x256xi1>
    %278 = vector.broadcast %277 : vector<1x256xi1> to vector<2x256xi1>
    %279 = vector.broadcast %cst_127 : f32 to vector<2x256xf32>
    %280 = arith.select %278, %275, %279 : vector<2x256xi1>, vector<2x256xf32>
    %281 = tpu.concatenate %261, %267, %274, %280 in 0 : vector<2x256xf32>, vector<2x256xf32>, vector<2x256xf32>, vector<2x256xf32> -> vector<8x256xf32>
    %c0_128 = arith.constant 0 : index
    %c0_129 = arith.constant 0 : index
    %282 = vector.load %arg14[%c0_128, %c0_129] : memref<56x256xf32, #tpu.memory_space<vmem>>, vector<8x256xf32>
    tpu.vector_store %arg14[%c0_128, %c0_129], %281 {strides = array<i32>} : memref<56x256xf32, #tpu.memory_space<vmem>>, vector<8x256xf32>,
    %c0_130 = arith.constant 0 : index
    %c128_131 = arith.constant 128 : index
    %283 = vector.load %arg13[%c0_130, %c128_131] : memref<2x640xf32, #tpu.memory_space<vmem>>, vector<2x256xf32>
    %cst_132 = arith.constant 0.000000e+00 : f32
    %284 = vector.shape_cast %42 : vector<1x256xi1> to vector<1x256xi1>
    %285 = vector.broadcast %284 : vector<1x256xi1> to vector<2x256xi1>
    %286 = vector.broadcast %cst_132 : f32 to vector<2x256xf32>
    %287 = arith.select %285, %283, %286 : vector<2x256xi1>, vector<2x256xf32>
    %c0_133 = arith.constant 0 : index
    %c129_134 = arith.constant 129 : index
    %288 = vector.load %arg13[%c0_133, %c129_134] : memref<2x640xf32, #tpu.memory_space<vmem>>, vector<2x256xf32>
    %289 = arith.andi %42, %54 : vector<1x256xi1>
    %cst_135 = arith.constant 0.000000e+00 : f32
    %290 = vector.shape_cast %289 : vector<1x256xi1> to vector<1x256xi1>
    %291 = vector.broadcast %290 : vector<1x256xi1> to vector<2x256xi1>
    %292 = vector.broadcast %cst_135 : f32 to vector<2x256xf32>
    %293 = arith.select %291, %288, %292 : vector<2x256xi1>, vector<2x256xf32>
    %c0_136 = arith.constant 0 : index
    %c135_137 = arith.constant 135 : index
    %294 = vector.load %arg13[%c0_136, %c135_137] : memref<2x640xf32, #tpu.memory_space<vmem>>, vector<2x256xf32>
    %295 = arith.andi %42, %50 : vector<1x256xi1>
    %296 = arith.andi %295, %52 : vector<1x256xi1>
    %cst_138 = arith.constant 0.000000e+00 : f32
    %297 = vector.shape_cast %296 : vector<1x256xi1> to vector<1x256xi1>
    %298 = vector.broadcast %297 : vector<1x256xi1> to vector<2x256xi1>
    %299 = vector.broadcast %cst_138 : f32 to vector<2x256xf32>
    %300 = arith.select %298, %294, %299 : vector<2x256xi1>, vector<2x256xf32>
    %c0_139 = arith.constant 0 : index
    %c136_140 = arith.constant 136 : index
    %301 = vector.load %arg13[%c0_139, %c136_140] : memref<2x640xf32, #tpu.memory_space<vmem>>, vector<2x256xf32>
    %302 = arith.andi %42, %50 : vector<1x256xi1>
    %cst_141 = arith.constant 0.000000e+00 : f32
    %303 = vector.shape_cast %302 : vector<1x256xi1> to vector<1x256xi1>
    %304 = vector.broadcast %303 : vector<1x256xi1> to vector<2x256xi1>
    %305 = vector.broadcast %cst_141 : f32 to vector<2x256xf32>
    %306 = arith.select %304, %301, %305 : vector<2x256xi1>, vector<2x256xf32>
    %307 = tpu.concatenate %287, %293, %300, %306 in 0 : vector<2x256xf32>, vector<2x256xf32>, vector<2x256xf32>, vector<2x256xf32> -> vector<8x256xf32>
    %c8_142 = arith.constant 8 : index
    %c0_143 = arith.constant 0 : index
    %308 = vector.load %arg14[%c8_142, %c0_143] : memref<56x256xf32, #tpu.memory_space<vmem>>, vector<8x256xf32>
    tpu.vector_store %arg14[%c8_142, %c0_143], %307 {strides = array<i32>} : memref<56x256xf32, #tpu.memory_space<vmem>>, vector<8x256xf32>,
    %c0_144 = arith.constant 0 : index
    %c137_145 = arith.constant 137 : index
    %309 = vector.load %arg13[%c0_144, %c137_145] : memref<2x640xf32, #tpu.memory_space<vmem>>, vector<2x256xf32>
    %310 = arith.andi %42, %50 : vector<1x256xi1>
    %311 = arith.andi %310, %54 : vector<1x256xi1>
    %cst_146 = arith.constant 0.000000e+00 : f32
    %312 = vector.shape_cast %311 : vector<1x256xi1> to vector<1x256xi1>
    %313 = vector.broadcast %312 : vector<1x256xi1> to vector<2x256xi1>
    %314 = vector.broadcast %cst_146 : f32 to vector<2x256xf32>
    %315 = arith.select %313, %309, %314 : vector<2x256xi1>, vector<2x256xf32>
    %c0_147 = arith.constant 0 : index
    %c183_148 = arith.constant 183 : index
    %316 = vector.load %arg13[%c0_147, %c183_148] : memref<2x640xf32, #tpu.memory_space<vmem>>, vector<2x256xf32>
    %317 = arith.andi %48, %52 : vector<1x256xi1>
    %cst_149 = arith.constant 0.000000e+00 : f32
    %318 = vector.shape_cast %317 : vector<1x256xi1> to vector<1x256xi1>
    %319 = vector.broadcast %318 : vector<1x256xi1> to vector<2x256xi1>
    %320 = vector.broadcast %cst_149 : f32 to vector<2x256xf32>
    %321 = arith.select %319, %316, %320 : vector<2x256xi1>, vector<2x256xf32>
    %c0_150 = arith.constant 0 : index
    %c184_151 = arith.constant 184 : index
    %322 = vector.load %arg13[%c0_150, %c184_151] : memref<2x640xf32, #tpu.memory_space<vmem>>, vector<2x256xf32>
    %cst_152 = arith.constant 0.000000e+00 : f32
    %323 = vector.shape_cast %48 : vector<1x256xi1> to vector<1x256xi1>
    %324 = vector.broadcast %323 : vector<1x256xi1> to vector<2x256xi1>
    %325 = vector.broadcast %cst_152 : f32 to vector<2x256xf32>
    %326 = arith.select %324, %322, %325 : vector<2x256xi1>, vector<2x256xf32>
    %c0_153 = arith.constant 0 : index
    %c185_154 = arith.constant 185 : index
    %327 = vector.load %arg13[%c0_153, %c185_154] : memref<2x640xf32, #tpu.memory_space<vmem>>, vector<2x256xf32>
    %328 = arith.andi %48, %54 : vector<1x256xi1>
    %cst_155 = arith.constant 0.000000e+00 : f32
    %329 = vector.shape_cast %328 : vector<1x256xi1> to vector<1x256xi1>
    %330 = vector.broadcast %329 : vector<1x256xi1> to vector<2x256xi1>
    %331 = vector.broadcast %cst_155 : f32 to vector<2x256xf32>
    %332 = arith.select %330, %327, %331 : vector<2x256xi1>, vector<2x256xf32>
    %333 = tpu.concatenate %315, %321, %326, %332 in 0 : vector<2x256xf32>, vector<2x256xf32>, vector<2x256xf32>, vector<2x256xf32> -> vector<8x256xf32>
    %c16_156 = arith.constant 16 : index
    %c0_157 = arith.constant 0 : index
    %334 = vector.load %arg14[%c16_156, %c0_157] : memref<56x256xf32, #tpu.memory_space<vmem>>, vector<8x256xf32>
    tpu.vector_store %arg14[%c16_156, %c0_157], %333 {strides = array<i32>} : memref<56x256xf32, #tpu.memory_space<vmem>>, vector<8x256xf32>,
    %c0_158 = arith.constant 0 : index
    %c191_159 = arith.constant 191 : index
    %335 = vector.load %arg13[%c0_158, %c191_159] : memref<2x640xf32, #tpu.memory_space<vmem>>, vector<2x256xf32>
    %cst_160 = arith.constant 0.000000e+00 : f32
    %336 = vector.shape_cast %52 : vector<1x256xi1> to vector<1x256xi1>
    %337 = vector.broadcast %336 : vector<1x256xi1> to vector<2x256xi1>
    %338 = vector.broadcast %cst_160 : f32 to vector<2x256xf32>
    %339 = arith.select %337, %335, %338 : vector<2x256xi1>, vector<2x256xf32>
    %c0_161 = arith.constant 0 : index
    %c192_162 = arith.constant 192 : index
    %340 = vector.load %arg13[%c0_161, %c192_162] : memref<2x640xf32, #tpu.memory_space<vmem>>, vector<2x256xf32>
    %c0_163 = arith.constant 0 : index
    %c193_164 = arith.constant 193 : index
    %341 = vector.load %arg13[%c0_163, %c193_164] : memref<2x640xf32, #tpu.memory_space<vmem>>, vector<2x256xf32>
    %cst_165 = arith.constant 0.000000e+00 : f32
    %342 = vector.shape_cast %54 : vector<1x256xi1> to vector<1x256xi1>
    %343 = vector.broadcast %342 : vector<1x256xi1> to vector<2x256xi1>
    %344 = vector.broadcast %cst_165 : f32 to vector<2x256xf32>
    %345 = arith.select %343, %341, %344 : vector<2x256xi1>, vector<2x256xf32>
    %c0_166 = arith.constant 0 : index
    %c199_167 = arith.constant 199 : index
    %346 = vector.load %arg13[%c0_166, %c199_167] : memref<2x640xf32, #tpu.memory_space<vmem>>, vector<2x256xf32>
    %347 = arith.andi %50, %52 : vector<1x256xi1>
    %cst_168 = arith.constant 0.000000e+00 : f32
    %348 = vector.shape_cast %347 : vector<1x256xi1> to vector<1x256xi1>
    %349 = vector.broadcast %348 : vector<1x256xi1> to vector<2x256xi1>
    %350 = vector.broadcast %cst_168 : f32 to vector<2x256xf32>
    %351 = arith.select %349, %346, %350 : vector<2x256xi1>, vector<2x256xf32>
    %352 = tpu.concatenate %339, %340, %345, %351 in 0 : vector<2x256xf32>, vector<2x256xf32>, vector<2x256xf32>, vector<2x256xf32> -> vector<8x256xf32>
    %c24_169 = arith.constant 24 : index
    %c0_170 = arith.constant 0 : index
    %353 = vector.load %arg14[%c24_169, %c0_170] : memref<56x256xf32, #tpu.memory_space<vmem>>, vector<8x256xf32>
    tpu.vector_store %arg14[%c24_169, %c0_170], %352 {strides = array<i32>} : memref<56x256xf32, #tpu.memory_space<vmem>>, vector<8x256xf32>,
    %c0_171 = arith.constant 0 : index
    %c200_172 = arith.constant 200 : index
    %354 = vector.load %arg13[%c0_171, %c200_172] : memref<2x640xf32, #tpu.memory_space<vmem>>, vector<2x256xf32>
    %cst_173 = arith.constant 0.000000e+00 : f32
    %355 = vector.shape_cast %50 : vector<1x256xi1> to vector<1x256xi1>
    %356 = vector.broadcast %355 : vector<1x256xi1> to vector<2x256xi1>
    %357 = vector.broadcast %cst_173 : f32 to vector<2x256xf32>
    %358 = arith.select %356, %354, %357 : vector<2x256xi1>, vector<2x256xf32>
    %c0_174 = arith.constant 0 : index
    %c201_175 = arith.constant 201 : index
    %359 = vector.load %arg13[%c0_174, %c201_175] : memref<2x640xf32, #tpu.memory_space<vmem>>, vector<2x256xf32>
    %360 = arith.andi %50, %54 : vector<1x256xi1>
    %cst_176 = arith.constant 0.000000e+00 : f32
    %361 = vector.shape_cast %360 : vector<1x256xi1> to vector<1x256xi1>
    %362 = vector.broadcast %361 : vector<1x256xi1> to vector<2x256xi1>
    %363 = vector.broadcast %cst_176 : f32 to vector<2x256xf32>
    %364 = arith.select %362, %359, %363 : vector<2x256xi1>, vector<2x256xf32>
    %c0_177 = arith.constant 0 : index
    %c247_178 = arith.constant 247 : index
    %365 = vector.load %arg13[%c0_177, %c247_178] : memref<2x640xf32, #tpu.memory_space<vmem>>, vector<2x256xf32>
    %366 = arith.andi %46, %48 : vector<1x256xi1>
    %367 = arith.andi %366, %52 : vector<1x256xi1>
    %cst_179 = arith.constant 0.000000e+00 : f32
    %368 = vector.shape_cast %367 : vector<1x256xi1> to vector<1x256xi1>
    %369 = vector.broadcast %368 : vector<1x256xi1> to vector<2x256xi1>
    %370 = vector.broadcast %cst_179 : f32 to vector<2x256xf32>
    %371 = arith.select %369, %365, %370 : vector<2x256xi1>, vector<2x256xf32>
    %c0_180 = arith.constant 0 : index
    %c248_181 = arith.constant 248 : index
    %372 = vector.load %arg13[%c0_180, %c248_181] : memref<2x640xf32, #tpu.memory_space<vmem>>, vector<2x256xf32>
    %373 = arith.andi %46, %48 : vector<1x256xi1>
    %cst_182 = arith.constant 0.000000e+00 : f32
    %374 = vector.shape_cast %373 : vector<1x256xi1> to vector<1x256xi1>
    %375 = vector.broadcast %374 : vector<1x256xi1> to vector<2x256xi1>
    %376 = vector.broadcast %cst_182 : f32 to vector<2x256xf32>
    %377 = arith.select %375, %372, %376 : vector<2x256xi1>, vector<2x256xf32>
    %378 = tpu.concatenate %358, %364, %371, %377 in 0 : vector<2x256xf32>, vector<2x256xf32>, vector<2x256xf32>, vector<2x256xf32> -> vector<8x256xf32>
    %c32_183 = arith.constant 32 : index
    %c0_184 = arith.constant 0 : index
    %379 = vector.load %arg14[%c32_183, %c0_184] : memref<56x256xf32, #tpu.memory_space<vmem>>, vector<8x256xf32>
    tpu.vector_store %arg14[%c32_183, %c0_184], %378 {strides = array<i32>} : memref<56x256xf32, #tpu.memory_space<vmem>>, vector<8x256xf32>,
    %c0_185 = arith.constant 0 : index
    %c249_186 = arith.constant 249 : index
    %380 = vector.load %arg13[%c0_185, %c249_186] : memref<2x640xf32, #tpu.memory_space<vmem>>, vector<2x256xf32>
    %381 = arith.andi %46, %48 : vector<1x256xi1>
    %382 = arith.andi %381, %54 : vector<1x256xi1>
    %cst_187 = arith.constant 0.000000e+00 : f32
    %383 = vector.shape_cast %382 : vector<1x256xi1> to vector<1x256xi1>
    %384 = vector.broadcast %383 : vector<1x256xi1> to vector<2x256xi1>
    %385 = vector.broadcast %cst_187 : f32 to vector<2x256xf32>
    %386 = arith.select %384, %380, %385 : vector<2x256xi1>, vector<2x256xf32>
    %c0_188 = arith.constant 0 : index
    %c255_189 = arith.constant 255 : index
    %387 = vector.load %arg13[%c0_188, %c255_189] : memref<2x640xf32, #tpu.memory_space<vmem>>, vector<2x256xf32>
    %388 = arith.andi %46, %52 : vector<1x256xi1>
    %cst_190 = arith.constant 0.000000e+00 : f32
    %389 = vector.shape_cast %388 : vector<1x256xi1> to vector<1x256xi1>
    %390 = vector.broadcast %389 : vector<1x256xi1> to vector<2x256xi1>
    %391 = vector.broadcast %cst_190 : f32 to vector<2x256xf32>
    %392 = arith.select %390, %387, %391 : vector<2x256xi1>, vector<2x256xf32>
    %c0_191 = arith.constant 0 : index
    %c256_192 = arith.constant 256 : index
    %393 = vector.load %arg13[%c0_191, %c256_192] : memref<2x640xf32, #tpu.memory_space<vmem>>, vector<2x256xf32>
    %cst_193 = arith.constant 0.000000e+00 : f32
    %394 = vector.shape_cast %46 : vector<1x256xi1> to vector<1x256xi1>
    %395 = vector.broadcast %394 : vector<1x256xi1> to vector<2x256xi1>
    %396 = vector.broadcast %cst_193 : f32 to vector<2x256xf32>
    %397 = arith.select %395, %393, %396 : vector<2x256xi1>, vector<2x256xf32>
    %c0_194 = arith.constant 0 : index
    %c257_195 = arith.constant 257 : index
    %398 = vector.load %arg13[%c0_194, %c257_195] : memref<2x640xf32, #tpu.memory_space<vmem>>, vector<2x256xf32>
    %399 = arith.andi %46, %54 : vector<1x256xi1>
    %cst_196 = arith.constant 0.000000e+00 : f32
    %400 = vector.shape_cast %399 : vector<1x256xi1> to vector<1x256xi1>
    %401 = vector.broadcast %400 : vector<1x256xi1> to vector<2x256xi1>
    %402 = vector.broadcast %cst_196 : f32 to vector<2x256xf32>
    %403 = arith.select %401, %398, %402 : vector<2x256xi1>, vector<2x256xf32>
    %404 = tpu.concatenate %386, %392, %397, %403 in 0 : vector<2x256xf32>, vector<2x256xf32>, vector<2x256xf32>, vector<2x256xf32> -> vector<8x256xf32>
    %c40_197 = arith.constant 40 : index
    %c0_198 = arith.constant 0 : index
    %405 = vector.load %arg14[%c40_197, %c0_198] : memref<56x256xf32, #tpu.memory_space<vmem>>, vector<8x256xf32>
    tpu.vector_store %arg14[%c40_197, %c0_198], %404 {strides = array<i32>} : memref<56x256xf32, #tpu.memory_space<vmem>>, vector<8x256xf32>,
    %c0_199 = arith.constant 0 : index
    %c263_200 = arith.constant 263 : index
    %406 = vector.load %arg13[%c0_199, %c263_200] : memref<2x640xf32, #tpu.memory_space<vmem>>, vector<2x256xf32>
    %407 = arith.andi %46, %50 : vector<1x256xi1>
    %408 = arith.andi %407, %52 : vector<1x256xi1>
    %cst_201 = arith.constant 0.000000e+00 : f32
    %409 = vector.shape_cast %408 : vector<1x256xi1> to vector<1x256xi1>
    %410 = vector.broadcast %409 : vector<1x256xi1> to vector<2x256xi1>
    %411 = vector.broadcast %cst_201 : f32 to vector<2x256xf32>
    %412 = arith.select %410, %406, %411 : vector<2x256xi1>, vector<2x256xf32>
    %c0_202 = arith.constant 0 : index
    %c264_203 = arith.constant 264 : index
    %413 = vector.load %arg13[%c0_202, %c264_203] : memref<2x640xf32, #tpu.memory_space<vmem>>, vector<2x256xf32>
    %414 = arith.andi %46, %50 : vector<1x256xi1>
    %cst_204 = arith.constant 0.000000e+00 : f32
    %415 = vector.shape_cast %414 : vector<1x256xi1> to vector<1x256xi1>
    %416 = vector.broadcast %415 : vector<1x256xi1> to vector<2x256xi1>
    %417 = vector.broadcast %cst_204 : f32 to vector<2x256xf32>
    %418 = arith.select %416, %413, %417 : vector<2x256xi1>, vector<2x256xf32>
    %c0_205 = arith.constant 0 : index
    %c265_206 = arith.constant 265 : index
    %419 = vector.load %arg13[%c0_205, %c265_206] : memref<2x640xf32, #tpu.memory_space<vmem>>, vector<2x256xf32>
    %420 = arith.andi %46, %50 : vector<1x256xi1>
    %421 = arith.andi %420, %54 : vector<1x256xi1>
    %cst_207 = arith.constant 0.000000e+00 : f32
    %422 = vector.shape_cast %421 : vector<1x256xi1> to vector<1x256xi1>
    %423 = vector.broadcast %422 : vector<1x256xi1> to vector<2x256xi1>
    %424 = vector.broadcast %cst_207 : f32 to vector<2x256xf32>
    %425 = arith.select %423, %419, %424 : vector<2x256xi1>, vector<2x256xf32>
    %426 = tpu.concatenate %412, %418, %425, %254 in 0 : vector<2x256xf32>, vector<2x256xf32>, vector<2x256xf32>, vector<2x256xf32> -> vector<8x256xf32>
    %c48_208 = arith.constant 48 : index
    %c0_209 = arith.constant 0 : index
    %427 = vector.load %arg14[%c48_208, %c0_209] : memref<56x256xf32, #tpu.memory_space<vmem>>, vector<8x256xf32>
    tpu.vector_store %arg14[%c48_208, %c0_209], %426 {strides = array<i32>} : memref<56x256xf32, #tpu.memory_space<vmem>>, vector<8x256xf32>,
    %c0_210 = arith.constant 0 : index
    %c0_211 = arith.constant 0 : index
    %428 = vector.load %arg8[%c0_210, %c0_211] : memref<4x56xf32, #tpu.memory_space<vmem>>, vector<4x56xf32>
    %c0_212 = arith.constant 0 : index
    %c0_213 = arith.constant 0 : index
    %429 = vector.load %arg14[%c0_212, %c0_213] : memref<56x256xf32, #tpu.memory_space<vmem>>, vector<56x256xf32>
    %cst_214 = arith.constant dense<0.000000e+00> : vector<4x256xf32>
    %430 = tpu.matmul %428, %429, %cst_214 {dimension_numbers = #tpu.dot_dimension_numbers<[1], [0], [0], [1], [0, 0, 1, 1], [], []>} : vector<4x56xf32>, vector<56x256xf32>, vector<4x256xf32> -> vector<4x256xf32>
    %c0_215 = arith.constant 0 : index
    %c0_216 = arith.constant 0 : index
    %431 = vector.load %arg9[%c0_215, %c0_216] : memref<4x1xf32, #tpu.memory_space<vmem>>, vector<4x1xf32>
    %432 = vector.broadcast %431 : vector<4x1xf32> to vector<4x256xf32>
    %433 = arith.addf %430, %432 : vector<4x256xf32>
    %c0_217 = arith.constant 0 : index
    %c0_218 = arith.constant 0 : index
    %c0_219 = arith.constant 0 : index
    %434 = vector.load %arg10[%c0_217, %c0_218, %c0_219] : memref<1x4x256xf32, #tpu.memory_space<vmem>>, vector<1x4x256xf32>
    %435 = vector.shape_cast %434 : vector<1x4x256xf32> to vector<4x256xf32>
    %436 = vector.shape_cast %433 : vector<4x256xf32> to vector<1x4x256xf32>
    tpu.vector_store %arg10[%c0_217, %c0_218, %c0_219], %436 {strides = array<i32>} : memref<1x4x256xf32, #tpu.memory_space<vmem>>, vector<1x4x256xf32>,
    return
  }
  func.func @transform_0(%arg0: i32, %arg1: i32) -> (i32, i32) {
    %c0_i32 = arith.constant 0 : i32
    %c0_i32_0 = arith.constant 0 : i32
    %c0_i32_1 = arith.constant 0 : i32
    return %c0_i32, %c0_i32_0 : i32, i32
  }
  func.func @transform_1(%arg0: i32, %arg1: i32) -> (i32, i32, i32) {
    %c0_i32 = arith.constant 0 : i32
    %c0_i32_0 = arith.constant 0 : i32
    return %arg0, %c0_i32, %arg1 : i32, i32, i32
  }
  func.func @transform_2(%arg0: i32, %arg1: i32) -> (i32, i32, i32) {
    %c2_i32 = arith.constant 2 : i32
    %0 = arith.muli %arg1, %c2_i32 : i32
    %c1_i32 = arith.constant 1 : i32
    %1 = arith.subi %0, %c1_i32 : i32
    %c0_i32 = arith.constant 0 : i32
    %2 = arith.maxsi %1, %c0_i32 : i32
    %c0_i32_0 = arith.constant 0 : i32
    %c0_i32_1 = arith.constant 0 : i32
    return %arg0, %c0_i32_0, %2 : i32, i32, i32
  }
  func.func @transform_3(%arg0: i32, %arg1: i32) -> (i32, i32, i32) {
    %c1_i32 = arith.constant 1 : i32
    %0 = arith.addi %arg1, %c1_i32 : i32
    %c2_i32 = arith.constant 2 : i32
    %1 = arith.muli %0, %c2_i32 : i32
    %c3_i32 = arith.constant 3 : i32
    %2 = arith.minsi %1, %c3_i32 : i32
    %c0_i32 = arith.constant 0 : i32
    %c0_i32_0 = arith.constant 0 : i32
    return %arg0, %c0_i32, %2 : i32, i32, i32
  }
  func.func @transform_4(%arg0: i32, %arg1: i32) -> (i32, i32) {
    %c0_i32 = arith.constant 0 : i32
    %c0_i32_0 = arith.constant 0 : i32
    %c0_i32_1 = arith.constant 0 : i32
    return %c0_i32, %c0_i32_0 : i32, i32
  }
  func.func @transform_5(%arg0: i32, %arg1: i32) -> (i32, i32) {
    %c0_i32 = arith.constant 0 : i32
    %c0_i32_0 = arith.constant 0 : i32
    %c0_i32_1 = arith.constant 0 : i32
    return %c0_i32, %c0_i32_0 : i32, i32
  }
  func.func @transform_6(%arg0: i32, %arg1: i32) -> (i32, i32) {
    %c0_i32 = arith.constant 0 : i32
    %c0_i32_0 = arith.constant 0 : i32
    %c0_i32_1 = arith.constant 0 : i32
    return %c0_i32, %c0_i32_0 : i32, i32
  }
  func.func @transform_7(%arg0: i32, %arg1: i32) -> (i32, i32) {
    %c0_i32 = arith.constant 0 : i32
    %c0_i32_0 = arith.constant 0 : i32
    %c0_i32_1 = arith.constant 0 : i32
    return %c0_i32, %c0_i32_0 : i32, i32
  }
  func.func @transform_8(%arg0: i32, %arg1: i32) -> (i32, i32, i32) {
    %c0_i32 = arith.constant 0 : i32
    %c0_i32_0 = arith.constant 0 : i32
    return %arg0, %c0_i32, %arg1 : i32, i32, i32
  }
}

</mosaic_0001>

<bundles_post_ra>
// kernel: def_forward.1
= control target key start
LH: loop header
LB: loop body
LE: loop exit
PB: predicated region body
PF: predicated region fallthrough
CT: control target
= control target key end

     0   :  { %s3259_s27 = smov 0   ;;  %s3261_s28 = smov 0   ;;  %s5470_s0 = inlined_call_operand.vmem [shape: s32[1,64], index: 0, kind: input, shape index: {}]   ;;  %s5471_s1 = inlined_call_operand.vmem [shape: f32[2,4,512], index: 1, kind: input, shape index: {}, may-alias: {1,2,3}]   ;;  %s5472_s2 = inlined_call_operand.vmem [shape: f32[2,4,512], index: 2, kind: input, shape index: {}, may-alias: {1,2,3}]   ;;  %s5473_s3 = inlined_call_operand.vmem [shape: f32[2,4,512], index: 3, kind: input, shape index: {}, may-alias: {1,2,3}]   ;;  %s5474_s4 = inlined_call_operand.vmem [shape: f32[2,112], index: 4, kind: input, shape index: {}]   ;;  %s5475_s5 = inlined_call_operand.vmem [shape: f32[2,1], index: 5, kind: input, shape index: {}]   ;;  %s5476_s6 = inlined_call_operand.vmem [shape: f32[4,56], index: 6, kind: input, shape index: {}]   ;;  %s5477_s7 = inlined_call_operand.vmem [shape: f32[4,1], index: 7, kind: input, shape index: {}]   ;;  %s5478_s8 = inlined_call_operand.vmem [shape: f32[2,4,512], index: 8, kind: output, shape index: {}]  }
   0x1   :  { %5552 = sst [smem:[#allocation7_spill]] %s5470_s0  ;;  %s3263_s29 = smov 0  }
   0x2   :  { %s3265_s30 = smov 0   ;;  %s3267_s9 = smov 0  }
   0x3 LB: > { %s27_s10 = sadd.s32 1, %s3183_s29  ;;  %s30_s11 = sadd.s32 1, %s3187_s30  ;;  %s3191_s9 = sphi %s3267_s9, %s18_s9   ;;  %s3187_s30 = sphi %s3265_s30, %s5982_s30   ;;  %s3183_s29 = sphi %s3263_s29, %s5981_s29   ;;  %s3179_s28 = sphi %s3261_s28, %s5980_s28   ;;  %s3175_s27 = sphi %s3259_s27, %s5979_s27  }
   0x4   : > { %p28_p0 = scmp.ge.s32.totalorder %s27_s10, 2  ;;  %p2980_p1 = scmp.ge.s32.totalorder %s3191_s9, 1 }
   0x5   : > { %p345_p2 = scmp.lt.s32.totalorder %s3191_s9, 5 }
   0x6   : > { %s5984_s10 = smov (%p28_p0, %s27_s10), 0  ;;  %s5986_s11 = smov (!%p28_p0, %s30_s11), %s3187_s30 }
   0x7   : > { %p346_p3 = pnand %p2980_p1, %p345_p2  ;;  %p32_p4 = scmp.ge.s32.totalorder %s5986_s11, 2 }
   0x9   : > { %s5988_s11 = smov (%p32_p4, %s5986_s11), 0  ;;  %349 = sbr.rel (%p346_p3) target bundleno = 1028 (0x404), region = 52 }
   0xe   : > { %v473_v0 = vlaneseq  ;;  %s3294_s12 = sshll.u32 %s3175_s27, 1  ;;  %p412_p5 = scmp.lt.s32.totalorder %s3179_s28, 1  ;;  %v3193_v3 = vmov 0.0   ;;  %v5550_v6 = vmov 0   ;;  %v5558_v23 = vmov 0 }
   0xf   : > { %p414_p6 = scmp.lt.s32.totalorder %s3294_s12, 3  ;;  %s3303_s13 = sadd.s32 4294967295, %s3294_s12  ;;  %465 = vst [vmem:[#allocation2 + $0x14] sm:$0xf] %v3193_v3  ;;  %464 = vst [vmem:[#allocation2] sm:$0xf] %v3193_v3  ;;  %3042 = vmatprep.subr.mxu1 %v3193_v3  ;;  %1761 = vmatprep.mubr.f32.mxu0 %v3193_v3 }
  0x10   : > { %v3298_v1 = vand.u32 127, %v473_v0  ;;  %v3300_v2 = vshrl.u32 %v473_v0, 7  ;;  %1838 = vst [vmem:[#allocation4] sm:$0x3] %v3193_v3  ;;  %1839 = vst [vmem:[#allocation4 + $0x8] sm:$0x3] %v3193_v3  ;;  %3134 = vset.pattern.permute.xlu0 %v5550_v6  ;;  %3135 = vset.pattern.permute.xlu1 %v5550_v6 }
  0x11   : > { %s5553_s0 = sld [smem:[#allocation7_spill]]  ;;  %s5990_s28 = smov (!%p412_p5, %s3179_s28), 1  ;;  %v5560_v25 = vmov 0  ;;  %vm5491_vm4 = vcmask 523264   ;;  %vm5494_vm15 = vcmask 973824  }
  0x12   : > { %v3318_v5 = vsub.s32 0, %v3300_v2  ;;  %s5479_s16 = smov 64   ;;  %s2982_s18 = sshll.u32 %s5990_s28, 2  ;;  %v3367_v12 = vadd.s32 128, %v3298_v1  ;;  %v3371_v13 = vadd.s32 256, %v3298_v1 }
  0x13   : > { %477 = vrot.lane.b32.xlu0 %v3298_v1, %s5479_s16  ;;  %s415_s17 = scalar_select %p414_p6, %s3294_s12, 3 }
  0x14   : > { %p423_p7 = scmp.gt.s32.totalorder %s3303_s13, 0  ;;  %p2986_p8 = scmp.lt.s32.totalorder %s3303_s13, 3 }
  0x15   : > { %s417_s19 = sadd.s32 %s2982_s18, %s415_s17  ;;  %s3021_s24 = sadd.s32 2, %s3294_s12 }
  0x16   : > { %s3331_s20 = sshll.u32 %s417_s19, 2  ;;  %s5992_s13 = smov (!%p423_p7, %s3303_s13), 0 }
  0x17   : > { %v3314_v4 = vld [vmem:[%s5553_s0] sm:$0x1]  ;;  %s419_s23 = scalar_lea.vmem %s5471_s1, %s3331_s20  ;;  %s5541_s25 = smov 119  }
  0x18   : > { %v484_v7 = vrot.slane %v3314_v4, %v3318_v5  ;;  %v3340_v8 = vld [vmem:[%s419_s23] sm:$0xff]  ;;  %p439_p9 = scmp.lt.s32.totalorder %s3021_s24, 3  ;;  %s5994_s13 = smov (!%p2986_p8, %s5992_s13), 3 }
  0x19   : > { %469 = vst [vmem:[#allocation2 + $0x8] sm:$0xff] %v3340_v8  ;;  %1621 = vrot.lane.b32.xlu1 %v3340_v8, %s5541_s25  ;;  %v3347_v9 = vcombine.high %v3340_v8, %v3340_v8  ;;  %s5533_s26 = smov 120   ;;  %s430_s28 = sadd.s32 %s5994_s13, %s2982_s18 }
  0x1a   : > { %485 = vrot.lane.b32.xlu0 %v484_v7, %s5479_s16  ;;  %s5996_s24 = smov (!%p439_p9, %s3021_s24), 3  ;;  %s2992_s12 = sshll.u32 %s430_s28, 2 }
  0x1b   : > { %s5998_s24 = smov (!%p439_p9, %s5996_s24), 3  ;;  %s432_s19 = scalar_lea.vmem %s5472_s2, %s2992_s12 }
  0x1c   : > { %s446_s14 = sadd.s32 %s2982_s18, %s5998_s24  ;;  %v466_v10 = vld [vmem:[%s432_s19] sm:$0xf]  ;;  %s3198_s13 = smov 127  }
  0x1d   : > { %1564 = vrot.lane.b32.xlu1 %v3347_v9, %s5533_s26  ;;  %s2998_s21 = sshll.u32 %s446_s14, 2  ;;  %467 = vst [vmem:[#allocation2 + $0x4] sm:$0xf] %v466_v10  ;;  %s3364_s18 = sshll.u32 %s3175_s27, 2 }
  0x1e   : > { %1562 = vrot.lane.b32.xlu0 %v3340_v8, %s5533_s26  ;;  %s448_s16 = scalar_lea.vmem %s5473_s3, %s2998_s21  ;;  %s488_s24 = ssub.s32 2, %s3364_s18 }
  0x1f   : > { %v470_v11 = vld [vmem:[%s448_s16] sm:$0xf]  ;;  %s3003_s28 = sshll.u32 %s488_s24, 6  ;;  %s5535_s12 = smov 121  }
  0x20   : > { %471 = vst [vmem:[#allocation2 + $0x10] sm:$0xf] %v470_v11  ;;  %v3375_v14 = vstv %s3003_s28  ;;  %s5489_s27 = smov 1   ;;  %s509_s16 = ssub.s32 7, %s3364_s18 }
  0x21   : > { %1623 = vrot.lane.b32.xlu1 %v3347_v9, %s5541_s25  ;;  %vm3379_vm0 = vcmp.ge.s32.totalorder %v3367_v12, %v3375_v14  ;;  %vm3386_vm1 = vcmp.ge.s32.totalorder %v3371_v13, %v3375_v14  ;;  %s3411_s14 = sshll.u32 %s509_s16, 6  ;;  %s5485_s15 = smov 8  }
  0x22   : > { %v511_v22 = vstv %s3411_s14  ;;  %s5481_s17 = smov 7   ;;  %s504_s19 = ssub.s32 1, %s3364_s18 }
  0x23   : > { %vm3419_vm2 = vcmp.lt.s32.totalorder %v3367_v12, %v511_v22  ;;  %s3436_s21 = sshll.u32 %s504_s19, 6  ;;  %s5483_s22 = smov 55  }
  0x24   : > { %v3397_v19 = vld [vmem:[#allocation2 + $0x4] sm:$0xff]  ;;  %v5559_v23 = vsel %vm3419_vm2, 4294967295, %v5558_v23  ;;  %v506_v24 = vstv %s3436_s21  ;;  %s5487_s23 = smov 9   ;;  %s5508_s24 = smov 57  }
  0x25   : > { %1467 = vrot.lane.b32.xlu1 %v3347_v9, %s3198_s13  ;;  %v3405_v21 = vcombine.high %v3397_v19, %v3397_v19  ;;  %vm3444_vm3 = vcmp.ge.s32.totalorder %v3367_v12, %v506_v24  ;;  %s5537_s28 = smov 56   ;;  %s3207_s16 = smov 63   ;;  %v1068_v33 = vcombine.low %v3397_v19, %v3397_v19 }
  0x26   : > { %v5561_v25 = vsel %vm3444_vm3, 4294967295, %v5560_v25  ;;  %s5501_s19 = smov 71   ;;  %s5780_s0 = smov 71  }
  0x27   : > { %v1595_v15 = vld [vmem:[#allocation2 + $0x10] sm:$0xff]  ;;  %s461_s21 = scalar_lea.vmem %s5478_s8, %s3331_s20 }
  0x28   : > { %1625 = vrot.lane.b32.xlu0 %v1595_v15, %s5541_s25  ;;  %v3394_v18 = vld [vmem:[#allocation2 + $0xc] sm:$0xff]  ;;  %v1620_v20 = vcombine.high %v1595_v15, %v1595_v15 }
  0x29   : > { %1529 = vrot.lane.b32.xlu1 %v3347_v9, %s5535_s12  ;;  %v3457_v26 = vcombine.high %v3394_v18, %v3394_v18  ;;  %v1069_v28 = vcombine.low %v3394_v18, %v3394_v18 }
  0x2c   : > { %1469 = vrot.lane.b32.xlu0 %v1595_v15, %s3198_s13 }
  0x2d   : > { %1566 = vrot.lane.b32.xlu1 %v1595_v15, %s5533_s26 }
  0x30   : > { %1531 = vrot.lane.b32.xlu0 %v1595_v15, %s5535_s12 }
  0x31   : > { %1527 = vrot.lane.b32.xlu1 %v3340_v8, %s5535_s12 }
  0x34   : > { %1465 = vrot.lane.b32.xlu0 %v3340_v8, %s3198_s13 }
  0x35   : > { %1396 = vrot.lane.b32.xlu1 %v3394_v18, %s5489_s27 }
  0x38   : > { %1394 = vrot.lane.b32.xlu0 %v3405_v21, %s5489_s27 }
  0x39   : > { %1568 = vrot.lane.b32.xlu1 %v1620_v20, %s5533_s26 }
  0x3c   : > { %1392 = vrot.lane.b32.xlu0 %v3397_v19, %s5489_s27 }
  0x3d   : > { %1299 = vrot.lane.b32.xlu1 %v3394_v18, %s5485_s15 }
  0x40   : > { %1297 = vrot.lane.b32.xlu0 %v3405_v21, %s5485_s15 }
  0x41   : > { %1358 = vrot.lane.b32.xlu1 %v3394_v18, %s5481_s17 }
  0x44   : > { %1356 = vrot.lane.b32.xlu0 %v3405_v21, %s5481_s17 }
  0x45   : > { %1295 = vrot.lane.b32.xlu1 %v3397_v19, %s5485_s15 }
  0x48   : > { %1627 = vrot.lane.b32.xlu0 %v1620_v20, %s5541_s25 }
  0x49   : > { %1471 = vrot.lane.b32.xlu1 %v1620_v20, %s3198_s13 }
  0x4c   : > { %1354 = vrot.lane.b32.xlu0 %v3397_v19, %s5481_s17 }
  0x4d   : > { %1199 = vrot.lane.b32.xlu1 %v3405_v21, %s5483_s22 }
  0x50   : > { %1533 = vrot.lane.b32.xlu0 %v1620_v20, %s5535_s12 }
  0x51   : > { %1262 = vrot.lane.b32.xlu1 %v3405_v21, %s5487_s23 }
  0x54   : > { %1201 = vrot.lane.b32.xlu0 %v3394_v18, %s5483_s22 }
  0x55   : > { %1197 = vrot.lane.b32.xlu1 %v3397_v19, %s5483_s22 }
  0x58   : > { %1264 = vrot.lane.b32.xlu0 %v3394_v18, %s5487_s23 }
  0x59   : > { %1398 = vrot.lane.b32.xlu1 %v3457_v26, %s5489_s27  ;;  %s5539_s27 = smov 73  }
  0x5c   : > { %1260 = vrot.lane.b32.xlu0 %v3397_v19, %s5487_s23 }
  0x5d   : > { %1131 = vrot.lane.b32.xlu1 %v3394_v18, %s5508_s24 }
  0x60   : > { %1129 = vrot.lane.b32.xlu0 %v3405_v21, %s5508_s24 }
  0x61   : > { %1176 = vrot.lane.b32.xlu1 %v3394_v18, %s5537_s28 }
  0x64   : > { %1174 = vrot.lane.b32.xlu0 %v3405_v21, %s5537_s28 }
  0x65   : > { %1172 = vrot.lane.b32.xlu1 %v3397_v19, %s5537_s28 }
  0x68   : > { %1127 = vrot.lane.b32.xlu0 %v3397_v19, %s5508_s24 }
  0x69   : > { %1360 = vrot.lane.b32.xlu1 %v3457_v26, %s5481_s17  ;;  %s5510_s17 = smov 65  }
  0x6c   : > { %1301 = vrot.lane.b32.xlu0 %v3457_v26, %s5485_s15  ;;  %s494_s15 = ssub.s32 8, %s3364_s18  ;;  %s5504_s18 = smov 72  }
  0x6d   : > { %1106 = vrot.lane.b32.xlu1 %v3394_v18, %s3207_s16 }
  0x70   : > { %1104 = vrot.lane.b32.xlu0 %v3405_v21, %s3207_s16 }
  0x71   : > { %1203 = vrot.lane.b32.xlu1 %v3457_v26, %s5483_s22  ;;  %s5562_s22 = smov 64  }
  0x74   : > { %1102 = vrot.lane.b32.xlu0 %v3397_v19, %s3207_s16 }
  0x75   : > { %1007 = vrot.lane.b32.xlu1 %v3405_v21, %s5501_s19 }
  0x78   : > { %1266 = vrot.lane.b32.xlu0 %v3457_v26, %s5487_s23  ;;  %s3004_s23 = sshll.u32 %s494_s15, 6  ;;  %s5595_s15 = smov 1  }
  0x79   : > { %1052 = vrot.lane.b32.xlu1 %v3405_v21, %s5510_s17  ;;  %v3519_v32 = vstv %s3004_s23  ;;  %s5607_s23 = smov 8  }
  0x7a   : > { %vm3532_vm6 = vcmp.lt.s32.totalorder %v3367_v12, %v3519_v32  ;;  %vm3540_vm7 = vcmp.lt.s32.totalorder %v3298_v1, %v3519_v32 }
  0x7c   : > { %1009 = vrot.lane.b32.xlu0 %v3394_v18, %s5501_s19 }
  0x7d   : > { %1005 = vrot.lane.b32.xlu1 %v3397_v19, %s5501_s19 }
  0x80   : > { %1054 = vrot.lane.b32.xlu0 %v3394_v18, %s5510_s17 }
  0x81   : > { %1072 = vrot.lane.b32.xlu1 %v3397_v19, %s5562_s22 }
  0x84   : > { %1050 = vrot.lane.b32.xlu0 %v3397_v19, %s5510_s17 }
  0x85   : > { %v478_v27 = vpop.permute.xlu0 %477  ;;  %1133 = vrot.lane.b32.xlu1 %v3457_v26, %s5508_s24  ;;  %s5776_s24 = smov 65  }
  0x86   : > { %v3517_v29 = vsel %vm5491_vm4, %v3298_v1, %v478_v27 }
  0x87   : > { %vm5492_vm5 = vcmp.lt.s32.totalorder %v3517_v29, 56 }
  0x88   : > { %1074 = vrot.lane.b32.xlu0 %v1069_v28, %s5562_s22  ;;  %vm3550_vm9 = vmand %vm3532_vm6, %vm5492_vm5 }
  0x89   : > { %937 = vrot.lane.b32.xlu1 %v3405_v21, %s5539_s27  ;;  %vm3558_vm10 = vmand %vm3540_vm7, %vm5492_vm5  ;;  %v1545_v46 = vsel %vm3550_vm9, 1, %v5550_v6  ;;  %vm5497_vm5 = vcmask 1039360  }
  0x8a   : > { %v1544_v41 = vsel %vm3558_vm10, 1, %v5550_v6  ;;  %v1554_v52 = vrot.slane %v1545_v46, %v3318_v5 }
  0x8b   : > { %v1622_v31 = vpop.permute.xlu1 %1621  ;;  %v1550_v47 = vrot.slane %v1544_v41, %v3318_v5 }
  0x8c   : > { %v486_v30 = vpop.permute.xlu0 %485  ;;  %1178 = vrot.lane.b32.xlu0 %v3457_v26, %s5537_s28 }
  0x8d   : > { %982 = vrot.lane.b32.xlu1 %v3405_v21, %s5504_s18  ;;  %v3528_v34 = vsel %vm5491_vm4, %v3314_v4, %v486_v30 }
  0x8e   : > { %vm5493_vm8 = vcmp.lt.s32.totalorder %v3528_v34, 7  ;;  %vm5495_vm13 = vcmp.ge.s32.totalorder %v3528_v34, 1 }
  0x8f   : > { %v1565_v37 = vpop.permute.xlu1 %1564  ;;  %vm1597_vm11 = vmand %vm3550_vm9, %vm5493_vm8 }
  0x90   : > { %939 = vrot.lane.b32.xlu0 %v3394_v18, %s5539_s27  ;;  %vm1596_vm12 = vmand %vm3558_vm10, %vm5493_vm8  ;;  %v1600_v42 = vsel %vm1597_vm11, 1, %v5550_v6  ;;  %v1563_v45 = vpop.permute.xlu0 %1562 }
  0x91   : > { %1070 = vrot.lane.b32.xlu1 %v1068_v33, %s5562_s22  ;;  %v1599_v44 = vsel %vm1596_vm12, 1, %v5550_v6  ;;  %vm1441_vm14 = vmand %vm3532_vm6, %vm5493_vm8  ;;  %v1609_v48 = vrot.slane %v1600_v42, %v3318_v5  ;;  %vm5498_vm12 = vcmask 982016  }
  0x92   : > { %vm1502_vm11 = vmand %vm3558_vm10, %vm5495_vm13  ;;  %v1605_v49 = vrot.slane %v1599_v44, %v3318_v5  ;;  %v1444_v50 = vsel %vm1441_vm14, 1, %v5550_v6  ;;  %vm5500_vm10 = vcmask 1043456   ;;  %vm3618_vm14 = vcmp.eq.s32.totalorder %v1550_v47, 1 }
  0x93   : > { %v1624_v40 = vpop.permute.xlu1 %1623  ;;  %vm3608_vm4 = vmand %vm3550_vm9, %vm5495_vm13  ;;  %v1505_v56 = vsel %vm1502_vm11, 1, %v5550_v6  ;;  %vm1615_vm8 = vcmp.eq.s32.totalorder %v1609_v48, 1  ;;  %v1453_v59 = vrot.slane %v1444_v50, %v3318_v5  ;;  %v1570_v60 = vsel %vm5498_vm12, %v1563_v45, %v1565_v37 }
  0x94   : > { %984 = vrot.lane.b32.xlu0 %v3394_v18, %s5504_s18  ;;  %v1629_v55 = vsel %vm5494_vm15, %v1622_v31, %v1624_v40  ;;  %vm1614_vm9 = vcmp.eq.s32.totalorder %v1605_v49, 1  ;;  %v1506_v63 = vsel %vm3608_vm4, 1, %v5550_v6  ;;  %vm5575_vm11 = vcmp.lt.s32.totalorder %v3528_v34, 7 }
  0x95   : > { %980 = vrot.lane.b32.xlu1 %v3397_v19, %s5504_s18  ;;  %v1635_v0 = vsel %vm1614_vm9, %v1629_v55, 0.0  ;;  %vm3638_vm13 = vcmp.eq.s32.totalorder %v1554_v52, 1  ;;  %v1511_v10 = vrot.slane %v1505_v56, %v3318_v5  ;;  %v1576_v15 = vsel %vm3618_vm14, %v1570_v60, 0.0 }
  0x96   : > { %vm1459_vm4 = vcmp.eq.s32.totalorder %v1453_v59, 1  ;;  %v1515_v27 = vrot.slane %v1506_v63, %v3318_v5  ;;  %v1582_v38 = vrot.slane %v1576_v15, 4  ;;  %v1436_v48 = vsel %vm3532_vm6, %v3347_v9, 0.0 }
  0x97   : > { %v3581_v43 = vpop.permute.xlu1 %1467  ;;  %vm5499_vm14 = vcmp.ge.s32.totalorder %v3517_v29, 8  ;;  %v1435_v55 = vsel %vm3540_vm7, %v3340_v8, 0.0 }
  0x98   : > { %935 = vrot.lane.b32.xlu0 %v3397_v19, %s5539_s27 }
  0x99   : > { %852 = vrot.lane.b32.xlu1 %v3405_v21, %s5533_s26 }
  0x9a   : > { %v3612_v54 = vpop.permute.xlu0 %1625 }
  0x9b   : > { %v1530_v51 = vpop.permute.xlu1 %1529  ;;  %v1630_v58 = vsel %vm5494_vm15, %v1624_v40, %v3612_v54  ;;  %vm1440_vm15 = vmand %vm3540_vm7, %vm5575_vm11  ;;  %vm5578_vm11 = vcmp.ge.s32.totalorder %v3528_v34, 1 }
  0x9c   : > { %1108 = vrot.lane.b32.xlu0 %v3457_v26, %s3207_s16  ;;  %v1636_v61 = vsel %vm1615_vm8, %v1630_v58, 0.0  ;;  %v1443_v30 = vsel %vm1440_vm15, 1, %v5550_v6  ;;  %vm5496_vm8 = vcmask 990208   ;;  %vm1521_vm15 = vcmp.eq.s32.totalorder %v1515_v27, 1 }
  0x9d   : > { %912 = vrot.lane.b32.xlu1 %v3405_v21, %s5541_s25  ;;  %3022 = vmatprep.subr.msk.mxu0 %vm5500_vm10, %v1636_v61  ;;  %v1449_v42 = vrot.slane %v1443_v30, %v3318_v5 }
  0x9e   : > { %v3645_v11 = vpop.permute.xlu0 %1469  ;;  %3023 = vmatpush1.msk.msra.mxu0 %vm5500_vm10, %v1635_v0 }
  0x9f   : > { %v3628_v62 = vpop.permute.xlu1 %1566  ;;  %v1474_v20 = vsel %vm5497_vm5, %v3581_v43, %v3645_v11  ;;  %vm1458_vm9 = vcmp.eq.s32.totalorder %v1449_v42, 1 }
  0xa0   : > { %v1571_v7 = vsel %vm5498_vm12, %v1565_v37, %v3628_v62  ;;  %854 = vrot.lane.b32.xlu0 %v3394_v18, %s5533_s26  ;;  %v1480_v28 = vsel %vm1459_vm4, %v1474_v20, 0.0  ;;  %vm1372_vm4 = vmand %vm3532_vm6, %vm5578_vm11 }
  0xa1   : > { %v1577_v12 = vsel %vm3638_vm13, %v1571_v7, 0.0  ;;  %850 = vrot.lane.b32.xlu1 %v3397_v19, %s5533_s26  ;;  %vm1520_vm13 = vcmp.eq.s32.totalorder %v1511_v10, 1  ;;  %v1486_v41 = vrot.slane %v1480_v28, 4 }
  0xa2   : > { %v1583_v33 = vrot.slane %v1577_v12, 4  ;;  %v3662_v39 = vpop.permute.xlu0 %1531 }
  0xa3   : > { %v1528_v31 = vpop.permute.xlu1 %1527  ;;  %v1536_v44 = vsel %vm5496_vm8, %v1530_v51, %v3662_v39  ;;  %v1492_v52 = vsel %vm5500_vm10, %v1436_v48, %v1486_v41 }
  0xa4   : > { %v1535_v37 = vsel %vm5496_vm8, %v1528_v31, %v1530_v51  ;;  %914 = vrot.lane.b32.xlu0 %v3394_v18, %s5541_s25  ;;  %v1542_v45 = vsel %vm1521_vm15, %v1536_v44, 0.0  ;;  %vm3707_vm15 = vmand %vm3532_vm6, %vm5499_vm14  ;;  %vm5586_vm6 = vcmp.lt.s32.totalorder %v3528_v34, 7 }
  0xa5   : > { %v1541_v40 = vsel %vm1520_vm13, %v1535_v37, 0.0  ;;  %1011 = vrot.lane.b32.xlu1 %v3457_v26, %s5501_s19  ;;  %v1589_v49 = vsel %vm5500_vm10, %v1542_v45, %v1583_v33  ;;  %vm3697_vm13 = vcmp.lt.s32.totalorder %v3371_v13, %v3519_v32  ;;  %v1375_v13 = vsel %vm1372_vm4, 1, %v5550_v6  ;;  %vm1330_vm8 = vmand %vm3707_vm15, %vm5586_vm6  ;;  %s5611_s19 = smov 7  }
  0xa6   : > { %v1588_v46 = vsel %vm5500_vm10, %v1541_v40, %v1582_v38  ;;  %v1466_v50 = vpop.permute.xlu0 %1465  ;;  %1703 = vmatprep.subr.mxu0 %v1589_v49  ;;  %vm5587_vm4 = vcmp.ge.s32.totalorder %v3528_v34, 1  ;;  %v1384_v63 = vrot.slane %v1375_v13, %v3318_v5  ;;  %vm5588_vm12 = vmmov %vm5586_vm6  ;;  %v1333_v4 = vsel %vm1330_vm8, 1, %v5550_v6 }
  0xa7   : > { %v3672_v47 = vpop.permute.xlu1 %1396  ;;  %v1473_v51 = vsel %vm5497_vm5, %v1466_v50, %v3581_v43  ;;  %1704 = vmatpush1.msra.mxu0 %v1588_v46  ;;  %vm5506_vm5 = vcmask 7168   ;;  %v1342_v27 = vrot.slane %v1333_v4, %v3318_v5  ;;  %vm5591_vm8 = vcmp.lt.s32.totalorder %v3528_v34, 7  ;;  %v3788_v46 = vld [vmem:[#allocation2] sm:$0xff] }
  0xa8   : > { %v1479_v53 = vsel %vm1458_vm9, %v1473_v51, 0.0  ;;  %910 = vrot.lane.b32.xlu0 %v3397_v19, %s5541_s25  ;;  %1705 = vmatprep.subr.mxu0 %v1492_v52  ;;  %vm5583_vm9 = vcmp.lt.s32.totalorder %v3517_v29, 56 }
  0xa9   : > { %753 = vrot.lane.b32.xlu1 %v3405_v21, %s3198_s13  ;;  %v1485_v57 = vrot.slane %v1479_v53, 4  ;;  %vm3719_vm11 = vmand %vm3697_vm13, %vm5583_vm9 }
  0xaa   : > { %v1395_v58 = vpop.permute.xlu0 %1394  ;;  %vm1371_vm9 = vmand %vm3540_vm7, %vm5587_vm4  ;;  %v1546_v31 = vsel %vm3719_vm11, 1, %v5550_v6 }
  0xab   : > { %v3689_v56 = vpop.permute.xlu1 %1568  ;;  %v1491_v60 = vsel %vm5500_vm10, %v1435_v55, %v1485_v57  ;;  %vm1598_vm6 = vmand %vm3719_vm11, %vm5588_vm12  ;;  %v1401_v7 = vsel %vm5506_vm5, %v1395_v58, %v3672_v47  ;;  %v1374_v15 = vsel %vm1371_vm9, 1, %v5550_v6  ;;  %vm1390_vm12 = vcmp.eq.s32.totalorder %v1384_v63, 1 }
  0xac   : > { %1056 = vrot.lane.b32.xlu0 %v3457_v26, %s5510_s17  ;;  %1706 = vmatpush1.msra.mxu0 %v1491_v60  ;;  %vm3751_vm4 = vmand %vm3540_vm7, %vm5499_vm14  ;;  %v1601_v20 = vsel %vm1598_vm6, 1, %v5550_v6  ;;  %v1407_v28 = vsel %vm1390_vm12, %v1401_v7, 0.0  ;;  %vm5507_vm7 = vcmask 56320   ;;  %v1380_v30 = vrot.slane %v1374_v15, %v3318_v5  ;;  %s5775_s17 = smov 55  }
  0xad   : > { %816 = vrot.lane.b32.xlu1 %v3405_v21, %s5535_s12  ;;  %vm1329_vm14 = vmand %vm3751_vm4, %vm5591_vm8  ;;  %v1613_v33 = vrot.slane %v1601_v20, %v3318_v5  ;;  %v1413_v37 = vrot.slane %v1407_v28, 4  ;;  %vm1348_vm6 = vcmp.eq.s32.totalorder %v1342_v27, 1  ;;  %vm5594_vm12 = vcmp.ge.s32.totalorder %v3528_v34, 1 }
  0xae   : > { %v1393_v61 = vpop.permute.xlu0 %1392  ;;  %vm5592_vm10 = vmmov %vm5591_vm8  ;;  %v1332_v40 = vsel %vm1329_vm14, 1, %v5550_v6  ;;  %v1558_v49 = vrot.slane %v1546_v31, %v3318_v5  ;;  %vm3799_vm14 = vcmp.eq.s32.totalorder %v1380_v30, 1  ;;  %v1278_v63 = vsel %vm3707_vm15, 1, %v5550_v6  ;;  %v1425_v31 = vld [vmem:[#allocation2 + $0x10] sm:$0xf] }
  0xaf   : > { %v3723_v35 = vpop.permute.xlu1 %1299  ;;  %vm1442_vm9 = vmand %vm3697_vm13, %vm5592_vm10  ;;  %v1400_v45 = vsel %vm5506_vm5, %v1393_v61, %v1395_v58  ;;  %vm5593_vm10 = vcmask 1043456   ;;  %v3812_v58 = vcombine.high %v3788_v46, %v3788_v46 }
  0xb0   : > { %755 = vrot.lane.b32.xlu0 %v3394_v18, %s3198_s13  ;;  %v1445_v42 = vsel %vm1442_vm9, 1, %v5550_v6  ;;  %vm1504_vm8 = vmand %vm3719_vm11, %vm5594_vm12  ;;  %vm5598_vm9 = vcmask 973824   ;;  %v1406_v55 = vsel %vm3799_vm14, %v1400_v45, 0.0  ;;  %vm5599_vm11 = vcmask 982016  }
  0xb1   : > { %1076 = vrot.lane.b32.xlu1 %v3394_v18, %s5562_s22  ;;  %v1457_v53 = vrot.slane %v1445_v42, %v3318_v5  ;;  %v1507_v60 = vsel %vm1504_vm8, 1, %v5550_v6  ;;  %vm5600_vm12 = vcmask 1039360   ;;  %vm3823_vm14 = vcmp.eq.s32.totalorder %v1558_v49, 1 }
  0xb2   : > { %v3755_v12 = vpop.permute.xlu0 %1297  ;;  %v1437_v42 = vsel %vm3697_vm13, %v1425_v31, 0.0 }
  0xb3   : > { %v3742_v0 = vpop.permute.xlu1 %1358 }
  0xb4   : > { %818 = vrot.lane.b32.xlu0 %v3394_v18, %s5535_s12 }
  0xb5   : > { %814 = vrot.lane.b32.xlu1 %v3397_v19, %s5535_s12 }
  0xb6   : > { %v1357_v18 = vpop.permute.xlu0 %1356 }
  0xb7   : > { %v3768_v36 = vpop.permute.xlu1 %1295  ;;  %v1363_v38 = vsel %vm5507_vm7, %v1357_v18, %v3742_v0 }
  0xb8   : > { %751 = vrot.lane.b32.xlu0 %v3397_v19, %s3198_s13  ;;  %v1369_v41 = vsel %vm1348_vm6, %v1363_v38, 0.0  ;;  %v1338_v19 = vrot.slane %v1332_v40, %v3318_v5  ;;  %vm1616_vm6 = vcmp.eq.s32.totalorder %v1613_v33, 1  ;;  %v1277_v33 = vsel %vm3751_vm4, 1, %v5550_v6 }
  0xb9   : > { %986 = vrot.lane.b32.xlu1 %v3457_v26, %s5504_s18  ;;  %v1419_v48 = vsel %vm5593_vm10, %v1369_v41, %v1413_v37  ;;  %s5627_s18 = smov 9  }
  0xba   : > { %v1628_v50 = vpop.permute.xlu0 %1627  ;;  %1707 = vmatprep.subr.mxu0 %v1419_v48  ;;  %vm1347_vm8 = vcmp.eq.s32.totalorder %v1338_v19, 1  ;;  %v5634_v19 = vmov 0 }
  0xbb   : > { %v1472_v44 = vpop.permute.xlu1 %1471  ;;  %v1631_v52 = vsel %vm5598_vm9, %v3612_v54, %v1628_v50  ;;  %v1572_v54 = vsel %vm5599_vm11, %v3628_v62, %v3689_v56  ;;  %v1412_v62 = vrot.slane %v1406_v55, 4  ;;  %vm3835_vm9 = vcmp.eq.s32.totalorder %v1457_v53, 1 }
  0xbc   : > { %941 = vrot.lane.b32.xlu0 %v3457_v26, %s5539_s27  ;;  %v1637_v57 = vsel %vm1616_vm6, %v1631_v52, 0.0  ;;  %v1475_v32 = vsel %vm5600_vm12, %v3645_v11, %v1472_v44  ;;  %v1519_v11 = vrot.slane %v1507_v60, %v3318_v5  ;;  %v1578_v15 = vsel %vm3823_vm14, %v1572_v54, 0.0  ;;  %vm5605_vm6 = vmmov %vm5593_vm10 }
  0xbd   : > { %684 = vrot.lane.b32.xlu1 %v3340_v8, %s5595_s15  ;;  %3043 = vmatpush3.msk.msra.mxu1 %vm5593_vm10, %v1637_v57  ;;  %v1481_v27 = vsel %vm3835_vm9, %v1475_v32, 0.0  ;;  %vm5606_vm11 = vcmp.ge.s32.totalorder %v3528_v34, 1  ;;  %vm5503_vm12 = vcmask 64512   ;;  %v1584_v38 = vrot.slane %v1578_v15, 4 }
  0xbe   : > { %v1355_v4 = vpop.permute.xlu0 %1354  ;;  %3044 = vmatprep.subr.mxu1 %v3193_v3  ;;  %vm1236_vm10 = vmand %vm3707_vm15, %vm5606_vm11  ;;  %vm1522_vm14 = vcmp.eq.s32.totalorder %v1519_v11, 1  ;;  %v1487_v41 = vrot.slane %v1481_v27, 4  ;;  %v1304_v48 = vsel %vm5503_vm12, %v3755_v12, %v3723_v35  ;;  %v1303_v57 = vsel %vm5503_vm12, %v3768_v36, %v3755_v12 }
  0xbf   : > { %v3815_v13 = vpop.permute.xlu1 %1199  ;;  %v1362_v56 = vsel %vm5507_vm7, %v1355_v4, %v1357_v18  ;;  %v1287_v18 = vrot.slane %v1278_v63, %v3318_v5  ;;  %v1239_v44 = vsel %vm1236_vm10, 1, %v5550_v6  ;;  %vm5609_vm15 = vmmov %vm5605_vm6  ;;  %vm5516_vm12 = vcmask 449536  }
  0xc0   : > { %v1368_v20 = vsel %vm1347_vm8, %v1362_v56, 0.0  ;;  %682 = vrot.lane.b32.xlu0 %v3812_v58, %s5595_s15  ;;  %vm5608_vm8 = vcmask 990208   ;;  %vm5610_vm9 = vmmov %vm5606_vm11  ;;  %v1248_v52 = vrot.slane %v1239_v44, %v3318_v5 }
  0xc1   : > { %856 = vrot.lane.b32.xlu1 %v3457_v26, %s5533_s26  ;;  %v1418_v30 = vsel %vm5605_vm6, %v1368_v20, %v1412_v62  ;;  %vm1235_vm6 = vmand %vm3751_vm4, %vm5610_vm9  ;;  %vm3878_vm11 = vcmp.eq.s32.totalorder %v1287_v18, 1  ;;  %vm5513_vm4 = vcmask 72704  }
  0xc2   : > { %v1534_v37 = vpop.permute.xlu0 %1533  ;;  %1708 = vmatpush1.msra.mxu0 %v1418_v30  ;;  %vm5614_vm10 = vmmov %vm5609_vm15  ;;  %v1310_v10 = vsel %vm3878_vm11, %v1304_v48, 0.0  ;;  %v1238_v53 = vsel %vm1235_vm6, 1, %v5550_v6  ;;  %vm5619_vm6 = vcmp.ge.s32.totalorder %v3528_v34, 1 }
  0xc3   : > { %v3845_v28 = vpop.permute.xlu1 %1262  ;;  %v1537_v40 = vsel %vm5608_vm8, %v3662_v39, %v1534_v37  ;;  %v1283_v39 = vrot.slane %v1277_v33, %v3318_v5  ;;  %v1493_v51 = vsel %vm5614_vm10, %v1437_v42, %v1487_v41  ;;  %vm5616_vm8 = vcmp.lt.s32.totalorder %v3517_v29, 56  ;;  %vm1373_vm11 = vmand %vm3697_vm13, %vm5619_vm6 }
  0xc4   : > { %v1543_v59 = vsel %vm1522_vm14, %v1537_v40, 0.0  ;;  %680 = vrot.lane.b32.xlu0 %v3788_v46, %s5595_s15  ;;  %vm5615_vm14 = vcmp.lt.s32.totalorder %v3528_v34, 7  ;;  %v1316_v12 = vrot.slane %v1310_v10, 4  ;;  %vm1254_vm10 = vcmp.eq.s32.totalorder %v1248_v52, 1 }
  0xc5   : > { %582 = vrot.lane.b32.xlu1 %v3812_v58, %s5607_s23  ;;  %v1590_v49 = vsel %vm5609_vm15, %v1543_v59, %v1584_v38  ;;  %vm1190_vm15 = vmand %vm5616_vm8, %vm5615_vm14  ;;  %vm3898_vm9 = vcmp.eq.s32.totalorder %v1283_v39, 1  ;;  %v1244_v32 = vrot.slane %v1238_v53, %v3318_v5  ;;  %vm5620_vm14 = vcmp.ge.s32.totalorder %v3517_v29, 8 }
  0xc6   : > { %3045 = vmatpush3.msra.mxu1 %v1590_v49  ;;  %v3874_v50 = vpop.permute.xlu0 %1201  ;;  %vm3918_vm8 = vmand %vm3697_vm13, %vm5620_vm14  ;;  %v1309_v63 = vsel %vm3898_vm9, %v1303_v57, 0.0  ;;  %v1191_v4 = vsel %vm1190_vm15, 1, %v5550_v6  ;;  %vm5623_vm6 = vcmask 1043456   ;;  %v1376_v7 = vsel %vm1373_vm11, 1, %v5550_v6 }
  0xc7   : > { %v1198_v45 = vpop.permute.xlu1 %1197  ;;  %3046 = vmatprep.subr.mxu1 %v3193_v3  ;;  %vm5624_vm13 = vcmp.lt.s32.totalorder %v3517_v29, 56  ;;  %vm5625_vm15 = vcmp.lt.s32.totalorder %v3528_v34, 7  ;;  %v1315_v20 = vrot.slane %v1309_v63, 4  ;;  %v1195_v27 = vrot.slane %v1191_v4, %v3318_v5 }
  0xc8   : > { %916 = vrot.lane.b32.xlu0 %v3457_v26, %s5541_s25  ;;  %3047 = vmatpush3.msra.mxu1 %v1493_v51  ;;  %v1162_v15 = vsel %vm5624_vm13, 1, %v5550_v6  ;;  %vm1331_vm9 = vmand %vm3918_vm8, %vm5625_vm15  ;;  %vm1253_vm11 = vcmp.eq.s32.totalorder %v1244_v32, 1  ;;  %v1388_v18 = vrot.slane %v1376_v7, %v3318_v5  ;;  %v1207_v37 = vsel %vm5516_vm12, %v3815_v13, %v3874_v50 }
  0xc9   : > { %643 = vrot.lane.b32.xlu1 %v3812_v58, %s5611_s19  ;;  %3048 = vmatprep.subr.mxu1 %v3193_v3  ;;  %v1206_v38 = vsel %vm5516_vm12, %v1198_v45, %v3815_v13  ;;  %v1166_v59 = vrot.slane %v1162_v15, %v3318_v5  ;;  %vm3958_vm14 = vcmp.eq.s32.totalorder %v1195_v27, 1  ;;  %v5628_v42 = vmov 0 }
  0xca   : > { %v3902_v54 = vpop.permute.xlu0 %1264  ;;  %v5629_v42 = vsel %vm3958_vm14, 4294967295, %v5628_v42  ;;  %v1213_v13 = vsel %vm3958_vm14, %v1207_v37, 0.0  ;;  %v1212_v45 = vsel %vm3958_vm14, %v1206_v38, 0.0  ;;  %vm3971_vm13 = vcmp.eq.s32.totalorder %v1388_v18, 1 }
  0xcb   : > { %v1399_v55 = vpop.permute.xlu1 %1398  ;;  %v1269_v36 = vsel %vm5513_vm4, %v3845_v28, %v3902_v54  ;;  %vm5632_vm15 = vcmp.ge.s32.totalorder %v3528_v34, 1  ;;  %v1219_v51 = vrot.slane %v1213_v13, 4  ;;  %v1218_v52 = vrot.slane %v1212_v45, 4 }
  0xcc   : > { %584 = vrot.lane.b32.xlu0 %v3340_v8, %s5607_s23  ;;  %v1275_v62 = vsel %vm1254_vm10, %v1269_v36, 0.0  ;;  %vm5626_vm10 = vmmov %vm5623_vm6  ;;  %v1402_v44 = vsel %vm5506_vm5, %v3672_v47, %v1399_v55  ;;  %vm5512_vm5 = vcmask 465920  }
  0xcd   : > { %580 = vrot.lane.b32.xlu1 %v3788_v46, %s5607_s23  ;;  %v1322_v11 = vsel %vm5623_vm6, %v1275_v62, %v1316_v12  ;;  %vm5515_vm6 = vcmask 457728   ;;  %v1408_v47 = vsel %vm3971_vm13, %v1402_v44, 0.0 }
  0xce   : > { %v1261_v43 = vpop.permute.xlu0 %1260  ;;  %1709 = vmatprep.subr.mxu0 %v1322_v11  ;;  %v1414_v12 = vrot.slane %v1408_v47, 4 }
  0xcf   : > { %v3927_v56 = vpop.permute.xlu1 %1131  ;;  %v1268_v30 = vsel %vm5513_vm4, %v1261_v43, %v3845_v28  ;;  %v1334_v28 = vsel %vm1331_vm9, 1, %v5550_v6  ;;  %vm5633_vm9 = vcmp.lt.s32.totalorder %v3517_v29, 56 }
  0xd0   : > { %645 = vrot.lane.b32.xlu0 %v3340_v8, %s5611_s19  ;;  %v1274_v31 = vsel %vm1253_vm11, %v1268_v30, 0.0  ;;  %v1346_v48 = vrot.slane %v1334_v28, %v3318_v5  ;;  %vm1120_vm11 = vmand %vm5633_vm9, %vm5632_vm15  ;;  %vm5636_vm15 = vcmask 1043456   ;;  %v1279_v30 = vsel %vm3918_vm8, 1, %v5550_v6 }
  0xd1   : > { %757 = vrot.lane.b32.xlu1 %v3457_v26, %s3198_s13  ;;  %v1321_v40 = vsel %vm5626_vm10, %v1274_v31, %v1315_v20  ;;  %vm3981_vm10 = vcmp.eq.s32.totalorder %v1166_v59, 1  ;;  %v1121_v55 = vsel %vm1120_vm11, 1, %v5550_v6  ;;  %vm5637_vm9 = vmmov %vm5636_vm15  ;;  %v5643_v28 = vmov 0 }
  0xd2   : > { %v1130_v41 = vpop.permute.xlu0 %1129  ;;  %1710 = vmatpush1.msra.mxu0 %v1321_v40  ;;  %v5635_v19 = vsel %vm3981_vm10, 4294967295, %v5634_v19  ;;  %vm1349_vm13 = vcmp.eq.s32.totalorder %v1346_v48, 1  ;;  %v1125_v62 = vrot.slane %v1121_v55, %v3318_v5  ;;  %vm5638_vm11 = vmmov %vm5637_vm9  ;;  %v1291_v40 = vrot.slane %v1279_v30, %v3318_v5  ;;  %v1687_v48 = vld [vmem:[%s5475_s5] sm:$0x3] }
  0xd3   : > { %v3946_v33 = vpop.permute.xlu1 %1176  ;;  %v1137_v43 = vsel %vm5512_vm5, %v1130_v41, %v3927_v56 }
  0xd4   : > { %641 = vrot.lane.b32.xlu0 %v3788_v46, %s5611_s19 }
  0xd5   : > { %546 = vrot.lane.b32.xlu1 %v3812_v58, %s5627_s18 }
  0xd6   : > { %v1175_v39 = vpop.permute.xlu0 %1174 }
  0xd7   : > { %v1173_v58 = vpop.permute.xlu1 %1172  ;;  %v1182_v10 = vsel %vm5515_vm6, %v1175_v39, %v3946_v33 }
  0xd8   : > { %v1181_v53 = vsel %vm5515_vm6, %v1173_v58, %v1175_v39  ;;  %820 = vrot.lane.b32.xlu0 %v3457_v26, %s5535_s12  ;;  %v1188_v60 = vsel %vm3981_vm10, %v1182_v10, 0.0 }
  0xd9   : > { %544 = vrot.lane.b32.xlu1 %v3788_v46, %s5627_s18  ;;  %v1187_v57 = vsel %vm3981_vm10, %v1181_v53, 0.0  ;;  %v1225_v36 = vsel %vm5636_vm15, %v1188_v60, %v1219_v51  ;;  %vm5639_vm15 = vcmp.lt.s32.totalorder %v3528_v34, 7 }
  0xda   : > { %v1224_v63 = vsel %vm5637_vm9, %v1187_v57, %v1218_v52  ;;  %v1128_v26 = vpop.permute.xlu0 %1127  ;;  %1711 = vmatprep.subr.mxu0 %v1225_v36  ;;  %vm4018_vm9 = vcmp.eq.s32.totalorder %v1125_v62, 1 }
  0xdb   : > { %v1361_v46 = vpop.permute.xlu1 %1360  ;;  %1712 = vmatpush1.msra.mxu0 %v1224_v63  ;;  %v1143_v27 = vsel %vm4018_vm9, %v1137_v43, 0.0  ;;  %v1136_v18 = vsel %vm5512_vm5, %v1128_v26, %v1130_v41  ;;  %vm1294_vm5 = vcmp.eq.s32.totalorder %v1291_v40, 1 }
  0xdc   : > { %v1364_v32 = vsel %vm5507_vm7, %v3742_v0, %v1361_v46  ;;  %548 = vrot.lane.b32.xlu0 %v3340_v8, %s5627_s18  ;;  %v1092_v0 = vsel %vm5639_vm15, 1, %v5550_v6  ;;  %v5640_v8 = vmov 0  ;;  %vm5642_vm15 = vcmp.ge.s32.totalorder %v3528_v34, 1 }
  0xdd   : > { %v1370_v4 = vsel %vm1349_vm13, %v1364_v32, 0.0  ;;  %586 = vrot.lane.b32.xlu1 %v3347_v9, %s5607_s23  ;;  %vm3212_vm13 = vmmov 0   ;;  %v5641_v8 = vsel %vm4018_vm9, 4294967295, %v5640_v8  ;;  %v1096_v20 = vrot.slane %v1092_v0, %v3318_v5 }
  0xde   : > { %v1420_v11 = vsel %vm5638_vm11, %v1370_v4, %v1414_v12  ;;  %3070 = vmatprep.mubr.msk.f32.mxu1 %vm3212_vm13, %v3193_v3  ;;  %v1302_v15 = vpop.permute.xlu0 %1301  ;;  %vm5514_vm11 = vcmask 515072   ;;  %vm1237_vm13 = vmand %vm3918_vm8, %vm5642_vm15  ;;  %v1149_v38 = vrot.slane %v1143_v27, 4  ;;  %v1142_v44 = vsel %vm4018_vm9, %v1136_v18, 0.0 }
  0xdf   : > { %3049 = vmatpush3.msra.mxu1 %v1420_v11  ;;  %v4010_v7 = vpop.permute.xlu1 %1106  ;;  %vm4036_vm7 = vcmp.eq.s32.totalorder %v1096_v20, 1  ;;  %v1240_v61 = vsel %vm1237_vm13, 1, %v5550_v6  ;;  %vm5645_vm8 = vcmask 64512   ;;  %vm5646_vm15 = vcmask 1043456  }
  0xe0   : > { %3050 = vmatprep.subr.mxu1 %v3193_v3  ;;  %686 = vrot.lane.b32.xlu0 %v3347_v9, %s5595_s15  ;;  %v5644_v28 = vsel %vm4036_vm7, 4294967295, %v5643_v28  ;;  %v1305_v45 = vsel %vm5645_vm8, %v3723_v35, %v1302_v15  ;;  %v1148_v47 = vrot.slane %v1142_v44, 4  ;;  %v1252_v39 = vrot.slane %v1240_v61, %v3318_v5  ;;  %vm5647_vm13 = vmmov %vm5646_vm15 }
  0xe1   : > { %550 = vrot.lane.b32.xlu1 %v3347_v9, %s5627_s18  ;;  %v1311_v51 = vsel %vm1294_vm5, %v1305_v45, 0.0  ;;  %vm5649_vm5 = vcmp.ge.s32.totalorder %v3528_v34, 1  ;;  %v5652_v20 = vmov 0 }
  0xe2   : > { %v1105_v37 = vpop.permute.xlu0 %1104  ;;  %v1317_v55 = vrot.slane %v1311_v51, 4  ;;  %vm1255_vm8 = vcmp.eq.s32.totalorder %v1252_v39, 1  ;;  %v1040_v26 = vsel %vm5649_vm5, 1, %v5550_v6 }
  0xe3   : > { %v1204_v31 = vpop.permute.xlu1 %1203  ;;  %v1112_v59 = vsel %vm5514_vm11, %v1105_v37, %v4010_v7 }
  0xe4   : > { %647 = vrot.lane.b32.xlu0 %v3347_v9, %s5611_s19  ;;  %v1118_v41 = vsel %vm4036_vm7, %v1112_v59, 0.0  ;;  %v1208_v43 = vsel %vm5516_vm12, %v3874_v50, %v1204_v31  ;;  %vm5663_vm12 = vcmask 465920  }
  0xe5   : > { %v1155_v58 = vsel %vm5646_vm15, %v1118_v41, %v1149_v38  ;;  %vm5648_vm15 = vmmov %vm5647_vm13 }
  0xe6   : > { %v1103_v49 = vpop.permute.xlu0 %1102  ;;  %1713 = vmatprep.subr.mxu0 %v1155_v58 }
  0xe7   : > { %v1008_v13 = vpop.permute.xlu1 %1007  ;;  %v1111_v9 = vsel %vm5514_vm11, %v1103_v49, %v1105_v37  ;;  %vm5654_vm11 = vcmask 523264   ;;  %v1214_v37 = vsel %vm3958_vm14, %v1208_v43, 0.0 }
  0xe8   : > { %v1117_v52 = vsel %vm4036_vm7, %v1111_v9, 0.0  ;;  %1690 = vperm.xlu0 %3134, %v1687_v48   ;;  %v1220_v61 = vrot.slane %v1214_v37, 4 }
  0xe9   : > { %v1154_v35 = vsel %vm5647_vm13, %v1117_v52, %v1148_v47  ;;  %vm5518_vm13 = vcmask 531456  }
  0xea   : > { %v1267_v53 = vpop.permute.xlu0 %1266  ;;  %1714 = vmatpush1.msra.mxu0 %v1154_v35 }
  0xeb   : > { %v1053_v10 = vpop.permute.xlu1 %1052  ;;  %v1270_v57 = vsel %vm5513_vm4, %v3902_v54, %v1267_v53  ;;  %v1044_v54 = vrot.slane %v1040_v26, %v3318_v5 }
  0xec   : > { %v1276_v60 = vsel %vm1255_vm8, %v1270_v57, 0.0  ;;  %vm5650_vm8 = vcmp.lt.s32.totalorder %v3528_v34, 7 }
  0xed   : > { %v1323_v12 = vsel %vm5648_vm15, %v1276_v60, %v1317_v55  ;;  %vm5651_vm15 = vcmp.ge.s32.totalorder %v3517_v29, 8  ;;  %vm4084_vm5 = vcmp.eq.s32.totalorder %v1044_v54, 1  ;;  %v5661_v55 = vmov 0 }
  0xee   : > { %3051 = vmatpush3.msra.mxu1 %v1323_v12  ;;  %v4063_v36 = vpop.permute.xlu0 %1009  ;;  %vm998_vm4 = vmand %vm5651_vm15, %vm5650_vm8  ;;  %v5653_v20 = vsel %vm4084_vm5, 4294967295, %v5652_v20  ;;  %vm5655_vm8 = vcmask 1043456   ;;  %v970_v31 = vsel %vm5651_vm15, 1, %v5550_v6 }
  0xef   : > { %v1006_v46 = vpop.permute.xlu1 %1005  ;;  %3052 = vmatprep.subr.mxu1 %v3193_v3  ;;  %v999_v27 = vsel %vm998_vm4, 1, %v5550_v6  ;;  %vm5517_vm4 = vcmask 580608   ;;  %v974_v49 = vrot.slane %v970_v31, %v3318_v5 }
  0xf0   : > { %v1003_v40 = vrot.slane %v999_v27, %v3318_v5  ;;  %v1014_v45 = vsel %vm5517_vm4, %v1006_v46, %v1008_v13  ;;  %v1015_v47 = vsel %vm5517_vm4, %v1008_v13, %v4063_v36  ;;  %vm5664_vm4 = vcmp.ge.s32.totalorder %v3528_v34, 1 }
  0xf2   : > { %v4066_v63 = vpop.permute.xlu0 %1054  ;;  %vm4113_vm15 = vcmp.eq.s32.totalorder %v1003_v40, 1 }
  0xf3   : > { %v1073_v32 = vpop.permute.xlu1 %1072  ;;  %v1060_v11 = vsel %vm5518_vm13, %v1053_v10, %v4066_v63  ;;  %v1020_v35 = vsel %vm4113_vm15, %v1014_v45, 0.0  ;;  %v1021_v13 = vsel %vm4113_vm15, %v1015_v47, 0.0 }
  0xf4   : > { %v1066_v18 = vsel %vm4084_vm5, %v1060_v11, 0.0  ;;  %v1026_v60 = vrot.slane %v1020_v35, 4 }
  0xf6   : > { %v1051_v62 = vpop.permute.xlu0 %1050 }
  0xf7   : > { %v1134_v4 = vpop.permute.xlu1 %1133  ;;  %v1059_v59 = vsel %vm5518_vm13, %v1051_v62, %v1053_v10  ;;  %vm5665_vm13 = vcmp.ge.s32.totalorder %v3517_v29, 8 }
  0xf8   : > { %v1065_v51 = vsel %vm4084_vm5, %v1059_v59, 0.0  ;;  %v1138_v43 = vsel %vm5663_vm12, %v3927_v56, %v1134_v4  ;;  %vm928_vm3 = vmand %vm5665_vm13, %vm5664_vm4  ;;  %vm4158_vm12 = vcmp.ge.s32.totalorder %v3298_v1, %v3375_v14  ;;  %vm5527_vm4 = vcmask 596992  }
  0xf9   : > { %v1144_v4 = vsel %vm4018_vm9, %v1138_v43, 0.0  ;;  %v929_v37 = vsel %vm928_vm3, 1, %v5550_v6  ;;  %vm5675_vm3 = vcmask 515072  }
  0xfa   : > { %v4082_v15 = vpop.permute.xlu0 %1074  ;;  %v1150_v31 = vrot.slane %v1144_v4, 4  ;;  %v933_v40 = vrot.slane %v929_v37, %v3318_v5 }
  0xfb   : > { %v4078_v0 = vpop.permute.xlu1 %937  ;;  %v1079_v30 = vsel %vm5654_vm11, %v1073_v32, %v4082_v15  ;;  %vm5656_vm11 = vmmov %vm5655_vm8 }
  0xfc   : > { %v1085_v38 = vsel %vm5655_vm8, %v1066_v18, %v1079_v30  ;;  %vm5657_vm8 = vcmask 523264  }
  0xfd   : > { %1715 = vmatprep.subr.mxu0 %v1085_v38 }
  0xfe   : > { %v1179_v44 = vpop.permute.xlu0 %1178 }
  0xff   : > { %v983_v50 = vpop.permute.xlu1 %982  ;;  %v1183_v41 = vsel %vm5515_vm6, %v3946_v33, %v1179_v44  ;;  %v5658_v33 = vmov 0  ;;  %vm5660_vm6 = vmmov %vm5656_vm11 }
 0x100   : > { %v1189_v58 = vsel %vm3981_vm10, %v1183_v41, 0.0  ;;  %v5659_v33 = vsel %vm4113_vm15, 4294967295, %v5658_v33  ;;  %vm5666_vm10 = vmmov %vm5660_vm6 }
 0x101   : > { %v1226_v9 = vsel %vm5656_vm11, %v1189_v58, %v1220_v61  ;;  %vm5522_vm11 = vcmask 588800  }
 0x102   : > { %3053 = vmatpush3.msra.mxu1 %v1226_v9  ;;  %v4117_v52 = vpop.permute.xlu0 %939 }
 0x103   : > { %v1071_v48 = vpop.permute.xlu1 %1070  ;;  %3054 = vmatprep.subr.mxu1 %v3193_v3  ;;  %v945_v45 = vsel %vm5527_vm4, %v4078_v0, %v4117_v52 }
 0x104   : > { %v1078_v39 = vsel %vm5657_vm8, %v1071_v48, %v1073_v32  ;;  %vm4125_vm8 = vcmp.eq.s32.totalorder %v974_v49, 1  ;;  %v1027_v32 = vrot.slane %v1021_v13, 4 }
 0x105   : > { %v1084_v10 = vsel %vm5660_vm6, %v1065_v51, %v1078_v39  ;;  %v5662_v55 = vsel %vm4125_vm8, 4294967295, %v5661_v55 }
 0x106   : > { %1716 = vmatpush1.msra.mxu0 %v1084_v10  ;;  %v4130_v46 = vpop.permute.xlu0 %984 }
 0x107   : > { %v981_v53 = vpop.permute.xlu1 %980  ;;  %v990_v26 = vsel %vm5522_vm11, %v983_v50, %v4130_v46 }
 0x108   : > { %v989_v57 = vsel %vm5522_vm11, %v981_v53, %v983_v50  ;;  %v996_v62 = vsel %vm4125_vm8, %v990_v26, 0.0  ;;  %vm5667_vm11 = vcmp.lt.s32.totalorder %v3517_v29, 56 }
 0x109   : > { %v995_v12 = vsel %vm4125_vm8, %v989_v57, 0.0  ;;  %v1033_v27 = vsel %vm5666_vm10, %v996_v62, %v1027_v32  ;;  %vm4152_vm14 = vmand %vm3379_vm0, %vm5667_vm11  ;;  %vm5672_vm10 = vcmp.lt.s32.totalorder %v3528_v34, 7 }
 0x10a   : > { %v1032_v54 = vsel %vm5660_vm6, %v995_v12, %v1026_v60  ;;  %v936_v30 = vpop.permute.xlu0 %935  ;;  %1717 = vmatprep.subr.mxu0 %v1033_v27  ;;  %vm886_vm13 = vmand %vm4152_vm14, %vm5672_vm10  ;;  %vm5676_vm10 = vcmask 1043456  }
 0x10b   : > { %v4139_v11 = vpop.permute.xlu1 %852  ;;  %1718 = vmatpush1.msra.mxu0 %v1032_v54  ;;  %vm4173_vm6 = vmand %vm4158_vm12, %vm5667_vm11  ;;  %v889_v61 = vsel %vm886_vm13, 1, %v5550_v6  ;;  %vm5677_vm11 = vcmp.lt.s32.totalorder %v3528_v34, 7  ;;  %v944_v51 = vsel %vm5527_vm4, %v936_v30, %v4078_v0  ;;  %vm5680_vm13 = vcmask 973824  }
 0x10c   : > { %vm885_vm9 = vmand %vm4173_vm6, %vm5677_vm11  ;;  %v898_v49 = vrot.slane %v889_v61, %v3318_v5  ;;  %v833_v0 = vsel %vm4152_vm14, 1, %v5550_v6  ;;  %vm5681_vm4 = vcmask 1043456   ;;  %v832_v62 = vsel %vm4173_vm6, 1, %v5550_v6 }
 0x10d   : > { %v888_v9 = vsel %vm885_vm9, 1, %v5550_v6  ;;  %vm729_vm9 = vmand %vm3379_vm0, %vm5677_vm11  ;;  %vm5682_vm11 = vcmp.ge.s32.totalorder %v3528_v34, 1  ;;  %v842_v30 = vrot.slane %v833_v0, %v3318_v5 }
 0x10e   : > { %v1109_v50 = vpop.permute.xlu0 %1108  ;;  %v894_v53 = vrot.slane %v888_v9, %v3318_v5  ;;  %v732_v27 = vsel %vm729_vm9, 1, %v5550_v6  ;;  %vm5683_vm2 = vmmov %vm5682_vm11  ;;  %vm5685_vm9 = vcmp.lt.s32.totalorder %v3528_v34, 7 }
 0x10f   : > { %v913_v38 = vpop.permute.xlu1 %912  ;;  %v1113_v59 = vsel %vm5675_vm3, %v4010_v7, %v1109_v50  ;;  %vm4193_vm3 = vcmp.eq.s32.totalorder %v933_v40, 1  ;;  %v5678_v7 = vmov 0  ;;  %v741_v40 = vrot.slane %v732_v27, %v3318_v5 }
 0x110   : > { %v1119_v44 = vsel %vm4036_vm7, %v1113_v59, 0.0  ;;  %v5679_v7 = vsel %vm4193_vm3, 4294967295, %v5678_v7  ;;  %v951_v47 = vsel %vm4193_vm3, %v945_v45, 0.0  ;;  %v950_v57 = vsel %vm4193_vm3, %v944_v51, 0.0  ;;  %vm789_vm7 = vmand %vm4173_vm6, %vm5682_vm11 }
 0x111   : > { %v1156_v58 = vsel %vm5676_vm10, %v1119_v44, %v1150_v31  ;;  %v957_v35 = vrot.slane %v951_v47, 4  ;;  %vm904_vm10 = vcmp.eq.s32.totalorder %v898_v49, 1  ;;  %v956_v54 = vrot.slane %v950_v57, 4  ;;  %vm790_vm3 = vmand %vm4152_vm14, %vm5683_vm2 }
 0x112   : > { %3055 = vmatpush3.msra.mxu1 %v1156_v58  ;;  %v4191_v48 = vpop.permute.xlu0 %854  ;;  %v838_v31 = vrot.slane %v832_v62, %v3318_v5  ;;  %v792_v14 = vsel %vm789_vm7, 1, %v5550_v6  ;;  %vm5684_vm6 = vcmask 531456   ;;  %vm5688_vm2 = vcmask 982016  }
 0x113   : > { %v851_v41 = vpop.permute.xlu1 %850  ;;  %3056 = vmatprep.subr.mxu1 %v3193_v3  ;;  %v793_v61 = vsel %vm790_vm3, 1, %v5550_v6  ;;  %vm5689_vm7 = vmmov %vm5688_vm2  ;;  %vm5690_vm14 = vcmask 523264   ;;  %v798_v47 = vrot.slane %v792_v14, %v3318_v5  ;;  %vm4266_vm3 = vcmp.eq.s32.totalorder %v741_v40, 1 }
 0x114   : > { %v859_v18 = vsel %vm5688_vm2, %v851_v41, %v4139_v11  ;;  %v860_v58 = vsel %vm5689_vm7, %v4139_v11, %v4191_v48  ;;  %vm4260_vm11 = vcmp.eq.s32.totalorder %v838_v31, 1  ;;  %v802_v57 = vrot.slane %v793_v61, %v3318_v5 }
 0x115   : > { %vm5697_vm2 = vcmask 990208   ;;  %v725_v40 = vsel %vm3379_vm0, %v3405_v21, 0.0 }
 0x116   : > { %v4204_v10 = vpop.permute.xlu0 %914  ;;  %vm808_vm7 = vcmp.eq.s32.totalorder %v802_v57, 1 }
 0x117   : > { %v1012_v39 = vpop.permute.xlu1 %1011  ;;  %v920_v13 = vsel %vm5680_vm13, %v913_v38, %v4204_v10 }
 0x118   : > { %v926_v60 = vsel %vm904_vm10, %v920_v13, 0.0  ;;  %vm903_vm10 = vcmp.eq.s32.totalorder %v894_v53, 1  ;;  %v865_v13 = vsel %vm4260_vm11, %v859_v18, 0.0  ;;  %vm5700_vm11 = vmmov %vm5681_vm4 }
 0x119   : > { %v963_v32 = vsel %vm5681_vm4, %v926_v60, %v957_v35 }
 0x11a   : > { %v911_v26 = vpop.permute.xlu0 %910  ;;  %1719 = vmatprep.subr.mxu0 %v963_v32 }
 0x11b   : > { %v4215_v12 = vpop.permute.xlu1 %753  ;;  %v919_v43 = vsel %vm5680_vm13, %v911_v26, %v913_v38  ;;  %vm728_vm13 = vmand %vm4158_vm12, %vm5685_vm9  ;;  %vm5696_vm9 = vcmask 1039360  }
 0x11c   : > { %v925_v4 = vsel %vm903_vm10, %v919_v43, 0.0  ;;  %vm4245_vm10 = vcmp.eq.s32.totalorder %v842_v30, 1  ;;  %v731_v11 = vsel %vm728_vm13, 1, %v5550_v6  ;;  %vm807_vm13 = vcmp.eq.s32.totalorder %v798_v47, 1 }
 0x11d   : > { %v962_v50 = vsel %vm5681_vm4, %v925_v4, %v956_v54  ;;  %v866_v60 = vsel %vm4245_vm10, %v860_v58, 0.0  ;;  %v737_v54 = vrot.slane %v731_v11, %v3318_v5  ;;  %vm5698_vm10 = vmmov %vm5697_vm2 }
 0x11e   : > { %v1057_v38 = vpop.permute.xlu0 %1056  ;;  %1720 = vmatpush1.msra.mxu0 %v962_v50  ;;  %v872_v27 = vrot.slane %v866_v60, 4 }
 0x11f   : > { %v817_v37 = vpop.permute.xlu1 %816  ;;  %v1061_v59 = vsel %vm5684_vm6, %v4066_v63, %v1057_v38  ;;  %vm5695_vm6 = vcmask 580608  }
 0x120   : > { %v1067_v63 = vsel %vm4084_vm5, %v1061_v59, 0.0 }
 0x122   : > { %v4264_v41 = vpop.permute.xlu0 %755 }
 0x123   : > { %v1077_v45 = vpop.permute.xlu1 %1076  ;;  %v761_v53 = vsel %vm5696_vm9, %v4215_v12, %v4264_v41 }
 0x124   : > { %v1080_v49 = vsel %vm5690_vm14, %v4082_v15, %v1077_v45  ;;  %v1016_v15 = vsel %vm5695_vm6, %v4063_v36, %v1012_v39  ;;  %v767_v0 = vsel %vm4266_vm3, %v761_v53, 0.0  ;;  %v871_v36 = vrot.slane %v865_v13, 4  ;;  %vm5699_vm14 = vmmov %vm5681_vm4 }
 0x125   : > { %v1086_v35 = vsel %vm5681_vm4, %v1067_v63, %v1080_v49  ;;  %v1022_v39 = vsel %vm4113_vm15, %v1016_v15, 0.0  ;;  %v773_v30 = vrot.slane %v767_v0, 4  ;;  %vm5701_vm3 = vcmask 588800   ;;  %vm5702_vm6 = vmmov %vm5696_vm9  ;;  %v3152_v63 = vld [vmem:[#allocation2 + $0x4] sm:$0xff] }
 0x126   : > { %3057 = vmatpush3.msra.mxu1 %v1086_v35  ;;  %v4288_v62 = vpop.permute.xlu0 %818  ;;  %v1028_v14 = vrot.slane %v1022_v39, 4  ;;  %vm746_vm4 = vcmp.eq.s32.totalorder %v737_v54, 1  ;;  %vm5703_vm9 = vmmov %vm5700_vm11 }
 0x127   : > { %v815_v32 = vpop.permute.xlu1 %814  ;;  %3058 = vmatprep.subr.mxu1 %v3193_v3  ;;  %v824_v4 = vsel %vm5698_vm10, %v817_v37, %v4288_v62  ;;  %v779_v45 = vsel %vm5703_vm9, %v725_v40, %v773_v30 }
 0x128   : > { %v823_v26 = vsel %vm5697_vm2, %v815_v32, %v817_v37  ;;  %v830_v50 = vsel %vm808_vm7, %v824_v4, 0.0  ;;  %vm5705_vm2 = vcmp.lt.s32.totalorder %v3517_v29, 56  ;;  %vm5708_vm7 = vmmov %vm5703_vm9 }
 0x129   : > { %v829_v43 = vsel %vm807_vm13, %v823_v26, 0.0  ;;  %v878_v59 = vsel %vm5700_vm11, %v830_v50, %v872_v27  ;;  %vm5704_vm13 = vmmov %vm5703_vm9  ;;  %vm5712_vm9 = vcmp.ge.s32.totalorder %v3517_v29, 8 }
 0x12a   : > { %v877_v38 = vsel %vm5699_vm14, %v829_v43, %v871_v36  ;;  %v752_v18 = vpop.permute.xlu0 %751  ;;  %1721 = vmatprep.subr.mxu0 %v878_v59  ;;  %vm4315_vm10 = vmand %vm3386_vm1, %vm5705_vm2  ;;  %vm5709_vm14 = vcmp.lt.s32.totalorder %v3528_v34, 7 }
 0x12b   : > { %v987_v31 = vpop.permute.xlu1 %986  ;;  %v760_v61 = vsel %vm5702_vm6, %v752_v18, %v4215_v12  ;;  %1722 = vmatpush1.msra.mxu0 %v877_v38  ;;  %vm887_vm11 = vmand %vm4315_vm10, %vm5709_vm14  ;;  %vm5711_vm6 = vcmask 596992   ;;  %vm5716_vm14 = vnez %v5679_v7 }
 0x12c   : > { %v991_v44 = vsel %vm5701_vm3, %v4130_v46, %v987_v31  ;;  %v766_v58 = vsel %vm746_vm4, %v760_v61, 0.0  ;;  %1723 = vmatprep.subr.mxu0 %v779_v45  ;;  %v724_v46 = vsel %vm4158_vm12, %v3152_v63, 0.0  ;;  %v890_v13 = vsel %vm887_vm11, 1, %v5550_v6 }
 0x12d   : > { %v997_v37 = vsel %vm4125_vm8, %v991_v44, 0.0  ;;  %v772_v47 = vrot.slane %v766_v58, 4  ;;  %vm5710_vm3 = vcmp.ge.s32.totalorder %v3528_v34, 1  ;;  %v902_v0 = vrot.slane %v890_v13, %v3318_v5 }
 0x12e   : > { %v1034_v21 = vsel %vm5704_vm13, %v997_v37, %v1028_v14  ;;  %v942_v9 = vpop.permute.xlu0 %941  ;;  %vm660_vm4 = vmand %vm3379_vm0, %vm5710_vm3  ;;  %vm5717_vm11 = vcmp.lt.s32.totalorder %v3528_v34, 7  ;;  %vm5819_vm8 = vcmask 990208  }
 0x12f   : > { %3059 = vmatpush3.msra.mxu1 %v1034_v21  ;;  %v4308_v49 = vpop.permute.xlu1 %684  ;;  %v778_v51 = vsel %vm5708_vm7, %v724_v46, %v772_v47  ;;  %v946_v53 = vsel %vm5711_vm6, %v4117_v52, %v942_v9  ;;  %vm4337_vm13 = vmand %vm3379_vm0, %vm5712_vm9  ;;  %v663_v52 = vsel %vm660_vm4, 1, %v5550_v6  ;;  %vm5721_vm4 = vcmask 973824  }
 0x130   : > { %3060 = vmatprep.subr.mxu1 %v3193_v3  ;;  %1724 = vmatpush1.msra.mxu0 %v778_v51  ;;  %vm5715_vm2 = vmmov %vm5710_vm3  ;;  %v952_v32 = vsel %vm5716_vm14, %v946_v53, 0.0  ;;  %v672_v27 = vrot.slane %v663_v52, %v3318_v5  ;;  %v563_v59 = vsel %vm4337_vm13, 1, %v5550_v6 }
 0x131   : > { %vm659_vm7 = vmand %vm4158_vm12, %vm5715_vm2  ;;  %v958_v54 = vrot.slane %v952_v32, 4  ;;  %v572_v47 = vrot.slane %v563_v59, %v3318_v5 }
 0x132   : > { %v683_v35 = vpop.permute.xlu0 %682  ;;  %vm617_vm0 = vmand %vm4337_vm13, %vm5717_vm11  ;;  %v662_v36 = vsel %vm659_vm7, 1, %v5550_v6  ;;  %vm5723_vm7 = vcmask 7168  }
 0x133   : > { %v857_v11 = vpop.permute.xlu1 %856  ;;  %vm5718_vm3 = vmmov %vm5712_vm9  ;;  %vm905_vm9 = vcmp.eq.s32.totalorder %v902_v0, 1  ;;  %v620_v4 = vsel %vm617_vm0, 1, %v5550_v6  ;;  %v668_v50 = vrot.slane %v662_v36, %v3318_v5  ;;  %v690_v38 = vsel %vm5723_vm7, %v683_v35, %v4308_v49 }
 0x134   : > { %vm4357_vm6 = vmand %vm4158_vm12, %vm5718_vm3  ;;  %vm4383_vm0 = vcmp.eq.s32.totalorder %v672_v27, 1  ;;  %v629_v44 = vrot.slane %v620_v4, %v3318_v5 }
 0x135   : > { %vm5722_vm2 = vmmov %vm5717_vm11  ;;  %vm5724_vm11 = vcmask 1043456   ;;  %v696_v37 = vsel %vm4383_vm0, %v690_v38, 0.0  ;;  %vm4400_vm7 = vcmp.eq.s32.totalorder %v668_v50, 1  ;;  %v562_v63 = vsel %vm4357_vm6, 1, %v5550_v6 }
 0x136   : > { %v681_v60 = vpop.permute.xlu0 %680  ;;  %vm616_vm12 = vmand %vm4357_vm6, %vm5722_vm2  ;;  %v568_v32 = vrot.slane %v562_v63, %v3318_v5 }
 0x137   : > { %v4329_v15 = vpop.permute.xlu1 %582  ;;  %vm5725_vm3 = vmmov %vm5722_vm2  ;;  %v619_v18 = vsel %vm616_vm12, 1, %v5550_v6 }
 0x138   : > { %v625_v12 = vrot.slane %v619_v18, %v3318_v5 }
 0x13a   : > { %v917_v39 = vpop.permute.xlu0 %916 }
 0x13b   : > { %v644_v16 = vpop.permute.xlu1 %643  ;;  %v921_v43 = vsel %vm5721_vm4, %v4204_v10, %v917_v39  ;;  %v834_v10 = vsel %vm4315_vm10, 1, %v5550_v6  ;;  %vm5728_vm4 = vcmp.ge.s32.totalorder %v3528_v34, 1 }
 0x13c   : > { %v927_v30 = vsel %vm905_vm9, %v921_v43, 0.0  ;;  %vm730_vm9 = vmand %vm3386_vm1, %vm5725_vm3  ;;  %v846_v46 = vrot.slane %v834_v10, %v3318_v5  ;;  %vm635_vm3 = vcmp.eq.s32.totalorder %v629_v44, 1 }
 0x13d   : > { %v964_v31 = vsel %vm5724_vm11, %v927_v30, %v958_v54  ;;  %vm791_vm2 = vmand %vm4315_vm10, %vm5728_vm4  ;;  %v733_v61 = vsel %vm730_vm9, 1, %v5550_v6  ;;  %vm5731_vm11 = vcmask 7168   ;;  %vm5733_vm9 = vcmask 56320  }
 0x13e   : > { %3061 = vmatpush3.msra.mxu1 %v964_v31  ;;  %v4381_v40 = vpop.permute.xlu0 %584  ;;  %v689_v58 = vsel %vm5731_vm11, %v681_v60, %v683_v35  ;;  %vm5732_vm10 = vmmov %vm5728_vm4  ;;  %v794_v51 = vsel %vm791_vm2, 1, %v5550_v6  ;;  %v702_v35 = vrot.slane %v696_v37, 4  ;;  %v745_v53 = vrot.slane %v733_v61, %v3318_v5 }
 0x13f   : > { %v581_v56 = vpop.permute.xlu1 %580  ;;  %3062 = vmatprep.subr.mxu1 %v3193_v3  ;;  %vm519_vm12 = vmand %vm4357_vm6, %vm5732_vm10  ;;  %v695_v60 = vsel %vm4400_vm7, %v689_v58, 0.0  ;;  %vm5736_vm2 = vcmask 1043456   ;;  %v806_v54 = vrot.slane %v794_v51, %v3318_v5  ;;  %vm5737_vm11 = vcmask 1039360   ;;  %v714_v58 = vld [vmem:[#allocation2 + $0xc] sm:$0xf] }
 0x140   : > { %vm5734_vm0 = vmmov %vm5728_vm4  ;;  %v522_v26 = vsel %vm519_vm12, 1, %v5550_v6  ;;  %vm5735_vm4 = vcmask 982016   ;;  %vm4439_vm7 = vcmp.eq.s32.totalorder %v572_v47, 1  ;;  %vm4443_vm10 = vcmp.eq.s32.totalorder %v625_v12, 1 }
 0x141   : > { %vm520_vm6 = vmand %vm4337_vm13, %vm5734_vm0  ;;  %v861_v36 = vsel %vm5735_vm4, %v4191_v48, %v857_v11  ;;  %vm4435_vm13 = vcmp.eq.s32.totalorder %v846_v46, 1  ;;  %v701_v4 = vrot.slane %v695_v60, 4  ;;  %v528_v31 = vrot.slane %v522_v26, %v3318_v5 }
 0x142   : > { %v4414_v9 = vpop.permute.xlu0 %645  ;;  %v523_v11 = vsel %vm520_vm6, 1, %v5550_v6  ;;  %vm5744_vm12 = vmmov %vm5734_vm0  ;;  %vm4457_vm0 = vcmp.eq.s32.totalorder %v745_v53, 1  ;;  %vm5749_vm4 = vcmp.ge.s32.totalorder %v3517_v29, 8  ;;  %v867_v14 = vsel %vm4435_vm13, %v861_v36, 0.0 }
 0x143   : > { %v758_v45 = vpop.permute.xlu1 %757  ;;  %v651_v13 = vsel %vm5733_vm9, %v644_v16, %v4414_v9  ;;  %vm4466_vm6 = vmand %vm3386_vm1, %vm5749_vm4  ;;  %vm5758_vm13 = vcmask 1043456   ;;  %v532_v63 = vrot.slane %v523_v11, %v3318_v5  ;;  %v873_v12 = vrot.slane %v867_v14, 4 }
 0x144   : > { %v657_v0 = vsel %vm635_vm3, %v651_v13, 0.0  ;;  %v762_v57 = vsel %vm5737_vm11, %v4264_v41, %v758_v45  ;;  %vm4452_vm3 = vmand %vm3386_vm1, %vm5744_vm12  ;;  %vm4481_vm12 = vcmp.eq.s32.totalorder %v568_v32, 1  ;;  %v564_v47 = vsel %vm4466_vm6, 1, %v5550_v6 }
 0x145   : > { %v708_v39 = vsel %vm5736_vm2, %v657_v0, %v702_v35  ;;  %vm5752_vm2 = vcmask 64512   ;;  %v768_v44 = vsel %vm4457_vm0, %v762_v57, 0.0  ;;  %v664_v46 = vsel %vm4452_vm3, 1, %v5550_v6 }
 0x146   : > { %v642_v48 = vpop.permute.xlu0 %641  ;;  %1725 = vmatprep.subr.mxu0 %v708_v39  ;;  %v589_v59 = vsel %vm5752_vm2, %v581_v56, %v4329_v15  ;;  %vm5753_vm11 = vmmov %vm5752_vm2  ;;  %vm5760_vm0 = vcmask 990208   ;;  %v774_v13 = vrot.slane %v768_v44, 4  ;;  %vm5761_vm4 = vcmp.ge.s32.totalorder %v3528_v34, 1 }
 0x147   : > { %v547_v52 = vpop.permute.xlu1 %546  ;;  %v650_v50 = vsel %vm5733_vm9, %v642_v48, %v644_v16  ;;  %v590_v37 = vsel %vm5753_vm11, %v4329_v15, %v4381_v40  ;;  %vm4485_vm9 = vcmp.eq.s32.totalorder %v806_v54, 1  ;;  %v595_v51 = vsel %vm4481_vm12, %v589_v59, 0.0  ;;  %vm521_vm2 = vmand %vm4466_vm6, %vm5761_vm4 }
 0x148   : > { %v656_v16 = vsel %vm4443_vm10, %v650_v50, 0.0  ;;  %vm5759_vm10 = vcmask 72704   ;;  %v596_v53 = vsel %vm4439_vm7, %v590_v37, 0.0  ;;  %v726_v0 = vsel %vm3386_vm1, %v714_v58, 0.0  ;;  %vm5764_vm11 = vmmov %vm5758_vm13 }
 0x149   : > { %v707_v21 = vsel %vm5758_vm13, %v656_v16, %v701_v4  ;;  %vm4512_vm3 = vcmp.eq.s32.totalorder %v528_v31, 1  ;;  %vm5765_vm12 = vcmp.lt.s32.totalorder %v3528_v34, 7  ;;  %v601_v39 = vrot.slane %v595_v51, 4  ;;  %vm5766_vm1 = vmmov %vm5759_vm10  ;;  %v1644_v31 = vld [vmem:[%s5474_s4] sm:$0x3] }
 0x14a   : > { %v821_v56 = vpop.permute.xlu0 %820  ;;  %1726 = vmatpush1.msra.mxu0 %v707_v21  ;;  %vm618_vm7 = vmand %vm4466_vm6, %vm5765_vm12  ;;  %v676_v17 = vrot.slane %v664_v46, %v3318_v5  ;;  %v524_v57 = vsel %vm521_vm2, 1, %v5550_v6  ;;  %v602_v43 = vrot.slane %v596_v53, 4  ;;  %v576_v48 = vrot.slane %v564_v47, %v3318_v5 }
 0x14b   : > { %v545_v18 = vpop.permute.xlu1 %544  ;;  %v825_v35 = vsel %vm5760_vm0, %v4288_v62, %v821_v56  ;;  %vm5767_vm13 = vmmov %vm5764_vm11  ;;  %v621_v41 = vsel %vm618_vm7, 1, %v5550_v6  ;;  %vm5770_vm0 = vcmask 64512   ;;  %vm1693_vm4 = vcmask 916480  }
 0x14c   : > { %v553_v15 = vsel %vm5759_vm10, %v545_v18, %v547_v52  ;;  %v831_v60 = vsel %vm4485_vm9, %v825_v35, 0.0  ;;  %vm538_vm9 = vcmp.eq.s32.totalorder %v532_v63, 1  ;;  %v780_v30 = vsel %vm5767_vm13, %v726_v0, %v774_v13  ;;  %vm5768_vm6 = vmmov %vm5764_vm11 }
 0x14d   : > { %v879_v26 = vsel %vm5764_vm11, %v831_v60, %v873_v12  ;;  %v559_v36 = vsel %vm4512_vm3, %v553_v15, 0.0  ;;  %vm5769_vm10 = vmmov %vm5768_vm6  ;;  %v536_v10 = vrot.slane %v524_v57, %v3318_v5  ;;  %vm679_vm2 = vcmp.eq.s32.totalorder %v676_v17, 1 }
 0x14e   : > { %3063 = vmatpush3.msra.mxu1 %v879_v26  ;;  %v549_v54 = vpop.permute.xlu0 %548  ;;  %v608_v4 = vsel %vm5768_vm6, %v559_v36, %v601_v39  ;;  %vm5771_vm3 = vcmask 7168   ;;  %v633_v59 = vrot.slane %v621_v41, %v3318_v5  ;;  %vm579_vm11 = vcmp.eq.s32.totalorder %v576_v48, 1  ;;  %vm5772_vm12 = vmmov %vm5766_vm1 }
 0x14f   : > { %v587_v62 = vpop.permute.xlu1 %586  ;;  %v554_v27 = vsel %vm5766_vm1, %v547_v52, %v549_v54  ;;  %3064 = vmatprep.subr.mxu1 %v3193_v3  ;;  %vm539_vm7 = vcmp.eq.s32.totalorder %v536_v10, 1  ;;  %vm5773_vm1 = vcmask 56320   ;;  %vm5774_vm13 = vmmov %vm5768_vm6  ;;  %v3213_v46 = vmov 1983009808  }
 0x150   : > { %v560_v11 = vsel %vm538_vm9, %v554_v27, 0.0  ;;  %3065 = vmatpush3.msra.mxu1 %v780_v30  ;;  %v591_v52 = vsel %vm5770_vm0, %v4381_v40, %v587_v62  ;;  %vm636_vm9 = vcmp.eq.s32.totalorder %v633_v59, 1  ;;  %v1845_v15 = vunpack.c.l.s4 %v3213_v46 }
 0x151   : > { %v609_v38 = vsel %vm5769_vm10, %v560_v11, %v602_v43  ;;  %3066 = vmatprep.subr.mxu1 %v3193_v3  ;;  %v597_v18 = vsel %vm579_vm11, %v591_v52, 0.0  ;;  %vm4727_vm10 = vcmp.lt.s32.totalorder %v3298_v1, %v511_v22  ;;  %vm5787_vm0 = vcmp.ge.s32.totalorder %v3528_v34, 1 }
 0x152   : > { %v687_v14 = vpop.permute.xlu0 %686  ;;  %1727 = vmatprep.subr.mxu0 %v609_v38  ;;  %v603_v21 = vrot.slane %v597_v18, 4  ;;  %v1846_v35 = vunpack.c.0.s8 %v1845_v15 }
 0x153   : > { %v551_v50 = vpop.permute.xlu1 %550  ;;  %v691_v16 = vsel %vm5771_vm3, %v4308_v49, %v687_v14  ;;  %1728 = vmatpush1.msra.mxu0 %v608_v4 }
 0x154   : > { %v555_v44 = vsel %vm5772_vm12, %v549_v54, %v551_v50  ;;  %v697_v40 = vsel %vm679_vm2, %v691_v16, 0.0  ;;  %3007 = vmatmul.mubr.msk.f32.vlgmr.msra.gmra.mxu0 %vm1693_vm4, %v1644_v31  ;;  %v4552_v53 = vsub.s32 %v1846_v35, %v3300_v2  ;;  %vm5788_vm2 = vcmp.lt.s32.totalorder %v3517_v29, 56 }
 0x155   : > { %2832 = vmatprep.mubr.f32.mxu0 %v3193_v3  ;;  %v561_v61 = vsel %vm539_vm7, %v555_v44, 0.0  ;;  %v703_v45 = vrot.slane %v697_v40, 4  ;;  %vm2629_vm3 = vmand %vm4727_vm10, %vm5788_vm2  ;;  %vm5790_vm12 = vnez %v5559_v23 }
 0x156   : > { %v648_v37 = vpop.permute.xlu0 %647  ;;  %v610_v63 = vsel %vm5768_vm6, %v561_v61, %v603_v21  ;;  %vm5789_vm11 = vmmov %vm5788_vm2 }
 0x157   : > { %v652_v49 = vsel %vm5773_vm1, %v4414_v9, %v648_v37  ;;  %vm2630_vm7 = vmand %vm5790_vm12, %vm5789_vm11  ;;  %vm5795_vm11 = vcmask 7168  }
 0x158   : > { %v658_v58 = vsel %vm636_vm9, %v652_v49, 0.0  ;;  %vm5791_vm9 = vcmp.lt.s32.totalorder %v3528_v34, 7 }
 0x159   : > { %v709_v56 = vsel %vm5774_vm13, %v658_v58, %v703_v45  ;;  %vm2698_vm1 = vmand %vm2629_vm3, %vm5791_vm9 }
 0x15a   : > { %3067 = vmatpush3.msra.mxu1 %v709_v56  ;;  %vm5792_vm13 = vmmov %vm5791_vm9 }
 0x15b   : > { %3068 = vmatprep.subr.mxu1 %v3193_v3  ;;  %vm2699_vm6 = vmand %vm2630_vm7, %vm5792_vm13 }
 0x15c   : > { %3069 = vmatpush3.msra.mxu1 %v610_v63  ;;  %vm5796_vm9 = vmmov %vm5787_vm0 }
 0x15d   : > { %3071 = vmatmul.mubr.msk.f32.vlgmr.msra.gmra.mxu1 %vm1693_vm4, %v1644_v31  ;;  %vm2514_vm4 = vmand %vm4727_vm10, %vm5787_vm0 }
 0x15e   : > { %vm2632_vm13 = vmand %vm2630_vm7, %vm5796_vm9 }
 0x163   : > { %v1691_v12 = vpop.permute.xlu0 %1690 }
 0x214   : > { %v1763_v47 = vpop.f32.mrf.mxu0 }
 0x215   : > { %v1764_v13 = vadd.f32 %v1763_v47, %v1691_v12 }
 0x216   : > { %v1765_v51 = vpop.f32.mrf.mxu0 }
 0x217   : > { %v1766_v9 = vadd.f32 %v1765_v51, %v1691_v12 }
 0x219   : > { %v1843_v60 = vcombine.low %v1764_v13, %v1766_v9 }
 0x21b   : > { %v1850_v3 = vrot.slane %v1843_v60, %v4552_v53 }
 0x21d   : > { %v1834_v0 = vpop.f32.mrf.mxu1 }
 0x21e   : > { %v1835_v32 = vadd.f32 %v1834_v0, %v1691_v12 }
 0x21f   : > { %v3072_v62 = vpop.f32.mrf.mxu1 }
 0x220   : > { %v1857_v26 = vrot.slane %v1835_v32, %v4552_v53 }
 0x222   : > { %v1858_v36 = vcombine.low %v1850_v3, %v1857_v26 }
 0x224   : > { %1860 = vst [vmem:[#allocation4 + $0x2] sm:$0x3f] %v1858_v36 }
 0x22b   : > { %v2628_v39 = vld [vmem:[#allocation4 + $0x4] sm:$0x3f] }
 0x22c   : > { %v2470_v54 = vld [vmem:[#allocation4 + $0x2] sm:$0x3f]  ;;  %v2653_v17 = vrot.slane %v2628_v39, %v4552_v53  ;;  %v2646_v21 = vcombine.high %v2628_v39, %v2628_v39 }
 0x22d   : > { %v2493_v57 = vrot.slane %v2470_v54, %v4552_v53  ;;  %v2257_v2 = vld [vmem:[#allocation4 + $0x2] sm:$0x3f]  ;;  %v2486_v63 = vcombine.high %v2470_v54, %v2470_v54 }
 0x22e   : > { %2686 = vrot.lane.b32.xlu0 %v2653_v17, %s5533_s26  ;;  %v2151_v43 = vld [vmem:[#allocation4 + $0x2] sm:$0x3f]  ;;  %v2259_v11 = vcombine.high %v2257_v2, %v2257_v2  ;;  %v2311_v52 = vcombine.low %v2257_v2, %v2257_v2  ;;  %v2266_v18 = vrot.slane %v2257_v2, %v4552_v53  ;;  %s5777_s26 = smov 57   ;;  %v2661_v49 = vcombine.high %v2653_v17, %v2653_v17 }
 0x22f   : > { %2528 = vrot.lane.b32.xlu1 %v2493_v57, %s5595_s15  ;;  %v2029_v27 = vld [vmem:[#allocation4 + $0x2] sm:$0x3f]  ;;  %v2167_v41 = vcombine.high %v2151_v43, %v2151_v43  ;;  %v2174_v37 = vrot.slane %v2151_v43, %v4552_v53  ;;  %v2660_v58 = vrot.slane %v2646_v21, %v4552_v53  ;;  %v2501_v56 = vcombine.high %v2493_v57, %v2493_v57 }
 0x230   : > { %v1861_v30 = vld [vmem:[#allocation4] sm:$0x3f]  ;;  %v2045_v4 = vcombine.high %v2029_v27, %v2029_v27  ;;  %v4563_v50 = vrot.slane %v2259_v11, %v4552_v53  ;;  %v4573_v59 = vrot.slane %v2311_v52, %v4552_v53  ;;  %v2052_v61 = vrot.slane %v2029_v27, %v4552_v53  ;;  %v2759_v52 = vld [vmem:[%s5477_s7] sm:$0xf] }
 0x231   : > { %v2350_v48 = vld [vmem:[#allocation4 + $0x2] sm:$0x3f]  ;;  %v4566_v38 = vrot.slane %v2167_v41, %v4552_v53  ;;  %v1879_v31 = vcombine.high %v1861_v30, %v1861_v30  ;;  %v4599_v45 = vrot.slane %v1861_v30, %v4552_v53  ;;  %v2500_v46 = vrot.slane %v2486_v63, %v4552_v53 }
 0x232   : > { %2712 = vrot.lane.b32.xlu0 %v2653_v17, %s5541_s25  ;;  %v2359_v10 = vrot.slane %v2350_v48, %v4552_v53  ;;  %v4570_v14 = vrot.slane %v2045_v4, %v4552_v53  ;;  %v2558_v16 = vld [vmem:[#allocation4 + $0x4] sm:$0x3f]  ;;  %v2352_v15 = vcombine.high %v2350_v48, %v2350_v48  ;;  %v2274_v9 = vcombine.high %v2266_v18, %v2266_v18 }
 0x233   : > { %2662 = vrot.lane.b32.xlu1 %v2653_v17, %s5535_s12  ;;  %v4576_v44 = vrot.slane %v1879_v31, %v4552_v53  ;;  %v2581_v40 = vrot.slane %v2558_v16, %v4552_v53  ;;  %s5778_s12 = smov 72   ;;  %v2574_v51 = vcombine.high %v2558_v16, %v2558_v16  ;;  %v2060_v60 = vcombine.high %v2052_v61, %v2052_v61 }
 0x234   : > { %v2366_v47 = vrot.slane %v2352_v15, %v4552_v53  ;;  %v2367_v12 = vcombine.high %v2359_v10, %v2359_v10  ;;  %v1894_v17 = vcombine.high %v4599_v45, %v4599_v45  ;;  %v2319_v30 = vcombine.high %v4573_v59, %v4573_v59 }
 0x235   : > { %v2588_v35 = vrot.slane %v2574_v51, %v4552_v53  ;;  %v2589_v13 = vcombine.high %v2581_v40, %v2581_v40  ;;  %v2182_v53 = vcombine.high %v2174_v37, %v2174_v37 }
 0x236   : > { %2380 = vrot.lane.b32.xlu0 %v2359_v10, %s5775_s17 }
 0x237   : > { %2502 = vrot.lane.b32.xlu1 %v2493_v57, %s5611_s19 }
 0x23a   : > { %2590 = vrot.lane.b32.xlu0 %v2581_v40, %s3198_s13 }
 0x23b   : > { %2408 = vrot.lane.b32.xlu1 %v2359_v10, %s5627_s18 }
 0x23e   : > { %2368 = vrot.lane.b32.xlu0 %v2359_v10, %s5537_s28  ;;  %s5779_s28 = smov 121  }
 0x23f   : > { %2432 = vrot.lane.b32.xlu1 %v2359_v10, %s5607_s23 }
 0x242   : > { %2287 = vrot.lane.b32.xlu0 %v2266_v18, %s3207_s16 }
 0x243   : > { %2195 = vrot.lane.b32.xlu1 %v2174_v37, %s5539_s27  ;;  %s5781_s27 = smov 120  }
 0x246   : > { %2275 = vrot.lane.b32.xlu0 %v2266_v18, %s5776_s24 }
 0x247   : > { %2299 = vrot.lane.b32.xlu1 %v2266_v18, %s5777_s26 }
 0x24a   : > { %2207 = vrot.lane.b32.xlu0 %v2174_v37, %s5778_s12 }
 0x24b   : > { %2324 = vrot.lane.b32.xlu1 %v2266_v18, %s5562_s22 }
 0x24e   : > { %2061 = vrot.lane.b32.xlu0 %v2052_v61, %s3198_s13 }
 0x24f   : > { %2183 = vrot.lane.b32.xlu1 %v2174_v37, %s5541_s25 }
 0x252   : > { %2219 = vrot.lane.b32.xlu0 %v2174_v37, %s5780_s0  ;;  %v2674_v37 = vsel %vm2629_vm3, 1, %v5550_v6 }
 0x253   : > { %2089 = vrot.lane.b32.xlu1 %v2052_v61, %s5779_s28 }
 0x256   : > { %1919 = vrot.lane.b32.xlu0 %v4599_v45, %s5607_s23 }
 0x257   : > { %2113 = vrot.lane.b32.xlu1 %v2052_v61, %s5781_s27 }
 0x25a   : > { %1945 = vrot.lane.b32.xlu0 %v4599_v45, %s5611_s19 }
 0x25b   : > { %2688 = vrot.lane.b32.xlu1 %v2661_v49, %s5781_s27 }
 0x25e   : > { %2530 = vrot.lane.b32.xlu0 %v2501_v56, %s5595_s15 }
 0x25f   : > { %2690 = vrot.lane.b32.xlu1 %v2660_v58, %s5781_s27 }
 0x262   : > { %2716 = vrot.lane.b32.xlu0 %v2660_v58, %s5541_s25 }
 0x263   : > { %2532 = vrot.lane.b32.xlu1 %v2500_v46, %s5595_s15 }
 0x266   : > { %2664 = vrot.lane.b32.xlu0 %v2661_v49, %s5779_s28 }
 0x267   : > { %2714 = vrot.lane.b32.xlu1 %v2661_v49, %s5541_s25  ;;  %s5782_s25 = smov 56   ;;  %v2675_v49 = vsel %vm2630_vm7, 1, %v5550_v6  ;;  %vm5800_vm7 = vcmask 982016  }
 0x26a   : > { %2384 = vrot.lane.b32.xlu0 %v2366_v47, %s5775_s17 }
 0x26b   : > { %2666 = vrot.lane.b32.xlu1 %v2660_v58, %s5779_s28 }
 0x26e   : > { %2506 = vrot.lane.b32.xlu0 %v2500_v46, %s5611_s19  ;;  %v2701_v46 = vsel %vm2699_vm6, 1, %v5550_v6 }
 0x26f   : > { %2382 = vrot.lane.b32.xlu1 %v2367_v12, %s5775_s17  ;;  %s5783_s17 = smov 73  }
 0x272   : > { %2594 = vrot.lane.b32.xlu0 %v2588_v35, %s3198_s13 }
 0x273   : > { %2504 = vrot.lane.b32.xlu1 %v2501_v56, %s5611_s19  ;;  %v2700_v56 = vsel %vm2698_vm1, 1, %v5550_v6 }
 0x276   : > { %2412 = vrot.lane.b32.xlu0 %v2366_v47, %s5627_s18 }
 0x277   : > { %2592 = vrot.lane.b32.xlu1 %v2589_v13, %s3198_s13  ;;  %v2705_v13 = vrot.slane %v2700_v56, %v3318_v5 }
 0x27a   : > { %2372 = vrot.lane.b32.xlu0 %v2366_v47, %s5782_s25 }
 0x27b   : > { %2410 = vrot.lane.b32.xlu1 %v2367_v12, %s5627_s18 }
 0x27e   : > { %2434 = vrot.lane.b32.xlu0 %v2367_v12, %s5607_s23 }
 0x27f   : > { %2370 = vrot.lane.b32.xlu1 %v2367_v12, %s5782_s25  ;;  %s5784_s25 = smov 119   ;;  %v2683_v12 = vrot.slane %v2675_v49, %v3318_v5 }
 0x282   : > { %2289 = vrot.lane.b32.xlu0 %v2274_v9, %s3207_s16 }
 0x283   : > { %2436 = vrot.lane.b32.xlu1 %v2366_v47, %s5607_s23  ;;  %v2679_v47 = vrot.slane %v2674_v37, %v3318_v5 }
 0x286   : > { %2197 = vrot.lane.b32.xlu0 %v2182_v53, %s5783_s17 }
 0x287   : > { %2291 = vrot.lane.b32.xlu1 %v4563_v50, %s3207_s16 }
 0x28a   : > { %2277 = vrot.lane.b32.xlu0 %v2274_v9, %s5776_s24 }
 0x28b   : > { %2199 = vrot.lane.b32.xlu1 %v4566_v38, %s5783_s17 }
 0x28e   : > { %2303 = vrot.lane.b32.xlu0 %v4563_v50, %s5777_s26 }
 0x28f   : > { %2279 = vrot.lane.b32.xlu1 %v4563_v50, %s5776_s24 }
 0x292   : > { %2209 = vrot.lane.b32.xlu0 %v2182_v53, %s5778_s12 }
 0x293   : > { %2301 = vrot.lane.b32.xlu1 %v2274_v9, %s5777_s26  ;;  %v2634_v9 = vsel %vm2632_vm13, 1, %v5550_v6  ;;  %vm4810_vm13 = vcmp.eq.s32.totalorder %v2679_v47, 1 }
 0x294   : > { %v2642_v49 = vrot.slane %v2634_v9, %v3318_v5 }
 0x296   : > { %2063 = vrot.lane.b32.xlu0 %v2060_v60, %s3198_s13 }
 0x297   : > { %2211 = vrot.lane.b32.xlu1 %v4566_v38, %s5778_s12 }
 0x29a   : > { %2185 = vrot.lane.b32.xlu0 %v2182_v53, %s5784_s25 }
 0x29b   : > { %2065 = vrot.lane.b32.xlu1 %v4570_v14, %s3198_s13 }
 0x29e   : > { %2223 = vrot.lane.b32.xlu0 %v4566_v38, %s5780_s0 }
 0x29f   : > { %2187 = vrot.lane.b32.xlu1 %v4566_v38, %s5784_s25 }
 0x2a0   : > { %v4653_v0 = vpop.permute.xlu0 %2686 }
 0x2a1   : > { %v2529_v32 = vpop.permute.xlu1 %2528 }
 0x2a2   : > { %2093 = vrot.lane.b32.xlu0 %v4570_v14, %s5779_s28 }
 0x2a3   : > { %2221 = vrot.lane.b32.xlu1 %v2182_v53, %s5780_s0 }
 0x2a4   : > { %v4658_v62 = vpop.permute.xlu0 %2712 }
 0x2a5   : > { %v4660_v3 = vpop.permute.xlu1 %2662 }
 0x2a6   : > { %1923 = vrot.lane.b32.xlu0 %v4576_v44, %s5607_s23 }
 0x2a7   : > { %2320 = vrot.lane.b32.xlu1 %v4573_v59, %s5562_s22 }
 0x2a8   : > { %v4668_v36 = vpop.permute.xlu0 %2380 }
 0x2a9   : > { %v4666_v26 = vpop.permute.xlu1 %2502 }
 0x2aa   : > { %2115 = vrot.lane.b32.xlu0 %v2060_v60, %s5781_s27 }
 0x2ab   : > { %2091 = vrot.lane.b32.xlu1 %v2060_v60, %s5779_s28 }
 0x2ac   : > { %v4674_v54 = vpop.permute.xlu0 %2590 }
 0x2ad   : > { %v4672_v39 = vpop.permute.xlu1 %2408 }
 0x2ae   : > { %1949 = vrot.lane.b32.xlu0 %v4576_v44, %s5611_s19 }
 0x2af   : > { %1921 = vrot.lane.b32.xlu1 %v1894_v17, %s5607_s23 }
 0x2b0   : > { %v4683_v2 = vpop.permute.xlu0 %2368 }
 0x2b1   : > { %v4681_v57 = vpop.permute.xlu1 %2432 }
 0x2b2   : > { %1897 = vrot.lane.b32.xlu0 %v1894_v17, %s5627_s18 }
 0x2b3   : > { %2117 = vrot.lane.b32.xlu1 %v4570_v14, %s5781_s27 }
 0x2b4   : > { %v4688_v43 = vpop.permute.xlu0 %2287 }
 0x2b5   : > { %v4690_v27 = vpop.permute.xlu1 %2195 }
 0x2b6   : > { %2322 = vrot.lane.b32.xlu0 %v2319_v30, %s5562_s22 }
 0x2b7   : > { %1947 = vrot.lane.b32.xlu1 %v1894_v17, %s5611_s19 }
 0x2b8   : > { %v4696_v48 = vpop.permute.xlu0 %2275 }
 0x2b9   : > { %v4698_v11 = vpop.permute.xlu1 %2299 }
 0x2ba   : > { %1975 = vrot.lane.b32.xlu0 %v4576_v44, %s5595_s15 }
 0x2bb   : > { %1899 = vrot.lane.b32.xlu1 %v4576_v44, %s5627_s18  ;;  %v2516_v44 = vsel %vm2514_vm4, 1, %v5550_v6  ;;  %vm2631_vm4 = vmand %vm2629_vm3, %vm5787_vm0  ;;  %vm5797_vm3 = vcmp.ge.s32.totalorder %v3517_v29, 8 }
 0x2bc   : > { %v4704_v41 = vpop.permute.xlu0 %2207  ;;  %v2521_v18 = vrot.slane %v2516_v44, %v3318_v5  ;;  %v2633_v15 = vsel %vm2631_vm4, 1, %v5550_v6  ;;  %vm4785_vm1 = vmand %vm4727_vm10, %vm5797_vm3 }
 0x2bd   : > { %v4706_v4 = vpop.permute.xlu1 %2324  ;;  %vm5801_vm6 = vmmov %vm5797_vm3  ;;  %vm4814_vm3 = vcmp.eq.s32.totalorder %v2683_v12, 1  ;;  %v2420_v23 = vsel %vm4785_vm1, 1, %v5550_v6 }
 0x2be   : > { %1971 = vrot.lane.b32.xlu0 %v4599_v45, %s5595_s15  ;;  %vm4761_vm2 = vcmp.eq.s32.totalorder %v2521_v18, 1  ;;  %vm4797_vm0 = vmand %vm5790_vm12, %vm5801_vm6  ;;  %vm5814_vm6 = vcmp.lt.s32.totalorder %v3528_v34, 7  ;;  %v2425_v53 = vrot.slane %v2420_v23, %v3318_v5 }
 0x2bf   : > { %1973 = vrot.lane.b32.xlu1 %v1894_v17, %s5595_s15  ;;  %v2638_v17 = vrot.slane %v2633_v15, %v3318_v5  ;;  %vm5804_vm4 = vmmov %vm5800_vm7 }
 0x2c0   : > { %v4713_v38 = vpop.permute.xlu0 %2061  ;;  %vm5820_vm5 = vmmov %vm5814_vm6 }
 0x2c1   : > { %v4711_v50 = vpop.permute.xlu1 %2183  ;;  %vm2472_vm14 = vmand %vm4797_vm0, %vm5820_vm5  ;;  %vm2644_vm5 = vcmp.eq.s32.totalorder %v2642_v49, 1 }
 0x2c2   : > { %v2474_v37 = vsel %vm2472_vm14, 1, %v5550_v6 }
 0x2c3   : > { %1895 = vrot.lane.b32.xlu1 %v4599_v45, %s5627_s18 }
 0x2c4   : > { %v4722_v10 = vpop.permute.xlu0 %2219 }
 0x2c5   : > { %v4720_v31 = vpop.permute.xlu1 %2089 }
 0x2c7   : > { %2762 = vperm.xlu1 %3135, %v2759_v52  }
 0x2c8   : > { %v4737_v59 = vpop.permute.xlu0 %1919 }
 0x2c9   : > { %v4735_v16 = vpop.permute.xlu1 %2113 }
 0x2cc   : > { %v4744_v40 = vpop.permute.xlu0 %1945 }
 0x2cd   : > { %v2689_v22 = vpop.permute.xlu1 %2688 }
 0x2ce   : > { %v2692_v60 = vsel %vm5800_vm7, %v4653_v0, %v2689_v22  ;;  %vm4818_vm7 = vcmp.eq.s32.totalorder %v2705_v13, 1 }
 0x2d0   : > { %v4756_v45 = vpop.permute.xlu0 %2530 }
 0x2d1   : > { %v2691_v61 = vpop.permute.xlu1 %2690  ;;  %v4767_v58 = vsel %vm5795_vm11, %v2529_v32, %v4756_v45  ;;  %v2709_v32 = vrot.slane %v2701_v46, %v3318_v5  ;;  %vm5805_vm11 = vmmov %vm5796_vm9  ;;  %v2696_v46 = vsel %vm4810_vm13, %v2692_v60, 0.0  ;;  %vm4850_vm13 = vcmp.eq.s32.totalorder %v2638_v17, 1 }
 0x2d2   : > { %v2538_v63 = vsel %vm4761_vm2, %v4767_v58, 0.0  ;;  %v2693_v52 = vsel %vm5804_vm4, %v2689_v22, %v2691_v61  ;;  %vm4806_vm9 = vmand %vm5790_vm12, %vm5805_vm11  ;;  %vm5817_vm11 = vcmask 973824   ;;  %v2726_v44 = vrot.slane %v2696_v46, 6 }
 0x2d3   : > { %vm4827_vm4 = vmand %vm4785_vm1, %vm5814_vm6  ;;  %v2697_v13 = vsel %vm4814_vm3, %v2693_v52, 0.0  ;;  %vm4844_vm6 = vcmp.eq.s32.totalorder %v2709_v32, 1  ;;  %v2517_v32 = vsel %vm4806_vm9, 1, %v5550_v6  ;;  %vm5825_vm3 = vcmp.lt.s32.totalorder %v3528_v34, 7 }
 0x2d4   : > { %v2717_v35 = vpop.permute.xlu0 %2716  ;;  %vm5818_vm15 = vmmov %vm5817_vm11  ;;  %v2473_v17 = vsel %vm4827_vm4, 1, %v5550_v6  ;;  %vm5549_vm9 = vcmask 1045504   ;;  %v2604_v14 = vrot.slane %v2538_v63, 6 }
 0x2d5   : > { %v2533_v51 = vpop.permute.xlu1 %2532  ;;  %vm5828_vm14 = vmmov %vm5825_vm3 }
 0x2d6   : > { %vm2560_vm4 = vmand %vm5790_vm12, %vm5828_vm14 }
 0x2d8   : > { %v2665_v61 = vpop.permute.xlu0 %2664 }
 0x2d9   : > { %v2715_v22 = vpop.permute.xlu1 %2714  ;;  %v2668_v12 = vsel %vm5819_vm8, %v4660_v3, %v2665_v61 }
 0x2da   : > { %v2718_v15 = vsel %vm5817_vm11, %v4658_v62, %v2715_v22  ;;  %v2719_v47 = vsel %vm5818_vm15, %v2715_v22, %v2717_v35  ;;  %vm2001_vm15 = vcmask 1041408   ;;  %v2672_v60 = vsel %vm4850_vm13, %v2668_v12, 0.0 }
 0x2db   : > { %v2722_v62 = vsel %vm4818_vm7, %v2718_v15, 0.0  ;;  %v2723_v3 = vsel %vm4844_vm6, %v2719_v47, 0.0  ;;  %v2727_v22 = vrot.slane %v2697_v13, 6  ;;  %vm4872_vm7 = vmand %vm4727_vm10, %vm5825_vm3  ;;  %v2736_v12 = vsel %vm2001_vm15, %v2672_v60, %v2726_v44 }
 0x2dc   : > { %v4861_v18 = vpop.permute.xlu0 %2384  ;;  %v2732_v15 = vrot.slane %v2722_v62, 4  ;;  %v2733_v46 = vrot.slane %v2723_v3, 4  ;;  %v2478_v13 = vrot.slane %v2473_v17, %v3318_v5  ;;  %vm5829_vm11 = vcmask 1043456  }
 0x2dd   : > { %v2667_v52 = vpop.permute.xlu1 %2666  ;;  %v2482_v3 = vrot.slane %v2474_v37, %v3318_v5  ;;  %v3010_v60 = vld.sshfl [vmem:[#allocation4 + $0x4] sm:$0x33 pattern:$0x76325410]  ;;  %vm5830_vm6 = vcmask 7168   ;;  %vm5831_vm13 = vmmov %vm5829_vm11  ;;  %v2562_v17 = vsel %vm2560_vm4, 1, %v5550_v6 }
 0x2de   : > { %v2669_v47 = vsel %vm5819_vm8, %v2665_v61, %v2667_v52  ;;  %v2525_v61 = vrot.slane %v2517_v32, %v3318_v5  ;;  %v2535_v44 = vsel %vm5830_vm6, %v4756_v45, %v2533_v51  ;;  %v2738_v52 = vsel %vm5831_vm13, %v2736_v12, %v2732_v15 }
 0x2df   : > { %v2673_v56 = vsel %vm2644_vm5, %v2669_v47, 0.0  ;;  %v2561_v32 = vsel %vm4872_vm7, 1, %v5550_v6  ;;  %vm5832_vm5 = vcmp.ge.s32.totalorder %v3528_v34, 1  ;;  %vm4903_vm14 = vcmp.eq.s32.totalorder %v2478_v13, 1 }
 0x2e0   : > { %v2737_v49 = vsel %vm2001_vm15, %v2673_v56, %v2727_v22  ;;  %v2507_v62 = vpop.permute.xlu0 %2506  ;;  %vm2394_vm8 = vmand %vm4785_vm1, %vm5832_vm5  ;;  %vm4899_vm3 = vcmp.eq.s32.totalorder %v2525_v61, 1  ;;  %v2553_v51 = vcombine.high %v3010_v60, %v3010_v60  ;;  %v2556_v22 = vsel %vm4727_vm10, %v3010_v60, 0.0 }
 0x2e1   : > { %v2383_v9 = vpop.permute.xlu1 %2382  ;;  %v2739_v35 = vsel %vm5829_vm11, %v2737_v49, %v2733_v46  ;;  %v2539_v15 = vsel %vm4899_vm3, %v2535_v44, 0.0  ;;  %vm4911_vm7 = vcmp.eq.s32.totalorder %v2482_v3, 1  ;;  %v2566_v12 = vrot.slane %v2561_v32, %v3318_v5  ;;  %vm5839_vm4 = vmmov %vm5832_vm5 }
 0x2e2   : > { %3025 = vmatprep.subr.msk.mxu0 %vm5549_vm9, %v2739_v35  ;;  %v2570_v56 = vrot.slane %v2562_v17, %v3318_v5  ;;  %vm2395_vm11 = vmand %vm4797_vm0, %vm5839_vm4  ;;  %vm5840_vm10 = vcmask 56320   ;;  %v2396_v13 = vsel %vm2394_vm8, 1, %v5550_v6  ;;  %v2610_v60 = vrot.slane %v2556_v22, 4 }
 0x2e3   : > { %3026 = vmatpush1.msk.msra.mxu0 %vm5549_vm9, %v2738_v52  ;;  %vm5841_vm6 = vmmov %vm5840_vm10  ;;  %v2605_v44 = vrot.slane %v2539_v15, 6  ;;  %v2397_v58 = vsel %vm2395_vm11, 1, %v5550_v6  ;;  %v2557_v63 = vsel %vm5790_vm12, %v2553_v51, 0.0  ;;  %vm2571_vm2 = vcmp.eq.s32.totalorder %v2566_v12, 1 }
 0x2e4   : > { %v2595_v46 = vpop.permute.xlu0 %2594  ;;  %vm2572_vm13 = vcmp.eq.s32.totalorder %v2570_v56, 1  ;;  %v2401_v52 = vrot.slane %v2396_v13, %v3318_v5  ;;  %vm5842_vm5 = vcmask 1043456   ;;  %vm5843_vm8 = vcmask 1039360  }
 0x2e5   : > { %v2505_v0 = vpop.permute.xlu1 %2504  ;;  %vm5844_vm3 = vmmov %vm5843_vm8  ;;  %v2611_v15 = vrot.slane %v2557_v63, 4  ;;  %vm5845_vm12 = vcmask 449536   ;;  %v2405_v56 = vrot.slane %v2397_v58, %v3318_v5  ;;  %vm5850_vm4 = vcmask 72704  }
 0x2e6   : > { %v2508_v61 = vsel %vm5840_vm10, %v4666_v26, %v2505_v0  ;;  %v2509_v49 = vsel %vm5841_vm6, %v2505_v0, %v2507_v62  ;;  %v2386_v47 = vsel %vm5845_vm12, %v4668_v36, %v2383_v9  ;;  %vm5849_vm1 = vmmov %vm5845_vm12  ;;  %vm5851_vm11 = vnez %v5629_v42 }
 0x2e7   : > { %v2512_v35 = vsel %vm4903_vm14, %v2508_v61, 0.0  ;;  %v2513_v3 = vsel %vm4911_vm7, %v2509_v49, 0.0  ;;  %vm4949_vm14 = vcmp.eq.s32.totalorder %v2401_v52, 1  ;;  %vm5848_vm7 = vmmov %vm5842_vm5  ;;  %v2421_v49 = vsel %vm4797_vm0, 1, %v5550_v6 }
 0x2e8   : > { %v2620_v21 = vsel %vm2001_vm15, %v2512_v35, %v2604_v14  ;;  %v2413_v62 = vpop.permute.xlu0 %2412  ;;  %v2621_v17 = vsel %vm2001_vm15, %v2513_v3, %v2605_v44  ;;  %v2387_v36 = vsel %vm5849_vm1, %v2383_v9, %v4861_v18  ;;  %vm4968_vm10 = vcmp.eq.s32.totalorder %v2405_v56, 1  ;;  %vm5854_vm0 = vmmov %vm5850_vm4 }
 0x2e9   : > { %v2593_v26 = vpop.permute.xlu1 %2592  ;;  %v2622_v32 = vsel %vm5842_vm5, %v2620_v21, %v2610_v60  ;;  %v2623_v61 = vsel %vm5848_vm7, %v2621_v17, %v2611_v15  ;;  %v2390_v60 = vsel %vm5851_vm11, %v2386_v47, 0.0  ;;  %v2391_v18 = vsel %vm5851_vm11, %v2387_v36, 0.0 }
 0x2ea   : > { %v2596_v37 = vsel %vm5843_vm8, %v4674_v54, %v2593_v26  ;;  %v2597_v45 = vsel %vm5844_vm3, %v2593_v26, %v2595_v46  ;;  %vm2430_vm6 = vcmp.eq.s32.totalorder %v2425_v53, 1  ;;  %v2429_v58 = vrot.slane %v2421_v49, %v3318_v5  ;;  %vm5859_vm3 = vmmov %vm5848_vm7 }
 0x2eb   : > { %v2600_v51 = vsel %vm2571_vm2, %v2596_v37, 0.0  ;;  %v2601_v22 = vsel %vm2572_vm13, %v2597_v45, 0.0  ;;  %v2446_v63 = vrot.slane %v2390_v60, 6  ;;  %vm5855_vm2 = vcmask 457728   ;;  %vm5861_vm7 = vmmov %vm5859_vm3 }
 0x2ec   : > { %v2616_v0 = vrot.slane %v2600_v51, 2  ;;  %v2617_v12 = vrot.slane %v2601_v22, 2  ;;  %v2373_v46 = vpop.permute.xlu0 %2372  ;;  %vm5856_vm13 = vmmov %vm5855_vm2  ;;  %vm5857_vm5 = vcmask 64512   ;;  %vm5858_vm8 = vnez %v5635_v19 }
 0x2ed   : > { %v2411_v54 = vpop.permute.xlu1 %2410  ;;  %v2447_v45 = vrot.slane %v2391_v18, 6  ;;  %vm2431_vm12 = vcmp.eq.s32.totalorder %v2429_v58, 1  ;;  %vm5015_vm1 = vcmp.ge.s32.totalorder %v3298_v1, %v506_v24 }
 0x2ee   : > { %v2414_v13 = vsel %vm5850_vm4, %v4672_v39, %v2411_v54  ;;  %v2625_v35 = vsel %vm5549_vm9, %v2623_v61, %v2617_v12  ;;  %v2624_v3 = vsel %vm5549_vm9, %v2622_v32, %v2616_v0  ;;  %v2415_v39 = vsel %vm5854_vm0, %v2411_v54, %v2413_v62 }
 0x2ef   : > { %v2418_v44 = vsel %vm4949_vm14, %v2414_v13, 0.0  ;;  %2788 = vmatprep.subr.mxu0 %v2625_v35  ;;  %v2419_v23 = vsel %vm4968_vm10, %v2415_v39, 0.0  ;;  %vm5860_vm14 = vmmov %vm5857_vm5  ;;  %vm5864_vm4 = vcmp.lt.s32.totalorder %v3528_v34, 7  ;;  %vm5865_vm10 = vcmp.lt.s32.totalorder %v3517_v29, 56 }
 0x2f0   : > { %2789 = vmatpush1.msra.mxu0 %v2624_v3  ;;  %v2435_v21 = vpop.permute.xlu0 %2434  ;;  %v2452_v17 = vrot.slane %v2418_v44, 4  ;;  %v2453_v12 = vrot.slane %v2419_v23, 4  ;;  %vm2030_vm11 = vmand %vm5015_vm1, %vm5864_vm4 }
 0x2f1   : > { %v2371_v9 = vpop.permute.xlu1 %2370  ;;  %v2438_v32 = vsel %vm5857_vm5, %v4681_v57, %v2435_v21  ;;  %vm5031_vm0 = vmand %vm5015_vm1, %vm5865_vm10 }
 0x2f2   : > { %v2374_v26 = vsel %vm5855_vm2, %v4683_v2, %v2371_v9  ;;  %v2375_v52 = vsel %vm5856_vm13, %v2371_v9, %v2373_v46  ;;  %v2442_v37 = vsel %vm2430_vm6, %v2438_v32, 0.0  ;;  %vm5868_vm6 = vmmov %vm5865_vm10  ;;  %vm5869_vm2 = vnez %v5561_v25 }
 0x2f3   : > { %v2378_v42 = vsel %vm5858_vm8, %v2374_v26, 0.0  ;;  %v2379_v62 = vsel %vm5858_vm8, %v2375_v52, 0.0  ;;  %v2458_v2 = vrot.slane %v2442_v37, 2  ;;  %vm5039_vm13 = vmand %vm5869_vm2, %vm5868_vm6  ;;  %v5107_v23 = vsel %vm5031_vm0, 1, %v5550_v6 }
 0x2f4   : > { %v2462_v51 = vsel %vm2001_vm15, %v2378_v42, %v2446_v63  ;;  %v4988_v15 = vpop.permute.xlu0 %2289  ;;  %v2463_v47 = vsel %vm2001_vm15, %v2379_v62, %v2447_v45  ;;  %vm5872_vm5 = vmmov %vm5864_vm4  ;;  %v2102_v52 = vsel %vm5039_vm13, 1, %v5550_v6 }
 0x2f5   : > { %v2437_v22 = vpop.permute.xlu1 %2436  ;;  %v2464_v57 = vsel %vm5859_vm3, %v2462_v51, %v2452_v17  ;;  %v2465_v61 = vsel %vm5861_vm7, %v2463_v47, %v2453_v12  ;;  %vm2031_vm8 = vmand %vm5869_vm2, %vm5872_vm5 }
 0x2f6   : > { %v2439_v0 = vsel %vm5860_vm14, %v2435_v21, %v2437_v22  ;;  %v2466_v19 = vsel %vm5549_vm9, %v2464_v57, %v2458_v2  ;;  %vm5873_vm3 = vmmov %vm5864_vm4  ;;  %vm5875_vm4 = vcmp.ge.s32.totalorder %v3528_v34, 1  ;;  %v2032_v21 = vsel %vm2030_vm11, 1, %v5550_v6 }
 0x2f7   : > { %v2443_v56 = vsel %vm2431_vm12, %v2439_v0, 0.0  ;;  %vm2152_vm12 = vmand %vm5031_vm0, %vm5873_vm3  ;;  %v2037_v17 = vrot.slane %v2032_v21, %v3318_v5  ;;  %v2033_v42 = vsel %vm2031_vm8, 1, %v5550_v6  ;;  %vm5883_vm11 = vcmp.lt.s32.totalorder %v3528_v34, 7 }
 0x2f8   : > { %v2459_v14 = vrot.slane %v2443_v56, 2  ;;  %v4996_v46 = vpop.permute.xlu0 %2197  ;;  %vm5874_vm14 = vmmov %vm5873_vm3  ;;  %vm5877_vm3 = vcmp.ge.s32.totalorder %v3517_v29, 8  ;;  %v2154_v32 = vsel %vm2152_vm12, 1, %v5550_v6  ;;  %v2041_v47 = vrot.slane %v2033_v42, %v3318_v5 }
 0x2f9   : > { %v4994_v54 = vpop.permute.xlu1 %2291  ;;  %vm2153_vm7 = vmand %vm5039_vm13, %vm5874_vm14  ;;  %v2159_v2 = vrot.slane %v2154_v32, %v3318_v5  ;;  %v5145_v56 = vld.sshfl [vmem:[#allocation4 + $0x2] sm:$0x33 pattern:$0x76325410]  ;;  %v2106_v21 = vrot.slane %v5107_v23, %v3318_v5 }
 0x2fa   : > { %v2467_v53 = vsel %vm5549_vm9, %v2465_v61, %v2459_v14  ;;  %vm2075_vm10 = vmand %vm5031_vm0, %vm5875_vm4  ;;  %v2155_v29 = vsel %vm2153_vm7, 1, %v5550_v6  ;;  %vm5889_vm7 = vcmp.ge.s32.totalorder %v3528_v34, 1  ;;  %v2024_v12 = vcombine.high %v5145_v56, %v5145_v56 }
 0x2fb   : > { %2790 = vmatprep.subr.mxu0 %v2467_v53  ;;  %vm5876_vm6 = vmmov %vm5875_vm4  ;;  %v2077_v37 = vsel %vm2075_vm10, 1, %v5550_v6  ;;  %v2163_v61 = vrot.slane %v2155_v29, %v3318_v5  ;;  %v5907_v34 = vmov 0  }
 0x2fc   : > { %2791 = vmatpush1.msra.mxu0 %v2466_v19  ;;  %v5002_v36 = vpop.permute.xlu0 %2277  ;;  %vm2076_vm5 = vmand %vm5039_vm13, %vm5876_vm6  ;;  %v2082_v53 = vrot.slane %v2077_v37, %v3318_v5 }
 0x2fd   : > { %v5000_v49 = vpop.permute.xlu1 %2199  ;;  %vm5072_vm9 = vmand %vm5015_vm1, %vm5877_vm3  ;;  %v5102_v45 = vsel %vm2076_vm5, 1, %v5550_v6 }
 0x2fe   : > { %vm5880_vm14 = vmmov %vm5877_vm3  ;;  %v5130_v0 = vsel %vm5072_vm9, 1, %v5550_v6  ;;  %vm5147_vm3 = vcmp.eq.s32.totalorder %v2037_v17, 1  ;;  %v2086_v39 = vrot.slane %v5102_v45, %v3318_v5  ;;  %v2110_v45 = vrot.slane %v2102_v52, %v3318_v5 }
 0x2ff   : > { %vm5084_vm4 = vmand %vm5869_vm2, %vm5880_vm14  ;;  %v5947_v44 = vrot.slane %v5130_v0, %v3318_v5 }
 0x300   : > { %v5006_v35 = vpop.permute.xlu0 %2303  ;;  %vm5095_vm6 = vmand %vm5072_vm9, %vm5883_vm11  ;;  %v5135_v19 = vsel %vm5084_vm4, 1, %v5550_v6 }
 0x301   : > { %v5004_v13 = vpop.permute.xlu1 %2279  ;;  %vm5886_vm8 = vmmov %vm5883_vm11  ;;  %v5167_v32 = vsel %vm5095_vm6, 1, %v5550_v6  ;;  %vm5897_vm11 = vcmask 515072   ;;  %v1916_v23 = vrot.slane %v5135_v19, %v3318_v5 }
 0x302   : > { %vm5113_vm12 = vmand %vm5084_vm4, %vm5886_vm8  ;;  %5896 = vst [vmem:[#allocation6_spill] sm:$0xff] %v5167_v32  ;;  %v2293_v29 = vsel %vm5897_vm11, %v4688_v43, %v4988_v15  ;;  %vm5180_vm8 = vcmp.eq.s32.totalorder %v2159_v2, 1 }
 0x303   : > { %vm1865_vm0 = vmand %vm5084_vm4, %vm5889_vm7  ;;  %v5172_v17 = vsel %vm5113_vm12, 1, %v5550_v6 }
 0x304   : > { %v5010_v60 = vpop.permute.xlu0 %2209  ;;  %vm5890_vm10 = vmmov %vm5889_vm7  ;;  %v5175_v42 = vsel %vm1865_vm0, 1, %v5550_v6 }
 0x305   : > { %v5008_v3 = vpop.permute.xlu1 %2301  ;;  %vm5141_vm5 = vmand %vm5869_vm2, %vm5890_vm10  ;;  %vm5224_vm10 = vcmp.eq.s32.totalorder %v2041_v47, 1 }
 0x306   : > { %vm5895_vm14 = vmmov %vm5889_vm7  ;;  %v5195_v51 = vsel %vm5141_vm5, 1, %v5550_v6  ;;  %vm5908_vm5 = vnez %v5679_v7 }
 0x307   : > { %vm1957_vm4 = vmand %vm5015_vm1, %vm5895_vm14  ;;  %v1968_v52 = vrot.slane %v5195_v51, %v3318_v5  ;;  %vm5909_vm14 = vcmask 1039360  }
 0x308   : > { %v5025_v18 = vpop.permute.xlu0 %2063  ;;  %vm5900_vm13 = vmmov %vm5889_vm7  ;;  %vm5902_vm7 = vcmask 596992   ;;  %v5208_v19 = vsel %vm1957_vm4, 1, %v5550_v6  ;;  %vm5240_vm4 = vcmp.eq.s32.totalorder %v2163_v61, 1  ;;  %v5259_v61 = vsel %vm5869_vm2, %v2024_v12, 0.0 }
 0x309   : > { %v5023_v30 = vpop.permute.xlu1 %2211  ;;  %vm1864_vm6 = vmand %vm5072_vm9, %vm5900_vm13  ;;  %v2201_v2 = vsel %vm5902_vm7, %v4690_v27, %v4996_v46  ;;  %vm5903_vm9 = vnez %v5644_v28  ;;  %vm5913_vm13 = vcmask 465920   ;;  %vm5282_vm2 = vcmp.eq.s32.totalorder %v2086_v39, 1  ;;  %v5971_v6 = vld [vmem:[#allocation6_spill] sm:$0xff] }
 0x30a   : > { %vm5901_vm12 = vmmov %vm5897_vm11  ;;  %v2297_v27 = vsel %vm5903_vm9, %v2293_v29, 0.0  ;;  %v5231_v32 = vsel %vm1864_vm6, 1, %v5907_v34  ;;  %v2205_v29 = vsel %vm5908_vm5, %v2201_v2, 0.0  ;;  %vm5912_vm11 = vcmask 531456  }
 0x30b   : > { %v2294_v43 = vsel %vm5901_vm12, %v4988_v15, %v4994_v54  ;;  %v1875_v15 = vrot.slane %v5175_v42, %v3318_v5  ;;  %vm5904_vm0 = vmmov %vm5902_vm7  ;;  %v5249_v28 = vsel %vm5912_vm11, %v4696_v48, %v5002_v36  ;;  %v5261_v2 = vrot.slane %v2297_v27, 4 }
 0x30c   : > { %v5053_v9 = vpop.permute.xlu0 %2185  ;;  %v2202_v54 = vsel %vm5904_vm0, %v4996_v46, %v5000_v49  ;;  %v2298_v42 = vsel %vm5903_vm9, %v2294_v43, 0.0  ;;  %v2067_v46 = vsel %vm5909_vm14, %v4713_v38, %v5025_v18  ;;  %v2305_v43 = vsel %vm5913_vm13, %v4698_v11, %v5008_v3  ;;  %vm5914_vm6 = vmmov %vm5913_vm13 }
 0x30d   : > { %v5051_v24 = vpop.permute.xlu1 %2065  ;;  %v2027_v38 = vsel %vm5015_vm1, %v5145_v56, 0.0  ;;  %v2206_v34 = vsel %vm5908_vm5, %v2202_v54, 0.0  ;;  %v2306_v48 = vsel %vm5914_vm6, %v5008_v3, %v5006_v35  ;;  %vm5915_vm12 = vcmask 973824   ;;  %vm5922_vm0 = vmmov %vm5912_vm11 }
 0x30e   : > { %v2189_v11 = vsel %vm5915_vm12, %v4711_v50, %v5053_v9  ;;  %vm5271_vm7 = vcmp.eq.s32.totalorder %v2082_v53, 1  ;;  %v5275_v25 = vrot.slane %v2298_v42, 4  ;;  %v2233_v56 = vrot.slane %v2205_v29, 6 }
 0x30f   : > { %vm5918_vm1 = vcmask 588800   ;;  %v2071_v12 = vsel %vm5147_vm3, %v2067_v46, 0.0  ;;  %vm5921_vm9 = vnez %v5653_v20  ;;  %v2282_v3 = vsel %vm5922_vm0, %v5002_v36, %v5004_v13 }
 0x310   : > { %v5078_v26 = vpop.permute.xlu0 %2223  ;;  %v2213_v7 = vsel %vm5918_vm1, %v4704_v41, %v5010_v60  ;;  %v2285_v50 = vsel %vm5921_vm9, %v5249_v28, 0.0  ;;  %vm5923_vm5 = vnez %v5641_v8  ;;  %vm5924_vm14 = vmmov %vm5918_vm1  ;;  %vm5299_vm3 = vcmp.eq.s32.totalorder %v2110_v45, 1 }
 0x311   : > { %v5076_v63 = vpop.permute.xlu1 %2187  ;;  %v2309_v53 = vsel %vm5923_vm5, %v2305_v43, 0.0  ;;  %v2214_v41 = vsel %vm5924_vm14, %v5010_v60, %v5023_v30  ;;  %v2234_v54 = vrot.slane %v2206_v34, 6  ;;  %v2310_v42 = vsel %vm5923_vm5, %v2306_v48, 0.0 }
 0x312   : > { %vm5927_vm11 = vcmask 1039360   ;;  %v2193_v13 = vsel %vm5180_vm8, %v2189_v11, 0.0  ;;  %vm5310_vm13 = vcmp.eq.s32.totalorder %v2106_v21, 1  ;;  %vm5930_vm6 = vnez %v5662_v55 }
 0x313   : > { %v2068_v36 = vsel %vm5927_vm11, %v5025_v18, %v5051_v24  ;;  %v2217_v30 = vsel %vm5930_vm6, %v2213_v7, 0.0  ;;  %v2127_v45 = vrot.slane %v2071_v12, 6  ;;  %v2190_v8 = vsel %vm5915_vm12, %v5053_v9, %v5076_v63 }
 0x314   : > { %v5120_v57 = vpop.permute.xlu0 %2093  ;;  %vm5931_vm1 = vcmask 580608   ;;  %vm5322_vm0 = vcmp.eq.s32.totalorder %v1916_v23, 1  ;;  %v2286_v24 = vsel %vm5921_vm9, %v2282_v3, 0.0  ;;  %v2338_v21 = vrot.slane %v2309_v53, 2 }
 0x315   : > { %v5118_v22 = vpop.permute.xlu1 %2221  ;;  %v2218_v1 = vsel %vm5930_vm6, %v2214_v41, 0.0  ;;  %vm5934_vm8 = vmmov %vm5931_vm1  ;;  %v2339_v9 = vrot.slane %v2310_v42, 2  ;;  %v2072_v63 = vsel %vm5224_vm10, %v2068_v36, 0.0  ;;  %vm5935_vm5 = vcmask 990208  }
 0x316   : > { %v2225_v29 = vsel %vm5931_vm1, %v4722_v10, %v5118_v22  ;;  %v2226_v46 = vsel %vm5934_vm8, %v5118_v22, %v5078_v26  ;;  %v2249_v10 = vsel %vm2001_vm15, %v2193_v13, %v2233_v56  ;;  %v2239_v28 = vrot.slane %v2217_v30, 4  ;;  %vm5937_vm14 = vmmov %vm5935_vm5 }
 0x317   : > { %v2194_v55 = vsel %vm5240_vm4, %v2190_v8, 0.0  ;;  %vm5936_vm9 = vnez %v5659_v33  ;;  %vm5346_vm11 = vcmp.eq.s32.totalorder %v1875_v15, 1  ;;  %v2240_v22 = vrot.slane %v2218_v1, 4 }
 0x318   : > { %v5186_v62 = vpop.permute.xlu0 %1923  ;;  %v2229_v43 = vsel %vm5936_vm9, %v2225_v29, 0.0  ;;  %v2230_v48 = vsel %vm5936_vm9, %v2226_v46, 0.0  ;;  %vm5940_vm10 = vcmask 982016   ;;  %v5941_v49 = vrot.slane %v5172_v17, %v3318_v5 }
 0x319   : > { %v5184_v37 = vpop.permute.xlu1 %2320  ;;  %vm5944_vm6 = vmmov %vm5940_vm10  ;;  %vm5945_vm12 = vcmask 1043456   ;;  %v2250_v33 = vsel %vm2001_vm15, %v2194_v55, %v2234_v54  ;;  %v2245_v7 = vrot.slane %v2229_v43, 2  ;;  %vm5946_vm1 = vcmask 64512  }
 0x31a   : > { %vm5357_vm4 = vcmp.eq.s32.totalorder %v5941_v49, 1  ;;  %v2246_v41 = vrot.slane %v2230_v48, 2  ;;  %vm5950_vm8 = vcmask 523264   ;;  %vm5954_vm9 = vcmask 56320  }
 0x31b   : > { %v1871_v55 = vrot.slane %v5231_v32, %v3318_v5  ;;  %v5973_v49 = vrot.slane %v5208_v19, %v3318_v5  ;;  %v2744_v19 = vld [vmem:[%s5476_s6] sm:$0xf] }
 0x31c   : > { %v2116_v58 = vpop.permute.xlu0 %2115 }
 0x31d   : > { %v2092_v47 = vpop.permute.xlu1 %2091 }
 0x31e   : > { %v2095_v23 = vsel %vm5935_vm5, %v4720_v31, %v2092_v47  ;;  %v2096_v26 = vsel %vm5937_vm14, %v2092_v47, %v5120_v57  ;;  %v2143_v31 = vsel %vm2001_vm15, %v2027_v38, %v2127_v45  ;;  %v2128_v57 = vrot.slane %v2072_v63, 6 }
 0x31f   : > { %v2099_v15 = vsel %vm5271_vm7, %v2095_v23, 0.0  ;;  %v2119_v47 = vsel %vm5944_vm6, %v4735_v16, %v2116_v58  ;;  %v2251_v38 = vsel %vm5945_vm12, %v2249_v10, %v2239_v28  ;;  %v2100_v12 = vsel %vm5282_vm2, %v2096_v26, 0.0  ;;  %vm5951_vm2 = vmmov %vm5950_vm8 }
 0x320   : > { %v1950_v39 = vpop.permute.xlu0 %1949  ;;  %vm5375_vm7 = vcmp.eq.s32.totalorder %v5947_v44, 1  ;;  %v2123_v42 = vsel %vm5310_vm13, %v2119_v47, 0.0  ;;  %v2134_v13 = vrot.slane %v2100_v12, 4  ;;  %vm5955_vm13 = vcmask 1045504  }
 0x321   : > { %v5297_v14 = vpop.permute.xlu1 %1921  ;;  %vm5956_vm14 = vmmov %vm5955_vm13 }
 0x322   : > { %v1926_v17 = vsel %vm5946_vm1, %v5297_v14, %v5186_v62  ;;  %v2133_v62 = vrot.slane %v2099_v15, 4  ;;  %vm5959_vm6 = vmmov %vm5955_vm13 }
 0x323   : > { %v1930_v30 = vsel %vm5322_vm0, %v1926_v17, 0.0 }
 0x324   : > { %v5338_v20 = vpop.permute.xlu0 %1897  ;;  %v1986_v63 = vrot.slane %v1930_v30, 6 }
 0x325   : > { %v2118_v34 = vpop.permute.xlu1 %2117 }
 0x326   : > { %v2120_v11 = vsel %vm5940_vm10, %v2116_v58, %v2118_v34  ;;  %vm5957_vm10 = vcmask 72704  }
 0x327   : > { %v2124_v58 = vsel %vm5299_vm3, %v2120_v11, 0.0  ;;  %vm5952_vm3 = vmmov %vm5945_vm12 }
 0x328   : > { %v2323_v53 = vpop.permute.xlu0 %2322  ;;  %vm5953_vm5 = vmmov %vm5952_vm3  ;;  %v2140_v45 = vrot.slane %v2124_v58, 2 }
 0x329   : > { %v1948_v3 = vpop.permute.xlu1 %1947  ;;  %v2326_v35 = vsel %vm5950_vm8, %v5184_v37, %v2323_v53  ;;  %v2327_v54 = vsel %vm5951_vm2, %v2323_v53, %v4706_v4  ;;  %vm5958_vm0 = vmmov %vm5952_vm3  ;;  %vm5962_vm8 = vcmask 64512  }
 0x32a   : > { %v2342_v36 = vsel %vm2001_vm15, %v2285_v50, %v2326_v35  ;;  %v2343_v0 = vsel %vm2001_vm15, %v2286_v24, %v2327_v54  ;;  %v1952_v4 = vsel %vm5954_vm9, %v1948_v3, %v1950_v39  ;;  %v2139_v24 = vrot.slane %v2123_v42, 2  ;;  %vm5960_vm12 = vmmov %vm5959_vm6 }
 0x32b   : > { %v2345_v27 = vsel %vm5952_vm3, %v2343_v0, %v5275_v25  ;;  %v2344_v37 = vsel %vm5953_vm5, %v2342_v36, %v5261_v2  ;;  %v2252_v1 = vsel %vm5958_vm0, %v2250_v33, %v2240_v22  ;;  %v2144_v25 = vsel %vm2001_vm15, %v5259_v61, %v2128_v57  ;;  %vm5961_vm1 = vmmov %vm5958_vm0 }
 0x32c   : > { %v1976_v60 = vpop.permute.xlu0 %1975  ;;  %v2347_v29 = vsel %vm5955_vm13, %v2345_v27, %v2339_v9  ;;  %v2346_v50 = vsel %vm5956_vm14, %v2344_v37, %v2338_v21  ;;  %v2254_v39 = vsel %vm5959_vm6, %v2252_v1, %v2246_v41  ;;  %v2253_v46 = vsel %vm5960_vm12, %v2251_v38, %v2245_v7  ;;  %vm5963_vm2 = vmmov %vm5958_vm0 }
 0x32d   : > { %v1900_v8 = vpop.permute.xlu1 %1899  ;;  %2792 = vmatprep.subr.mxu0 %v2347_v29  ;;  %v2145_v21 = vsel %vm5961_vm1, %v2143_v31, %v2133_v62  ;;  %v1925_v9 = vsel %vm5962_vm8, %v4737_v59, %v5297_v14  ;;  %v1956_v10 = vsel %vm5357_vm4, %v1952_v4, 0.0  ;;  %v2146_v61 = vsel %vm5963_vm2, %v2144_v25, %v2134_v13  ;;  %vm5967_vm5 = vmmov %vm5959_vm6 }
 0x32e   : > { %v1902_v18 = vsel %vm5957_vm10, %v5338_v20, %v1900_v8  ;;  %2793 = vmatpush1.msra.mxu0 %v2346_v50  ;;  %vm5419_vm3 = vcmp.eq.s32.totalorder %v1968_v52, 1  ;;  %v2148_v14 = vsel %vm5967_vm5, %v2146_v61, %v2140_v45  ;;  %vm5968_vm4 = vcmask 7168   ;;  %vm5970_vm13 = vmmov %vm5967_vm5 }
 0x32f   : > { %v1906_v2 = vsel %vm5346_vm11, %v1902_v18, 0.0  ;;  %2794 = vmatprep.subr.mxu0 %v2254_v39  ;;  %vm5964_vm11 = vmmov %vm5954_vm9  ;;  %v2147_v51 = vsel %vm5970_vm13, %v2145_v21, %v2139_v24  ;;  %v1929_v52 = vsel %vm5375_vm7, %v1925_v9, 0.0  ;;  %v5972_v22 = vrot.slane %v5971_v6, %v3318_v5 }
 0x330   : > { %v1951_v23 = vsel %vm5964_vm11, %v4744_v40, %v1948_v3  ;;  %2795 = vmatpush1.msra.mxu0 %v2253_v46  ;;  %v1972_v59 = vpop.permute.xlu0 %1971  ;;  %v2003_v43 = vsel %vm2001_vm15, %v1906_v2, %v1986_v63  ;;  %vm5969_vm9 = vmmov %vm5968_vm4  ;;  %v1992_v31 = vrot.slane %v1956_v10, 4  ;;  %vm1969_vm10 = vcmp.eq.s32.totalorder %v5973_v49, 1 }
 0x331   : > { %v1974_v28 = vpop.permute.xlu1 %1973  ;;  %2796 = vmatprep.subr.mxu0 %v2148_v14  ;;  %vm1943_vm14 = vcmp.eq.s32.totalorder %v5972_v22, 1  ;;  %v1985_v47 = vrot.slane %v1929_v52, 6  ;;  %vm1876_vm7 = vcmp.eq.s32.totalorder %v1871_v55, 1  ;;  %vm5974_vm6 = vcmask 72704   ;;  %vm5975_vm12 = vmmov %vm5967_vm5 }
 0x332   : > { %v1978_v26 = vsel %vm5968_vm4, %v1974_v28, %v1976_v60  ;;  %v1977_v40 = vsel %vm5969_vm9, %v1972_v59, %v1974_v28  ;;  %2797 = vmatpush1.msra.mxu0 %v2147_v51  ;;  %v1955_v48 = vsel %vm1943_vm14, %v1951_v23, 0.0  ;;  %v2005_v15 = vsel %vm5958_vm0, %v2003_v43, %v1992_v31  ;;  %vm5976_vm1 = vmmov %vm5958_vm0 }
 0x333   : > { %v1982_v32 = vsel %vm5419_vm3, %v1978_v26, 0.0  ;;  %v1981_v56 = vsel %vm1969_vm10, %v1977_v40, 0.0  ;;  %v1991_v7 = vrot.slane %v1955_v48, 4  ;;  %vm5977_vm8 = vmmov %vm5967_vm5  ;;  %vm5978_vm2 = vcmask 457728  }
 0x334   : > { %v1998_v11 = vrot.slane %v1982_v32, 2  ;;  %v1997_v17 = vrot.slane %v1981_v56, 2 }
 0x335   : > { %v1896_v57 = vpop.permute.xlu1 %1895 }
 0x336   : > { %v1901_v38 = vsel %vm5974_vm6, %v1896_v57, %v5338_v20  ;;  %v2008_v33 = vsel %vm5975_vm12, %v2005_v15, %v1998_v11 }
 0x337   : > { %v1905_v12 = vsel %vm1876_vm7, %v1901_v38, 0.0  ;;  %2798 = vmatprep.subr.mxu0 %v2008_v33 }
 0x338   : > { %v2002_v3 = vsel %vm2001_vm15, %v1905_v12, %v1985_v47 }
 0x339   : > { %v2004_v5 = vsel %vm5976_vm1, %v2002_v3, %v1991_v7 }
 0x33a   : > { %v2007_v53 = vsel %vm5977_vm8, %v2004_v5, %v1997_v17 }
 0x33b   : > { %2799 = vmatpush1.msra.mxu0 %v2007_v53 }
 0x33c   : > { %3011 = vmatmul.mubr.msk.f32.vlgmr.msra.gmra.mxu0 %vm5978_vm2, %v2744_v19 }
 0x342   : > { %v2763_v20 = vpop.permute.xlu1 %2762 }
 0x3fc   : > { %v2834_v41 = vpop.f32.mrf.mxu0 }
 0x3fd   : > { %v2835_v16 = vadd.f32 %v2834_v41, %v2763_v20 }
 0x3fe   : > { %v2836_v44 = vpop.f32.mrf.mxu0 }
 0x3ff   : > { %v2837_v58 = vadd.f32 %v2836_v44, %v2763_v20 }
 0x401   : > { %v2841_v35 = vcombine.low %v2835_v16, %v2837_v58 }
 0x403   : > { %2843 = vst [vmem:[%s461_s21] sm:$0xff] %v2841_v35 }
 0x404 PF: > { %s18_s9 = sadd.s32 1, %s3191_s9   ;;  %s5979_s27 = smov %s3183_s29 }
 0x405   : > { %p15_p10 = scmp.ge.s32.totalorder %s18_s9, 6   ;;  %s5980_s28 = smov %s3187_s30 }
 0x406   : > { %s5981_s29 = smov %s5984_s10  ;;  %s5982_s30 = smov %s5988_s11 }
 0x407   :  { %17 = sbr.rel (!%p15_p10) target bundleno = 3 (0x3), region = 88 }

</bundles_post_ra>
